<compile_context>
chip_gen: v6e
topology: v6e:2x2x1
jax: 0.10.0
libtpu: 0.0.40
codegen_flags: <defaults>
</compile_context>

<pallas_src>
import functools

import jax
import jax.numpy as jnp
from jax.experimental import pallas as pl
from jax.experimental.pallas import tpu as pltpu


def _round_up(x, m):
    return ((x + m - 1) // m) * m


def _pad_lane(n):
    # Lane-dense padding; target 256-wide tiles once the real dim exceeds 128
    # (v6e/v7x MXU is 2x256^2), but never inflate a <=128 dim past 128 (v5e native).
    return _round_up(n, 128) if n <= 128 else _round_up(n, 256)


def _shapelet_kernel(P, L, C, log, x_ref, sh_ref, sl_ref, snorm_ref, wt_ref,
                     bias_ref, out_ref, sim_ref, idx_ref, xw_ref):
    """One batch tile: in-kernel im2col -> MXU cross term -> min/argmin -> linear head.

    x_ref    : (Bt, T_pad, C)      f32   raw input tile (time zero-padded to P_pad+L-1)
    sh_ref   : (LC_pad, K_pad)     bf16  flattened shapelets^T, high bf16 part
    sl_ref   : (LC_pad, K_pad)     bf16  flattened shapelets^T, low  bf16 part
    snorm_ref: (1, K_pad)          f32   ||s_k||^2
    wt_ref   : (K_pad, O_pad)      f32   linear weight^T
    bias_ref : (1, O_pad)          f32
    out_ref  : (Bt, O_pad) f32, sim_ref: (Bt, K_pad) f32, idx_ref: (Bt, K_pad) i32
    xw_ref   : (Bt, P_pad, LC_pad) f32   VMEM scratch holding the im2col window matrix
    """
    Bt, P_pad, LC_pad = xw_ref.shape
    K_pad = sh_ref.shape[1]
    LC = L * C

    x = x_ref[...]                                           # (Bt, T_pad, C) f32

    # ---- in-kernel im2col: L shifted time-slices written side by side (lane-packed) ----
    # Zero the lane-padding columns every step (cheap, and correct even when the
    # "parallel" batch axis is split across TensorCores, unlike a program_id==0 gate).
    if LC_pad > LC:
        xw_ref[:, :, LC:LC_pad] = jnp.zeros((Bt, P_pad, LC_pad - LC), jnp.float32)
    for l in range(L):
        xw_ref[:, :, l * C:(l + 1) * C] = x[:, l:l + P_pad, :]

    # ---- ||x_window||^2 from the raw tile: per-step squared sum + length-L rolling sum ----
    sq = jnp.sum(x * x, axis=-1, keepdims=True)              # (Bt, T_pad, 1)
    xnorm = sq[:, 0:P_pad, :]
    for l in range(1, L):
        xnorm = xnorm + sq[:, l:l + P_pad, :]                # (Bt, P_pad, 1)

    # ---- cross term on the MXU: 3-pass bf16 split (~Precision.HIGH; Mosaic only
    #      lowers DEFAULT/HIGHEST, so the split is done explicitly) ----
    xw = xw_ref[...].reshape(Bt * P_pad, LC_pad)
    x_hi = xw.astype(jnp.bfloat16)
    x_lo = (xw - x_hi.astype(jnp.float32)).astype(jnp.bfloat16)
    s_hi = sh_ref[...]
    s_lo = sl_ref[...]
    cross = jnp.dot(x_hi, s_hi, preferred_element_type=jnp.float32)
    cross = cross + jnp.dot(x_lo, s_hi, preferred_element_type=jnp.float32)
    cross = cross + jnp.dot(x_hi, s_lo, preferred_element_type=jnp.float32)
    cross = cross.reshape(Bt, P_pad, K_pad)

    # ---- sliding L2 discrepancy; min / first-occurrence argmin over start positions ----
    disc = xnorm - 2.0 * cross + snorm_ref[...].reshape(1, 1, K_pad)   # (Bt, P_pad, K_pad)
    pos = jax.lax.broadcasted_iota(jnp.int32, (P_pad, K_pad), 0)[None]  # (1, P_pad, K_pad)
    disc = jnp.where(pos < P, disc, jnp.float32(jnp.inf))    # mask padded start rows
    sim = jnp.min(disc, axis=1)                              # (Bt, K_pad)
    pos_f = pos.astype(jnp.float32)
    first = jnp.where(disc == sim[:, None, :], pos_f, jnp.float32(P_pad))
    idx = jnp.min(first, axis=1).astype(jnp.int32)           # (Bt, K_pad)

    sim_ref[...] = sim
    idx_ref[...] = idx

    # ---- linear head (tiny; keep full f32 precision, lane-dense unmasked store) ----
    feats = jnp.log(sim + 1e-5) if log else sim
    out_ref[...] = (jnp.dot(feats, wt_ref[...],
                            preferred_element_type=jnp.float32,
                            precision=jax.lax.Precision.HIGHEST)
                    + bias_ref[...])


def linear_shapelet_transform(times, X, shapelets, weight, bias, *,
                              log=True, batch_block=None):
    """Wrapper: pads raw inputs to lane/sublane-friendly shapes and runs one pallas_call."""
    del times  # TODO(synk): continuous-time start positions not implemented (see header).
    X = jnp.asarray(X, jnp.float32)
    shapelets = jnp.asarray(shapelets, jnp.float32)
    weight = jnp.asarray(weight, jnp.float32)
    bias = jnp.asarray(bias, jnp.float32)

    B, T, C = X.shape
    K, L, _ = shapelets.shape
    O = weight.shape[0]
    P = T - L + 1
    assert P >= 1, "shapelet is longer than the time series"

    LC = L * C
    LC_pad = _pad_lane(LC)             # matmul contraction dim, lane-dense
    K_pad = _pad_lane(K)               # lane-dense sim/idx stores + matmul N dim
    O_pad = _pad_lane(O)               # lane-dense out store
    P_pad = _round_up(P, 8)            # sublane-aligned start positions
    T_pad = P_pad + L - 1              # zero time-padding so every window slice is full length

    if batch_block is None:
        # VMEM-aware batch tile: double-buffered X block + im2col scratch + disc-sized
        # temporaries + double-buffered outputs per batch row; target ~20 MiB so it fits
        # v7x's 32 MiB default scoped limit (64 MiB physical) with room for resident
        # params. Prefer >=2 grid steps so the "parallel" axis feeds both TCs (megacore).
        per_row = 4 * (2 * T_pad * C + P_pad * LC_pad + 3 * P_pad * K_pad
                       + 2 * (O_pad + 2 * K_pad))
        fit = max(8, ((20 << 20) // per_row) // 8 * 8)
        half = _round_up(max(B // 2, 1), 8)
        batch_block = int(max(8, min(64, fit, half)))
    Bt = batch_block
    B_pad = _round_up(B, Bt)

    # Raw X only is streamed (no wrapper-side im2col blowup): pad batch to the tile and
    # time so every window start in [0, P_pad) has a full-length (zero-extended) window.
    Xp = jnp.pad(X, ((0, B_pad - B), (0, T_pad - T), (0, 0)))

    # Shapelet / linear parameters: small lane-dense blocks, resident in VMEM across steps.
    sf = shapelets.reshape(K, LC)
    sft = jnp.pad(sf, ((0, K_pad - K), (0, LC_pad - LC))).T          # (LC_pad, K_pad) f32
    sft_hi = sft.astype(jnp.bfloat16)
    sft_lo = (sft - sft_hi.astype(jnp.float32)).astype(jnp.bfloat16)
    snorm = jnp.pad(jnp.sum(sf * sf, axis=-1), (0, K_pad - K)).reshape(1, K_pad)
    wt = jnp.pad(weight.T, ((0, K_pad - K), (0, O_pad - O)))         # (K_pad, O_pad)
    b2 = jnp.pad(bias, (0, O_pad - O)).reshape(1, O_pad)

    kernel = functools.partial(_shapelet_kernel, P, L, C, log)
    out_p, sim_p, idx_p = pl.pallas_call(
        kernel,
        grid=(B_pad // Bt,),
        in_specs=[
            pl.BlockSpec((Bt, T_pad, C), lambda b: (b, 0, 0)),   # streamed raw X tile
            pl.BlockSpec((LC_pad, K_pad), lambda b: (0, 0)),     # resident params
            pl.BlockSpec((LC_pad, K_pad), lambda b: (0, 0)),
            pl.BlockSpec((1, K_pad), lambda b: (0, 0)),
            pl.BlockSpec((K_pad, O_pad), lambda b: (0, 0)),
            pl.BlockSpec((1, O_pad), lambda b: (0, 0)),
        ],
        out_specs=[
            pl.BlockSpec((Bt, O_pad), lambda b: (b, 0)),
            pl.BlockSpec((Bt, K_pad), lambda b: (b, 0)),
            pl.BlockSpec((Bt, K_pad), lambda b: (b, 0)),
        ],
        out_shape=[
            jax.ShapeDtypeStruct((B_pad, O_pad), jnp.float32),
            jax.ShapeDtypeStruct((B_pad, K_pad), jnp.float32),
            jax.ShapeDtypeStruct((B_pad, K_pad), jnp.int32),
        ],
        scratch_shapes=[pltpu.VMEM((Bt, P_pad, LC_pad), jnp.float32)],
        compiler_params=pltpu.CompilerParams(
            # Batch axis is independent -> "parallel" (both TCs on megacore parts).
            dimension_semantics=("parallel",),
            vmem_limit_bytes=32 << 20),
    )(Xp, sft_hi, sft_lo, snorm, wt, b2)

    out = out_p[:B, :O]
    sim = sim_p[:B, :K]
    idx = idx_p[:B, :K]
    if O == 1:
        out = out[..., 0]
    return out, sim, idx


def _reference(X, shapelets, weight, bias, *, log=True):
    """Pure-JAX reference (direct squared-difference form) for correctness checking."""
    B, T, C = X.shape
    K, L, _ = shapelets.shape
    P = T - L + 1
    idxs = jnp.arange(P)[:, None] + jnp.arange(L)[None, :]
    windows = X[:, idxs, :]                                   # (B, P, L, C)
    diff = windows[:, :, None] - shapelets[None, None]        # (B, P, K, L, C)
    disc = jnp.sum(diff * diff, axis=(3, 4))                  # (B, P, K)
    sim = disc.min(axis=1)
    idx = jnp.argmin(disc, axis=1).astype(jnp.int32)
    feats = jnp.log(sim + 1e-5) if log else sim
    out = feats @ weight.T + bias
    if out.shape[-1] == 1:
        out = out[..., 0]
    return out, sim, idx, disc


if __name__ == "__main__":
    key = jax.random.PRNGKey(0)
    k1, k2, k3, k4 = jax.random.split(key, 4)

    # Small shapes consistent with the module's forward (batch grid has 2 tiles of 8).
    B, T, C = 16, 24, 4      # batch, sequence length, in_channels
    K, L, O = 8, 6, 2        # num_shapelets, num_shapelet_samples, out_channels

    times = jnp.linspace(0.0, 1.0, T, dtype=jnp.float32)
    X = jax.random.normal(k1, (B, T, C), dtype=jnp.float32)
    shapelets = jax.random.normal(k2, (K, L, C), dtype=jnp.float32)

    # Deterministic Linear(num_shapelets, out_channels) init (PyTorch-style uniform).
    bound = 1.0 / (K ** 0.5)
    weight = jax.random.uniform(k3, (O, K), minval=-bound, maxval=bound, dtype=jnp.float32)
    bias = jax.random.uniform(k4, (O,), minval=-bound, maxval=bound, dtype=jnp.float32)

    out, sim, idx = linear_shapelet_transform(times, X, shapelets, weight, bias, log=True)
    jax.block_until_ready((out, sim, idx))

    out_r, sim_r, idx_r, disc_r = _reference(X, shapelets, weight, bias, log=True)
    assert jnp.allclose(sim, sim_r, atol=1e-3, rtol=1e-3), "similarity mismatch"
    # Tolerance-aware closest-index check: exact match, or (on a near-exact tie, which the
    # 3-pass bf16 cross term could legitimately flip) the kernel's pick must be within
    # tolerance of the true minimum discrepancy.
    picked = jnp.take_along_axis(disc_r, idx[:, None, :], axis=1)[:, 0, :]
    idx_ok = (idx == idx_r) | (jnp.abs(picked - sim_r) <= 1e-3 + 1e-3 * jnp.abs(sim_r))
    assert bool(jnp.all(idx_ok)), "closest index mismatch"
    assert jnp.allclose(out, out_r, atol=1e-3, rtol=1e-3), "linear output mismatch"

    print("KERNEL_OK")
</pallas_src>

<mosaic_0001>
module attributes {stable_mosaic.version = 11 : i64} {
  func.func @_shapelet_kernel(%arg0: i32, %arg1: memref<8x29x4xf32, #tpu.memory_space<vmem>>, %arg2: memref<128x128xbf16, #tpu.memory_space<vmem>>, %arg3: memref<128x128xbf16, #tpu.memory_space<vmem>>, %arg4: memref<1x128xf32, #tpu.memory_space<vmem>>, %arg5: memref<128x128xf32, #tpu.memory_space<vmem>>, %arg6: memref<1x128xf32, #tpu.memory_space<vmem>>, %arg7: memref<8x128xf32, #tpu.memory_space<vmem>>, %arg8: memref<8x128xf32, #tpu.memory_space<vmem>>, %arg9: memref<8x128xi32, #tpu.memory_space<vmem>>, %arg10: memref<8x24x128xf32, #tpu.memory_space<vmem>>) attributes {dimension_semantics = [#tpu.dimension_semantics<parallel>], iteration_bounds = array<i64: 2>, scalar_prefetch = 0 : i64, scratch_operands = 1 : i64, tpu.core_type = #tpu.core_type<tc>, window_params = [{transform_indices = @transform_0, window_bounds = array<i64: 8, 29, 4>}, {pipeline_mode = #tpu.pipeline_mode<synchronous>, transform_indices = @transform_1, window_bounds = array<i64: 128, 128>}, {pipeline_mode = #tpu.pipeline_mode<synchronous>, transform_indices = @transform_2, window_bounds = array<i64: 128, 128>}, {pipeline_mode = #tpu.pipeline_mode<synchronous>, transform_indices = @transform_3, window_bounds = array<i64: 1, 128>}, {pipeline_mode = #tpu.pipeline_mode<synchronous>, transform_indices = @transform_4, window_bounds = array<i64: 128, 128>}, {pipeline_mode = #tpu.pipeline_mode<synchronous>, transform_indices = @transform_5, window_bounds = array<i64: 1, 128>}, {transform_indices = @transform_6, window_bounds = array<i64: 8, 128>}, {transform_indices = @transform_7, window_bounds = array<i64: 8, 128>}, {transform_indices = @transform_8, window_bounds = array<i64: 8, 128>}]} {
    %c0 = arith.constant 0 : index
    %c0_0 = arith.constant 0 : index
    %c0_1 = arith.constant 0 : index
    %0 = vector.load %arg1[%c0, %c0_0, %c0_1] : memref<8x29x4xf32, #tpu.memory_space<vmem>>, vector<8x29x4xf32>
    %cst = arith.constant 0.000000e+00 : f32
    %1 = vector.broadcast %cst : f32 to vector<8x24x104xf32>
    %c0_2 = arith.constant 0 : index
    %c0_3 = arith.constant 0 : index
    %c24 = arith.constant 24 : index
    %2 = vector.load %arg10[%c0_2, %c0_3, %c24] : memref<8x24x128xf32, #tpu.memory_space<vmem>>, vector<8x24x104xf32>
    tpu.vector_store %arg10[%c0_2, %c0_3, %c24], %1 {strides = array<i32>} : memref<8x24x128xf32, #tpu.memory_space<vmem>>, vector<8x24x104xf32>,
    %3 = vector.extract_strided_slice %0 {offsets = [0, 0, 0], sizes = [8, 24, 4], strides = [1, 1, 1]} : vector<8x29x4xf32> to vector<8x24x4xf32>
    %c0_4 = arith.constant 0 : index
    %c0_5 = arith.constant 0 : index
    %c0_6 = arith.constant 0 : index
    %4 = vector.load %arg10[%c0_4, %c0_5, %c0_6] : memref<8x24x128xf32, #tpu.memory_space<vmem>>, vector<8x24x4xf32>
    tpu.vector_store %arg10[%c0_4, %c0_5, %c0_6], %3 {strides = array<i32>} : memref<8x24x128xf32, #tpu.memory_space<vmem>>, vector<8x24x4xf32>,
    %5 = vector.extract_strided_slice %0 {offsets = [0, 1, 0], sizes = [8, 24, 4], strides = [1, 1, 1]} : vector<8x29x4xf32> to vector<8x24x4xf32>
    %c0_7 = arith.constant 0 : index
    %c0_8 = arith.constant 0 : index
    %c4 = arith.constant 4 : index
    %6 = vector.load %arg10[%c0_7, %c0_8, %c4] : memref<8x24x128xf32, #tpu.memory_space<vmem>>, vector<8x24x4xf32>
    tpu.vector_store %arg10[%c0_7, %c0_8, %c4], %5 {strides = array<i32>} : memref<8x24x128xf32, #tpu.memory_space<vmem>>, vector<8x24x4xf32>,
    %7 = vector.extract_strided_slice %0 {offsets = [0, 2, 0], sizes = [8, 24, 4], strides = [1, 1, 1]} : vector<8x29x4xf32> to vector<8x24x4xf32>
    %c0_9 = arith.constant 0 : index
    %c0_10 = arith.constant 0 : index
    %c8 = arith.constant 8 : index
    %8 = vector.load %arg10[%c0_9, %c0_10, %c8] : memref<8x24x128xf32, #tpu.memory_space<vmem>>, vector<8x24x4xf32>
    tpu.vector_store %arg10[%c0_9, %c0_10, %c8], %7 {strides = array<i32>} : memref<8x24x128xf32, #tpu.memory_space<vmem>>, vector<8x24x4xf32>,
    %9 = vector.extract_strided_slice %0 {offsets = [0, 3, 0], sizes = [8, 24, 4], strides = [1, 1, 1]} : vector<8x29x4xf32> to vector<8x24x4xf32>
    %c0_11 = arith.constant 0 : index
    %c0_12 = arith.constant 0 : index
    %c12 = arith.constant 12 : index
    %10 = vector.load %arg10[%c0_11, %c0_12, %c12] : memref<8x24x128xf32, #tpu.memory_space<vmem>>, vector<8x24x4xf32>
    tpu.vector_store %arg10[%c0_11, %c0_12, %c12], %9 {strides = array<i32>} : memref<8x24x128xf32, #tpu.memory_space<vmem>>, vector<8x24x4xf32>,
    %11 = vector.extract_strided_slice %0 {offsets = [0, 4, 0], sizes = [8, 24, 4], strides = [1, 1, 1]} : vector<8x29x4xf32> to vector<8x24x4xf32>
    %c0_13 = arith.constant 0 : index
    %c0_14 = arith.constant 0 : index
    %c16 = arith.constant 16 : index
    %12 = vector.load %arg10[%c0_13, %c0_14, %c16] : memref<8x24x128xf32, #tpu.memory_space<vmem>>, vector<8x24x4xf32>
    tpu.vector_store %arg10[%c0_13, %c0_14, %c16], %11 {strides = array<i32>} : memref<8x24x128xf32, #tpu.memory_space<vmem>>, vector<8x24x4xf32>,
    %13 = vector.extract_strided_slice %0 {offsets = [0, 5, 0], sizes = [8, 24, 4], strides = [1, 1, 1]} : vector<8x29x4xf32> to vector<8x24x4xf32>
    %c0_15 = arith.constant 0 : index
    %c0_16 = arith.constant 0 : index
    %c20 = arith.constant 20 : index
    %14 = vector.load %arg10[%c0_15, %c0_16, %c20] : memref<8x24x128xf32, #tpu.memory_space<vmem>>, vector<8x24x4xf32>
    tpu.vector_store %arg10[%c0_15, %c0_16, %c20], %13 {strides = array<i32>} : memref<8x24x128xf32, #tpu.memory_space<vmem>>, vector<8x24x4xf32>,
    %15 = arith.mulf %0, %0 : vector<8x29x4xf32>
    %cst_17 = arith.constant dense<0.000000e+00> : vector<8x29xf32>
    %16 = vector.multi_reduction <add>, %15, %cst_17 [2] : vector<8x29x4xf32> to vector<8x29xf32>
    %17 = vector.shape_cast %16 : vector<8x29xf32> to vector<8x29x1xf32>
    %18 = vector.extract_strided_slice %17 {offsets = [0, 0, 0], sizes = [8, 24, 1], strides = [1, 1, 1]} : vector<8x29x1xf32> to vector<8x24x1xf32>
    %19 = vector.extract_strided_slice %17 {offsets = [0, 1, 0], sizes = [8, 24, 1], strides = [1, 1, 1]} : vector<8x29x1xf32> to vector<8x24x1xf32>
    %20 = arith.addf %18, %19 : vector<8x24x1xf32>
    %21 = vector.extract_strided_slice %17 {offsets = [0, 2, 0], sizes = [8, 24, 1], strides = [1, 1, 1]} : vector<8x29x1xf32> to vector<8x24x1xf32>
    %22 = arith.addf %20, %21 : vector<8x24x1xf32>
    %23 = vector.extract_strided_slice %17 {offsets = [0, 3, 0], sizes = [8, 24, 1], strides = [1, 1, 1]} : vector<8x29x1xf32> to vector<8x24x1xf32>
    %24 = arith.addf %22, %23 : vector<8x24x1xf32>
    %25 = vector.extract_strided_slice %17 {offsets = [0, 4, 0], sizes = [8, 24, 1], strides = [1, 1, 1]} : vector<8x29x1xf32> to vector<8x24x1xf32>
    %26 = arith.addf %24, %25 : vector<8x24x1xf32>
    %27 = vector.extract_strided_slice %17 {offsets = [0, 5, 0], sizes = [8, 24, 1], strides = [1, 1, 1]} : vector<8x29x1xf32> to vector<8x24x1xf32>
    %28 = arith.addf %26, %27 : vector<8x24x1xf32>
    %c0_18 = arith.constant 0 : index
    %c0_19 = arith.constant 0 : index
    %c0_20 = arith.constant 0 : index
    %29 = vector.load %arg10[%c0_18, %c0_19, %c0_20] : memref<8x24x128xf32, #tpu.memory_space<vmem>>, vector<8x24x128xf32>
    %30 = vector.shape_cast %29 : vector<8x24x128xf32> to vector<192x128xf32>
    %31 = arith.truncf %30 : vector<192x128xf32> to vector<192x128xbf16>
    %32 = arith.extf %31 : vector<192x128xbf16> to vector<192x128xf32>
    %33 = arith.subf %30, %32 : vector<192x128xf32>
    %34 = arith.truncf %33 : vector<192x128xf32> to vector<192x128xbf16>
    %c0_21 = arith.constant 0 : index
    %c0_22 = arith.constant 0 : index
    %35 = vector.load %arg2[%c0_21, %c0_22] : memref<128x128xbf16, #tpu.memory_space<vmem>>, vector<128x128xbf16>
    %c0_23 = arith.constant 0 : index
    %c0_24 = arith.constant 0 : index
    %36 = vector.load %arg3[%c0_23, %c0_24] : memref<128x128xbf16, #tpu.memory_space<vmem>>, vector<128x128xbf16>
    %cst_25 = arith.constant dense<0.000000e+00> : vector<192x128xf32>
    %37 = tpu.matmul %31, %35, %cst_25 {dimension_numbers = #tpu.dot_dimension_numbers<[1], [0], [0], [1], [0, 0, 1, 1], [], []>} : vector<192x128xbf16>, vector<128x128xbf16>, vector<192x128xf32> -> vector<192x128xf32>
    %cst_26 = arith.constant dense<0.000000e+00> : vector<192x128xf32>
    %38 = tpu.matmul %34, %35, %cst_26 {dimension_numbers = #tpu.dot_dimension_numbers<[1], [0], [0], [1], [0, 0, 1, 1], [], []>} : vector<192x128xbf16>, vector<128x128xbf16>, vector<192x128xf32> -> vector<192x128xf32>
    %39 = arith.addf %37, %38 : vector<192x128xf32>
    %cst_27 = arith.constant dense<0.000000e+00> : vector<192x128xf32>
    %40 = tpu.matmul %31, %36, %cst_27 {dimension_numbers = #tpu.dot_dimension_numbers<[1], [0], [0], [1], [0, 0, 1, 1], [], []>} : vector<192x128xbf16>, vector<128x128xbf16>, vector<192x128xf32> -> vector<192x128xf32>
    %41 = arith.addf %39, %40 : vector<192x128xf32>
    %42 = vector.shape_cast %41 : vector<192x128xf32> to vector<8x24x128xf32>
    %cst_28 = arith.constant 2.000000e+00 : f32
    %43 = vector.broadcast %cst_28 : f32 to vector<8x24x128xf32>
    %44 = arith.mulf %43, %42 : vector<8x24x128xf32>
    %45 = vector.broadcast %28 : vector<8x24x1xf32> to vector<8x24x128xf32>
    %46 = arith.subf %45, %44 : vector<8x24x128xf32>
    %c0_29 = arith.constant 0 : index
    %c0_30 = arith.constant 0 : index
    %47 = vector.load %arg4[%c0_29, %c0_30] : memref<1x128xf32, #tpu.memory_space<vmem>>, vector<1x128xf32>
    %48 = vector.shape_cast %47 : vector<1x128xf32> to vector<1x1x128xf32>
    %49 = vector.broadcast %48 : vector<1x1x128xf32> to vector<8x24x128xf32>
    %50 = arith.addf %46, %49 : vector<8x24x128xf32>
    %51 = tpu.iota {dimensions = array<i32: 0>} : vector<24x128xi32>
    %52 = vector.shape_cast %51 : vector<24x128xi32> to vector<1x24x128xi32>
    %c19_i32 = arith.constant 19 : i32
    %53 = vector.broadcast %c19_i32 : i32 to vector<1x24x128xi32>
    %54 = arith.cmpi slt, %52, %53 : vector<1x24x128xi32>
    %cst_31 = arith.constant 0x7F800000 : f32
    %55 = vector.shape_cast %54 : vector<1x24x128xi1> to vector<1x24x128xi1>
    %56 = vector.broadcast %55 : vector<1x24x128xi1> to vector<8x24x128xi1>
    %57 = vector.broadcast %cst_31 : f32 to vector<8x24x128xf32>
    %58 = arith.select %56, %50, %57 : vector<8x24x128xi1>, vector<8x24x128xf32>
    %cst_32 = arith.constant dense<0x7F800000> : vector<8x128xf32>
    %59 = vector.multi_reduction <minimumf>, %58, %cst_32 [1] : vector<8x24x128xf32> to vector<8x128xf32>
    %60 = arith.sitofp %52 : vector<1x24x128xi32> to vector<1x24x128xf32>
    %61 = vector.shape_cast %59 : vector<8x128xf32> to vector<8x1x128xf32>
    %62 = vector.broadcast %61 : vector<8x1x128xf32> to vector<8x24x128xf32>
    %63 = arith.cmpf oeq, %58, %62 : vector<8x24x128xf32>
    %cst_33 = arith.constant 2.400000e+01 : f32
    %64 = vector.shape_cast %60 : vector<1x24x128xf32> to vector<1x24x128xf32>
    %65 = vector.broadcast %64 : vector<1x24x128xf32> to vector<8x24x128xf32>
    %66 = vector.broadcast %cst_33 : f32 to vector<8x24x128xf32>
    %67 = arith.select %63, %65, %66 : vector<8x24x128xi1>, vector<8x24x128xf32>
    %cst_34 = arith.constant dense<0x7F800000> : vector<8x128xf32>
    %68 = vector.multi_reduction <minimumf>, %67, %cst_34 [1] : vector<8x24x128xf32> to vector<8x128xf32>
    %69 = arith.fptosi %68 : vector<8x128xf32> to vector<8x128xi32>
    %c0_35 = arith.constant 0 : index
    %c0_36 = arith.constant 0 : index
    %70 = vector.load %arg8[%c0_35, %c0_36] : memref<8x128xf32, #tpu.memory_space<vmem>>, vector<8x128xf32>
    tpu.vector_store %arg8[%c0_35, %c0_36], %59 {strides = array<i32>} : memref<8x128xf32, #tpu.memory_space<vmem>>, vector<8x128xf32>,
    %c0_37 = arith.constant 0 : index
    %c0_38 = arith.constant 0 : index
    %71 = vector.load %arg9[%c0_37, %c0_38] : memref<8x128xi32, #tpu.memory_space<vmem>>, vector<8x128xi32>
    tpu.vector_store %arg9[%c0_37, %c0_38], %69 {strides = array<i32>} : memref<8x128xi32, #tpu.memory_space<vmem>>, vector<8x128xi32>,
    %cst_39 = arith.constant 9.99999974E-6 : f32
    %72 = vector.broadcast %cst_39 : f32 to vector<8x128xf32>
    %73 = arith.addf %59, %72 : vector<8x128xf32>
    %74 = math.log %73 : vector<8x128xf32>
    %c0_40 = arith.constant 0 : index
    %c0_41 = arith.constant 0 : index
    %75 = vector.load %arg5[%c0_40, %c0_41] : memref<128x128xf32, #tpu.memory_space<vmem>>, vector<128x128xf32>
    %cst_42 = arith.constant dense<0.000000e+00> : vector<8x128xf32>
    %76 = tpu.matmul %74, %75, %cst_42 {dimension_numbers = #tpu.dot_dimension_numbers<[1], [0], [0], [1], [0, 0, 1, 1], [], []>, precision = #tpu.contract_precision<fp32>} : vector<8x128xf32>, vector<128x128xf32>, vector<8x128xf32> -> vector<8x128xf32>
    %c0_43 = arith.constant 0 : index
    %c0_44 = arith.constant 0 : index
    %77 = vector.load %arg6[%c0_43, %c0_44] : memref<1x128xf32, #tpu.memory_space<vmem>>, vector<1x128xf32>
    %78 = vector.broadcast %77 : vector<1x128xf32> to vector<8x128xf32>
    %79 = arith.addf %76, %78 : vector<8x128xf32>
    %c0_45 = arith.constant 0 : index
    %c0_46 = arith.constant 0 : index
    %80 = vector.load %arg7[%c0_45, %c0_46] : memref<8x128xf32, #tpu.memory_space<vmem>>, vector<8x128xf32>
    tpu.vector_store %arg7[%c0_45, %c0_46], %79 {strides = array<i32>} : memref<8x128xf32, #tpu.memory_space<vmem>>, vector<8x128xf32>,
    return
  }
  func.func @transform_0(%arg0: i32) -> (i32, i32, i32) {
    %c0_i32 = arith.constant 0 : i32
    %c0_i32_0 = arith.constant 0 : i32
    %c0_i32_1 = arith.constant 0 : i32
    return %arg0, %c0_i32, %c0_i32_0 : i32, i32, i32
  }
  func.func @transform_1(%arg0: i32) -> (i32, i32) {
    %c0_i32 = arith.constant 0 : i32
    %c0_i32_0 = arith.constant 0 : i32
    %c0_i32_1 = arith.constant 0 : i32
    return %c0_i32, %c0_i32_0 : i32, i32
  }
  func.func @transform_2(%arg0: i32) -> (i32, i32) {
    %c0_i32 = arith.constant 0 : i32
    %c0_i32_0 = arith.constant 0 : i32
    %c0_i32_1 = arith.constant 0 : i32
    return %c0_i32, %c0_i32_0 : i32, i32
  }
  func.func @transform_3(%arg0: i32) -> (i32, i32) {
    %c0_i32 = arith.constant 0 : i32
    %c0_i32_0 = arith.constant 0 : i32
    %c0_i32_1 = arith.constant 0 : i32
    return %c0_i32, %c0_i32_0 : i32, i32
  }
  func.func @transform_4(%arg0: i32) -> (i32, i32) {
    %c0_i32 = arith.constant 0 : i32
    %c0_i32_0 = arith.constant 0 : i32
    %c0_i32_1 = arith.constant 0 : i32
    return %c0_i32, %c0_i32_0 : i32, i32
  }
  func.func @transform_5(%arg0: i32) -> (i32, i32) {
    %c0_i32 = arith.constant 0 : i32
    %c0_i32_0 = arith.constant 0 : i32
    %c0_i32_1 = arith.constant 0 : i32
    return %c0_i32, %c0_i32_0 : i32, i32
  }
  func.func @transform_6(%arg0: i32) -> (i32, i32) {
    %c0_i32 = arith.constant 0 : i32
    %c0_i32_0 = arith.constant 0 : i32
    return %arg0, %c0_i32 : i32, i32
  }
  func.func @transform_7(%arg0: i32) -> (i32, i32) {
    %c0_i32 = arith.constant 0 : i32
    %c0_i32_0 = arith.constant 0 : i32
    return %arg0, %c0_i32 : i32, i32
  }
  func.func @transform_8(%arg0: i32) -> (i32, i32) {
    %c0_i32 = arith.constant 0 : i32
    %c0_i32_0 = arith.constant 0 : i32
    return %arg0, %c0_i32 : i32, i32
  }
}

</mosaic_0001>

<bundles_post_ra>
// kernel: tpu_custom_call.1
= control target key start
LH: loop header
LB: loop body
LE: loop exit
PB: predicated region body
PF: predicated region fallthrough
CT: control target
= control target key end

     0   :  { %s7122_s0 = inlined_call_operand.vmem [shape: f32[16,29,4], index: 0, kind: input, shape index: {}]   ;;  %s7123_s1 = inlined_call_operand.vmem [shape: bf16[128,128], index: 1, kind: input, shape index: {}]   ;;  %s7124_s2 = inlined_call_operand.vmem [shape: bf16[128,128], index: 2, kind: input, shape index: {}]   ;;  %s7125_s3 = inlined_call_operand.vmem [shape: f32[1,128], index: 3, kind: input, shape index: {}]   ;;  %s7126_s4 = inlined_call_operand.vmem [shape: f32[128,128], index: 4, kind: input, shape index: {}]   ;;  %s7127_s5 = inlined_call_operand.vmem [shape: f32[1,128], index: 5, kind: input, shape index: {}]   ;;  %s7128_s6 = inlined_call_operand.hbm [shape: f32[16,128], index: 6, kind: output, shape index: {0}]   ;;  %s7129_s7 = inlined_call_operand.hbm [shape: f32[16,128], index: 7, kind: output, shape index: {1}]   ;;  %s7130_s8 = inlined_call_operand.hbm [shape: s32[16,128], index: 8, kind: output, shape index: {2}]  }
   0x1   :  { %7189 = sst [smem:[#allocation36_spill]] %s7122_s0 }
   0x2   :  { %14 = vsyncpa [#allocation4], 0 }
   0x3   :  { %16 = vsyncpa [#allocation4 + $0x1], 0 }
   0x4   :  { %17 = vsyncpa [#allocation6], 0 }
   0x5   :  { %19 = vsyncpa [#allocation6 + $0x1], 0  ;;  %s4562_s27 = smov 0   ;;  %s4564_s28 = smov 0  }
   0x6   :  { %s4566_s29 = smov 0   ;;  %s4568_s30 = smov 0  }
   0x7 LB: > { %s4583_s9 = sadd.s32 4294967295, %s4504_s30   ;;  %s7186_s10 = sadd.s32 4294967294, %s4504_s30   ;;  %s4504_s30 = sphi %s4568_s30, %s7294_s30   ;;  %s4500_s29 = sphi %s4566_s29, %s7293_s29   ;;  %s4496_s28 = sphi %s4564_s28, %s7292_s28   ;;  %s4492_s27 = sphi %s4562_s27, %s7291_s27  }
   0x8   : > { %s4587_s11 = sadd.s32 1, %s4504_s30   ;;  %s163_s12 = sadd.s32 1, %s4500_s29 }
   0x9   : > { %s160_s13 = ssub.s32 %s4504_s30, %s4587_s11  ;;  %p173_p0 = scmp.ne.s32.totalorder %s4500_s29, %s4496_s28 }
   0xa   : > { %p161_p1 = scmp.eq.s32.totalorder %s160_s13, 0  ;;  %p174_p2 = scmp.eq.s32.totalorder %s4583_s9, 1 }
   0xb   : > { %p179_p3 = scmp.ne.s32.totalorder %s4496_s28, %s4492_s27  ;;  %p180_p4 = scmp.eq.s32.totalorder %s7186_s10, 1 }
   0xc   : > { %s4600_s14 = scalar_select %p161_p1, %s4500_s29, %s163_s12  }
   0xd   : > { %p4602_p5 = por %p174_p2, %p173_p0  ;;  %p4606_p6 = por %p180_p4, %p179_p3 }
   0xe   : > { %p3751_p7 = scmp.ge.s32.totalorder %s4504_s30, 1  ;;  %p275_p8 = scmp.lt.s32.totalorder %s4504_s30, 3 }
  0x10   : > { %p276_p9 = pnand %p3751_p7, %p275_p8 }
  0x12   : > { %279 = sbr.rel (%p276_p9) target bundleno = 1107 (0x453), region = 44 }
  0x17   : > { %s3755_s17 = sshll.u32 %s4583_s9, 3  ;;  %vm360_vm0 = vcmask 1047744   ;;  %v7132_v0 = vmov 0.0   ;;  %vm385_vm1 = vcmask 31744   ;;  %s7193_s0 = sld [smem:[#allocation36_spill]]  ;;  %v4352_v14 = vld [vmem:[%s7123_s1 + $0x38] sm:$0xff]  }
  0x18   : > { %p4613_p10 = scmp.lt.s32.totalorder %s3755_s17, 15  ;;  %362 = vst.msk [vmem:[#allocation2 + $0x8] sm:$0xff] %vm360_vm0, %v7132_v0  ;;  %363 = vst.msk [vmem:[#allocation2 + $0x10] sm:$0xff] %vm360_vm0, %v7132_v0  ;;  %s4507_s23 = smov 4   ;;  %3987 = vmatprep.subr.bf16.mxu1 %v4352_v14  ;;  %3947 = vmatprep.subr.bf16.mxu0 %v4352_v14  ;;  %v4353_v15 = vld [vmem:[%s7123_s1 + $0x30] sm:$0xff]   ;;  %v4354_v16 = vld [vmem:[%s7123_s1 + $0x28] sm:$0xff]  }
  0x19   : > { %361 = vst.msk [vmem:[#allocation2] sm:$0xff] %vm360_vm0, %v7132_v0  ;;  %364 = vst.msk [vmem:[#allocation2 + $0x18] sm:$0xff] %vm360_vm0, %v7132_v0  ;;  %s4508_s24 = smov 8   ;;  %3988 = vmatpush3.bf16.msra.mxu1 %v4352_v14  ;;  %3948 = vmatpush3.bf16.msra.mxu0 %v4352_v14  ;;  %v4355_v19 = vld [vmem:[%s7123_s1 + $0x20] sm:$0xff]   ;;  %v4356_v21 = vld [vmem:[%s7123_s1 + $0x18] sm:$0xff]   ;;  %s4510_s12 = smov 16  }
  0x1a   : > { %365 = vst.msk [vmem:[#allocation2 + $0x20] sm:$0xff] %vm360_vm0, %v7132_v0  ;;  %366 = vst.msk [vmem:[#allocation2 + $0x28] sm:$0xff] %vm360_vm0, %v7132_v0  ;;  %s7296_s17 = smov (!%p4613_p10, %s3755_s17), 15  ;;  %3989 = vmatprep.subr.bf16.mxu1 %v4353_v15  ;;  %3949 = vmatprep.subr.bf16.mxu0 %v4353_v15  ;;  %v4357_v24 = vld [vmem:[%s7123_s1 + $0x10] sm:$0xff]   ;;  %v4358_v25 = vld [vmem:[%s7123_s1 + $0x8] sm:$0xff]   ;;  %s4511_s26 = smov 20  }
  0x1b   : > { %367 = vst.msk [vmem:[#allocation2 + $0x30] sm:$0xff] %vm360_vm0, %v7132_v0  ;;  %368 = vst.msk [vmem:[#allocation2 + $0x38] sm:$0xff] %vm360_vm0, %v7132_v0  ;;  %s3784_s19 = sshll.u32 %s7296_s17, 5  ;;  %s4509_s17 = smov 12   ;;  %v4359_v26 = vld [vmem:[%s7123_s1] sm:$0xff]   ;;  %vm540_vm2 = vcmask 64544  }
  0x1c   : > { %369 = vst.msk [vmem:[#allocation2 + $0x40] sm:$0xff] %vm360_vm0, %v7132_v0  ;;  %370 = vst.msk [vmem:[#allocation2 + $0x48] sm:$0xff] %vm360_vm0, %v7132_v0  ;;  %vm538_vm3 = vcmask 64545   ;;  %vm543_vm4 = vcmask 57376   ;;  %vm671_vm5 = vcmask 97344   ;;  %vm669_vm6 = vcmask 97346  }
  0x1d   : > { %371 = vst.msk [vmem:[#allocation2 + $0x50] sm:$0xff] %vm360_vm0, %v7132_v0  ;;  %372 = vst.msk [vmem:[#allocation2 + $0x58] sm:$0xff] %vm360_vm0, %v7132_v0  ;;  %s4670_s22 = scalar_lea.vmem %s7193_s0, %s3784_s19  ;;  %3990 = vmatpush3.bf16.msra.mxu1 %v4353_v15  ;;  %3950 = vmatpush3.bf16.msra.mxu0 %v4353_v15  ;;  %vm7131_vm7 = vcmask 91200   ;;  %vm802_vm8 = vcmask 130144   ;;  %vm800_vm9 = vcmask 130147   ;;  %vm805_vm10 = vcmask 125024  }
  0x1e   : > { %373 = vst.msk [vmem:[#allocation2 + $0x60] sm:$0xff] %vm360_vm0, %v7132_v0  ;;  %374 = vst.msk [vmem:[#allocation2 + $0x68] sm:$0xff] %vm360_vm0, %v7132_v0  ;;  %v4673_v1 = vld [vmem:[%s4670_s22 + $0x10] sm:$0xff]  ;;  %v4676_v2 = vld [vmem:[%s4670_s22] sm:$0xff]  ;;  %3991 = vmatprep.subr.bf16.mxu1 %v4354_v16  ;;  %3951 = vmatprep.subr.bf16.mxu0 %v4354_v16  ;;  %vm933_vm11 = vcmask 162944   ;;  %vm931_vm12 = vcmask 162948  }
  0x1f   : > { %375 = vst.msk [vmem:[#allocation2 + $0x70] sm:$0xff] %vm360_vm0, %v7132_v0  ;;  %376 = vst.msk [vmem:[#allocation2 + $0x78] sm:$0xff] %vm360_vm0, %v7132_v0  ;;  %446 = vrot.lane.b32.xlu1 %v4673_v1, %s4507_s23  ;;  %442 = vrot.lane.b32.xlu0 %v4676_v2, %s4507_s23  ;;  %v4683_v3 = vld [vmem:[%s4670_s22 + $0x8] sm:$0xff]  ;;  %v4693_v5 = vld [vmem:[%s4670_s22 + $0x18] sm:$0x1f]  ;;  %vm936_vm13 = vcmask 158848  }
  0x20   : > { %377 = vst.msk [vmem:[#allocation2 + $0x80] sm:$0xff] %vm360_vm0, %v7132_v0  ;;  %378 = vst.msk [vmem:[#allocation2 + $0x88] sm:$0xff] %vm360_vm0, %v7132_v0  ;;  %v4686_v4 = vld [vmem:[%s4670_s22 + $0x28] sm:$0xff]  ;;  %v4696_v6 = vld [vmem:[%s4670_s22 + $0x20] sm:$0xff]  ;;  %vm1064_vm14 = vcmask 195744   ;;  %vm1062_vm15 = vcmask 195749  }
  0x21   : > { %379 = vst.msk [vmem:[#allocation2 + $0x90] sm:$0xff] %vm360_vm0, %v7132_v0  ;;  %380 = vst.msk [vmem:[#allocation2 + $0x98] sm:$0xff] %vm360_vm0, %v7132_v0  ;;  %v4699_v7 = vld [vmem:[%s4670_s22 + $0x30] sm:$0xff]  ;;  %v4706_v8 = vld [vmem:[%s4670_s22 + $0x48] sm:$0xff]  ;;  %3992 = vmatpush3.bf16.msra.mxu1 %v4354_v16  ;;  %3952 = vmatpush3.bf16.msra.mxu0 %v4354_v16  ;;  %s7187_s20 = sand.u32 1, %s4496_s28   ;;  %s7033_s25 = sshll.u32 %s4583_s9, 7 }
  0x22   : > { %381 = vst.msk [vmem:[#allocation2 + $0xa0] sm:$0xff] %vm360_vm0, %v7132_v0  ;;  %382 = vst.msk [vmem:[#allocation2 + $0xa8] sm:$0xff] %vm360_vm0, %v7132_v0  ;;  %v4709_v9 = vld [vmem:[%s4670_s22 + $0x40] sm:$0xff]  ;;  %v4712_v10 = vld [vmem:[%s4670_s22 + $0x50] sm:$0xff]  ;;  %3993 = vmatprep.subr.bf16.mxu1 %v4355_v19  ;;  %3953 = vmatprep.subr.bf16.mxu0 %v4355_v19  ;;  %s6857_s21 = sshll.u32 %s7187_s20, 3  ;;  %s3613_s18 = scalar_lea.hbm %s7129_s7, %s7033_s25 }
  0x23   : > { %383 = vst.msk [vmem:[#allocation2 + $0xb0] sm:$0xff] %vm360_vm0, %v7132_v0  ;;  %384 = vst.msk [vmem:[#allocation2 + $0xb8] sm:$0xff] %vm360_vm0, %v7132_v0  ;;  %v4719_v11 = vld [vmem:[%s4670_s22 + $0x68] sm:$0xff]  ;;  %v4722_v12 = vld [vmem:[%s4670_s22 + $0x60] sm:$0xff]  ;;  %448 = vrot.lane.b32.xlu1 %v4693_v5, %s4507_s23  ;;  %444 = vrot.lane.b32.xlu0 %v4683_v3, %s4507_s23  ;;  %vm1067_vm0 = vcmask 192672   ;;  %s4514_s10 = smov [#allocation5]  }
  0x24   : > { %388 = vst.msk [vmem:[#allocation2 + $0x10] sm:$0xff] %vm385_vm1, %v4673_v1  ;;  %386 = vst.msk [vmem:[#allocation2] sm:$0xff] %vm385_vm1, %v4676_v2  ;;  %v4739_v13 = vld [vmem:[%s4670_s22 + $0x70] sm:$0xff]  ;;  %v4777_v17 = vld [vmem:[%s4670_s22 + $0x88] sm:$0xff]  ;;  %s4392_s20 = sshll.u32 %s4514_s10, 4  ;;  %s4393_s20 = int_to_ptr.vmem [resolvable:$false] %s4392_s20 }
  0x25   : > { %387 = vst.msk [vmem:[#allocation2 + $0x8] sm:$0xff] %vm385_vm1, %v4683_v3  ;;  %390 = vst.msk [vmem:[#allocation2 + $0x20] sm:$0xff] %vm385_vm1, %v4686_v4  ;;  %v4780_v18 = vld [vmem:[%s4670_s22 + $0x80] sm:$0xff]  ;;  %3994 = vmatpush3.bf16.msra.mxu1 %v4355_v19  ;;  %3954 = vmatpush3.bf16.msra.mxu0 %v4355_v19  ;;  %v4794_v20 = vld [vmem:[%s4670_s22 + $0x90] sm:$0xff] }
  0x26   : > { %389 = vst.msk [vmem:[#allocation2 + $0x18] sm:$0xff] %vm385_vm1, %v4696_v6  ;;  %391 = vst.msk [vmem:[#allocation2 + $0x28] sm:$0xff] %vm385_vm1, %v4699_v7  ;;  %3995 = vmatprep.subr.bf16.mxu1 %v4356_v21  ;;  %3955 = vmatprep.subr.bf16.mxu0 %v4356_v21  ;;  %v4806_v22 = vld [vmem:[%s4670_s22 + $0xa8] sm:$0xff]  ;;  %v4809_v23 = vld [vmem:[%s4670_s22 + $0xa0] sm:$0xff] }
  0x27   : > { %392 = vst.msk [vmem:[#allocation2 + $0x30] sm:$0xff] %vm385_vm1, %v4709_v9  ;;  %393 = vst.msk [vmem:[#allocation2 + $0x38] sm:$0xff] %vm385_vm1, %v4706_v8  ;;  %452 = vrot.lane.b32.xlu1 %v4686_v4, %s4507_s23  ;;  %450 = vrot.lane.b32.xlu0 %v4696_v6, %s4507_s23  ;;  %v335_v27 = vld [vmem:[%s4670_s22 + $0x38] sm:$0x1f]  ;;  %v4876_v28 = vld [vmem:[%s4670_s22 + $0xb0] sm:$0xff] }
  0x28   : > { %394 = vst.msk [vmem:[#allocation2 + $0x40] sm:$0xff] %vm385_vm1, %v4712_v10  ;;  %395 = vst.msk [vmem:[#allocation2 + $0x48] sm:$0xff] %vm385_vm1, %v4722_v12  ;;  %v4884_v29 = vld [vmem:[%s4670_s22 + $0xc8] sm:$0xff]  ;;  %v4887_v30 = vld [vmem:[%s4670_s22 + $0xc0] sm:$0xff] }
  0x29   : > { %396 = vst.msk [vmem:[#allocation2 + $0x50] sm:$0xff] %vm385_vm1, %v4719_v11  ;;  %397 = vst.msk [vmem:[#allocation2 + $0x58] sm:$0xff] %vm385_vm1, %v4739_v13  ;;  %3996 = vmatpush3.bf16.msra.mxu1 %v4356_v21  ;;  %3956 = vmatpush3.bf16.msra.mxu0 %v4356_v21  ;;  %v4898_v31 = vld [vmem:[%s4670_s22 + $0xd0] sm:$0xff]  ;;  %v4910_v32 = vld [vmem:[%s4670_s22 + $0x58] sm:$0x1f] }
  0x2a   : > { %399 = vst.msk [vmem:[#allocation2 + $0x68] sm:$0xff] %vm385_vm1, %v4777_v17  ;;  %398 = vst.msk [vmem:[#allocation2 + $0x60] sm:$0xff] %vm385_vm1, %v4780_v18  ;;  %3997 = vmatprep.subr.bf16.mxu1 %v4357_v24  ;;  %3957 = vmatprep.subr.bf16.mxu0 %v4357_v24  ;;  %v4921_v33 = vld [vmem:[%s4670_s22 + $0x78] sm:$0x1f]  ;;  %v4968_v50 = vld [vmem:[%s4670_s22 + $0xe8] sm:$0xff] }
  0x2b   : > { %575 = vrot.lane.b32.xlu1 %v4683_v3, %s4508_s24  ;;  %573 = vrot.lane.b32.xlu0 %v4676_v2, %s4508_s24  ;;  %400 = vst.msk [vmem:[#allocation2 + $0x70] sm:$0xff] %vm385_vm1, %v4794_v20  ;;  %402 = vst.msk [vmem:[#allocation2 + $0x80] sm:$0xff] %vm385_vm1, %v4806_v22  ;;  %v4971_v51 = vld [vmem:[%s4670_s22 + $0xe0] sm:$0xff]  ;;  %v4984_v54 = vld [vmem:[%s4670_s22 + $0xf0] sm:$0xff] }
  0x2c   : > { %401 = vst.msk [vmem:[#allocation2 + $0x78] sm:$0xff] %vm385_vm1, %v4809_v23  ;;  %403 = vst.msk [vmem:[#allocation2 + $0x88] sm:$0xff] %vm385_vm1, %v4876_v28  ;;  %v5011_v61 = vld [vmem:[%s4670_s22 + $0x98] sm:$0x1f] }
  0x2d   : > { %3998 = vmatpush3.bf16.msra.mxu1 %v4357_v24  ;;  %3958 = vmatpush3.bf16.msra.mxu0 %v4357_v24  ;;  %405 = vst.msk [vmem:[#allocation2 + $0x98] sm:$0xff] %vm385_vm1, %v4884_v29  ;;  %404 = vst.msk [vmem:[#allocation2 + $0x90] sm:$0xff] %vm385_vm1, %v4887_v30 }
  0x2e   : > { %3999 = vmatprep.subr.bf16.mxu1 %v4358_v25  ;;  %3959 = vmatprep.subr.bf16.mxu0 %v4358_v25  ;;  %406 = vst.msk [vmem:[#allocation2 + $0xa0] sm:$0xff] %vm385_vm1, %v4898_v31  ;;  %408 = vst.msk [vmem:[#allocation2 + $0xb0] sm:$0xff] %vm385_vm1, %v4968_v50 }
  0x2f   : > { %579 = vrot.lane.b32.xlu1 %v4693_v5, %s4508_s24  ;;  %577 = vrot.lane.b32.xlu0 %v4673_v1, %s4508_s24  ;;  %407 = vst.msk [vmem:[#allocation2 + $0xa8] sm:$0xff] %vm385_vm1, %v4971_v51  ;;  %409 = vst.msk [vmem:[#allocation2 + $0xb8] sm:$0xff] %vm385_vm1, %v4984_v54 }
  0x31   : > { %4000 = vmatpush3.bf16.msra.mxu1 %v4358_v25  ;;  %3960 = vmatpush3.bf16.msra.mxu0 %v4358_v25 }
  0x32   : > { %4001 = vmatprep.subr.bf16.mxu1 %v4359_v26  ;;  %3961 = vmatprep.subr.bf16.mxu0 %v4359_v26 }
  0x33   : > { %583 = vrot.lane.b32.xlu1 %v4686_v4, %s4508_s24  ;;  %581 = vrot.lane.b32.xlu0 %v4696_v6, %s4508_s24 }
  0x35   : > { %4002 = vmatpush3.bf16.msra.mxu1 %v4359_v26  ;;  %3962 = vmatpush3.bf16.msra.mxu0 %v4359_v26 }
  0x36   : > { %4067 = vmatprep.subr.mxu1 %v7132_v0 }
  0x37   : > { %706 = vrot.lane.b32.xlu1 %v4683_v3, %s4509_s17  ;;  %704 = vrot.lane.b32.xlu0 %v4676_v2, %s4509_s17 }
  0x3b   : > { %710 = vrot.lane.b32.xlu1 %v4693_v5, %s4509_s17  ;;  %708 = vrot.lane.b32.xlu0 %v4673_v1, %s4509_s17 }
  0x3f   : > { %714 = vrot.lane.b32.xlu1 %v4686_v4, %s4509_s17  ;;  %712 = vrot.lane.b32.xlu0 %v4696_v6, %s4509_s17 }
  0x43   : > { %837 = vrot.lane.b32.xlu1 %v4683_v3, %s4510_s12  ;;  %835 = vrot.lane.b32.xlu0 %v4676_v2, %s4510_s12 }
  0x47   : > { %841 = vrot.lane.b32.xlu1 %v4693_v5, %s4510_s12  ;;  %839 = vrot.lane.b32.xlu0 %v4673_v1, %s4510_s12 }
  0x4b   : > { %845 = vrot.lane.b32.xlu1 %v4686_v4, %s4510_s12  ;;  %843 = vrot.lane.b32.xlu0 %v4696_v6, %s4510_s12 }
  0x4f   : > { %968 = vrot.lane.b32.xlu1 %v4683_v3, %s4511_s26  ;;  %966 = vrot.lane.b32.xlu0 %v4676_v2, %s4511_s26 }
  0x53   : > { %972 = vrot.lane.b32.xlu1 %v4693_v5, %s4511_s26  ;;  %970 = vrot.lane.b32.xlu0 %v4673_v1, %s4511_s26 }
  0x57   : > { %976 = vrot.lane.b32.xlu1 %v4686_v4, %s4511_s26  ;;  %974 = vrot.lane.b32.xlu0 %v4696_v6, %s4511_s26 }
  0x5b   : > { %456 = vrot.lane.b32.xlu1 %v335_v27, %s4507_s23  ;;  %454 = vrot.lane.b32.xlu0 %v4699_v7, %s4507_s23 }
  0x5f   : > { %460 = vrot.lane.b32.xlu1 %v4706_v8, %s4507_s23  ;;  %458 = vrot.lane.b32.xlu0 %v4709_v9, %s4507_s23 }
  0x63   : > { %585 = vrot.lane.b32.xlu1 %v4699_v7, %s4508_s24  ;;  %462 = vrot.lane.b32.xlu0 %v4712_v10, %s4507_s23 }
  0x67   : > { %589 = vrot.lane.b32.xlu1 %v4709_v9, %s4508_s24  ;;  %587 = vrot.lane.b32.xlu0 %v335_v27, %s4508_s24 }
  0x6b   : > { %593 = vrot.lane.b32.xlu1 %v4712_v10, %s4508_s24  ;;  %591 = vrot.lane.b32.xlu0 %v4706_v8, %s4508_s24 }
  0x6f   : > { %718 = vrot.lane.b32.xlu1 %v335_v27, %s4509_s17  ;;  %716 = vrot.lane.b32.xlu0 %v4699_v7, %s4509_s17 }
  0x73   : > { %722 = vrot.lane.b32.xlu1 %v4706_v8, %s4509_s17  ;;  %720 = vrot.lane.b32.xlu0 %v4709_v9, %s4509_s17 }
  0x77   : > { %847 = vrot.lane.b32.xlu1 %v4699_v7, %s4510_s12  ;;  %724 = vrot.lane.b32.xlu0 %v4712_v10, %s4509_s17 }
  0x7b   : > { %851 = vrot.lane.b32.xlu1 %v4709_v9, %s4510_s12  ;;  %849 = vrot.lane.b32.xlu0 %v335_v27, %s4510_s12 }
  0x7f   : > { %855 = vrot.lane.b32.xlu1 %v4712_v10, %s4510_s12  ;;  %853 = vrot.lane.b32.xlu0 %v4706_v8, %s4510_s12 }
  0x83   : > { %980 = vrot.lane.b32.xlu1 %v335_v27, %s4511_s26  ;;  %978 = vrot.lane.b32.xlu0 %v4699_v7, %s4511_s26 }
  0x87   : > { %984 = vrot.lane.b32.xlu1 %v4706_v8, %s4511_s26  ;;  %982 = vrot.lane.b32.xlu0 %v4709_v9, %s4511_s26 }
  0x8b   : > { %464 = vrot.lane.b32.xlu1 %v4910_v32, %s4507_s23  ;;  %986 = vrot.lane.b32.xlu0 %v4712_v10, %s4511_s26 }
  0x8f   : > { %468 = vrot.lane.b32.xlu1 %v4719_v11, %s4507_s23  ;;  %466 = vrot.lane.b32.xlu0 %v4722_v12, %s4507_s23 }
  0x91   : > { %v447_v34 = vpop.permute.xlu1 %446  ;;  %v443_v35 = vpop.permute.xlu0 %442 }
  0x92   : > { %542 = vst.msk [vmem:[#allocation2 + $0xf] sm:$0xff] %vm540_vm2, %v447_v34 }
  0x93   : > { %539 = vst.msk [vmem:[#allocation2 - $0x1] sm:$0xfe] %vm538_vm3, %v443_v35  ;;  %472 = vrot.lane.b32.xlu1 %v4921_v33, %s4507_s23  ;;  %470 = vrot.lane.b32.xlu0 %v4739_v13, %s4507_s23 }
  0x95   : > { %v449_v36 = vpop.permute.xlu1 %448  ;;  %v445_v37 = vpop.permute.xlu0 %444 }
  0x96   : > { %544 = vst.msk [vmem:[#allocation2 + $0x17] sm:$0x1] %vm543_vm4, %v449_v36 }
  0x97   : > { %541 = vst.msk [vmem:[#allocation2 + $0x7] sm:$0xff] %vm540_vm2, %v445_v37  ;;  %597 = vrot.lane.b32.xlu1 %v4722_v12, %s4508_s24  ;;  %595 = vrot.lane.b32.xlu0 %v4910_v32, %s4508_s24 }
  0x99   : > { %v453_v38 = vpop.permute.xlu1 %452  ;;  %v451_v39 = vpop.permute.xlu0 %450 }
  0x9a   : > { %546 = vst.msk [vmem:[#allocation2 + $0x1f] sm:$0xff] %vm540_vm2, %v453_v38 }
  0x9b   : > { %545 = vst.msk [vmem:[#allocation2 + $0x17] sm:$0xfe] %vm538_vm3, %v451_v39  ;;  %601 = vrot.lane.b32.xlu1 %v4739_v13, %s4508_s24  ;;  %599 = vrot.lane.b32.xlu0 %v4719_v11, %s4508_s24 }
  0x9d   : > { %v576_v40 = vpop.permute.xlu1 %575  ;;  %v574_v41 = vpop.permute.xlu0 %573 }
  0x9e   : > { %672 = vst.msk [vmem:[#allocation2 + $0x6] sm:$0xff] %vm671_vm5, %v576_v40 }
  0x9f   : > { %670 = vst.msk [vmem:[#allocation2 - $0x2] sm:$0xfc] %vm669_vm6, %v574_v41  ;;  %726 = vrot.lane.b32.xlu1 %v4910_v32, %s4509_s17  ;;  %603 = vrot.lane.b32.xlu0 %v4921_v33, %s4508_s24 }
  0xa1   : > { %v580_v42 = vpop.permute.xlu1 %579  ;;  %v578_v43 = vpop.permute.xlu0 %577 }
  0xa2   : > { %675 = vst.msk [vmem:[#allocation2 + $0x16] sm:$0x3] %vm7131_vm7, %v580_v42 }
  0xa3   : > { %673 = vst.msk [vmem:[#allocation2 + $0xe] sm:$0xff] %vm671_vm5, %v578_v43  ;;  %730 = vrot.lane.b32.xlu1 %v4719_v11, %s4509_s17  ;;  %728 = vrot.lane.b32.xlu0 %v4722_v12, %s4509_s17 }
  0xa5   : > { %v584_v44 = vpop.permute.xlu1 %583  ;;  %v582_v45 = vpop.permute.xlu0 %581 }
  0xa6   : > { %677 = vst.msk [vmem:[#allocation2 + $0x1e] sm:$0xff] %vm671_vm5, %v584_v44 }
  0xa7   : > { %676 = vst.msk [vmem:[#allocation2 + $0x16] sm:$0xfc] %vm669_vm6, %v582_v45  ;;  %734 = vrot.lane.b32.xlu1 %v4921_v33, %s4509_s17  ;;  %732 = vrot.lane.b32.xlu0 %v4739_v13, %s4509_s17 }
  0xa9   : > { %v707_v46 = vpop.permute.xlu1 %706  ;;  %v705_v47 = vpop.permute.xlu0 %704 }
  0xaa   : > { %803 = vst.msk [vmem:[#allocation2 + $0x5] sm:$0xff] %vm802_vm8, %v707_v46 }
  0xab   : > { %801 = vst.msk [vmem:[#allocation2 - $0x3] sm:$0xf8] %vm800_vm9, %v705_v47  ;;  %859 = vrot.lane.b32.xlu1 %v4722_v12, %s4510_s12  ;;  %857 = vrot.lane.b32.xlu0 %v4910_v32, %s4510_s12 }
  0xad   : > { %v711_v48 = vpop.permute.xlu1 %710  ;;  %v709_v49 = vpop.permute.xlu0 %708 }
  0xae   : > { %806 = vst.msk [vmem:[#allocation2 + $0x15] sm:$0x7] %vm805_vm10, %v711_v48 }
  0xaf   : > { %804 = vst.msk [vmem:[#allocation2 + $0xd] sm:$0xff] %vm802_vm8, %v709_v49  ;;  %863 = vrot.lane.b32.xlu1 %v4739_v13, %s4510_s12  ;;  %861 = vrot.lane.b32.xlu0 %v4719_v11, %s4510_s12 }
  0xb1   : > { %v715_v52 = vpop.permute.xlu1 %714  ;;  %v713_v53 = vpop.permute.xlu0 %712 }
  0xb2   : > { %808 = vst.msk [vmem:[#allocation2 + $0x1d] sm:$0xff] %vm802_vm8, %v715_v52 }
  0xb3   : > { %807 = vst.msk [vmem:[#allocation2 + $0x15] sm:$0xf8] %vm800_vm9, %v713_v53  ;;  %988 = vrot.lane.b32.xlu1 %v4910_v32, %s4511_s26  ;;  %865 = vrot.lane.b32.xlu0 %v4921_v33, %s4510_s12 }
  0xb5   : > { %v838_v55 = vpop.permute.xlu1 %837  ;;  %v836_v56 = vpop.permute.xlu0 %835 }
  0xb6   : > { %934 = vst.msk [vmem:[#allocation2 + $0x4] sm:$0xff] %vm933_vm11, %v838_v55 }
  0xb7   : > { %932 = vst.msk [vmem:[#allocation2 - $0x4] sm:$0xf0] %vm931_vm12, %v836_v56  ;;  %992 = vrot.lane.b32.xlu1 %v4719_v11, %s4511_s26  ;;  %990 = vrot.lane.b32.xlu0 %v4722_v12, %s4511_s26 }
  0xb9   : > { %v842_v57 = vpop.permute.xlu1 %841  ;;  %v840_v58 = vpop.permute.xlu0 %839 }
  0xba   : > { %937 = vst.msk [vmem:[#allocation2 + $0x14] sm:$0xf] %vm936_vm13, %v842_v57 }
  0xbb   : > { %935 = vst.msk [vmem:[#allocation2 + $0xc] sm:$0xff] %vm933_vm11, %v840_v58  ;;  %996 = vrot.lane.b32.xlu1 %v4921_v33, %s4511_s26  ;;  %994 = vrot.lane.b32.xlu0 %v4739_v13, %s4511_s26 }
  0xbd   : > { %v846_v59 = vpop.permute.xlu1 %845  ;;  %v844_v60 = vpop.permute.xlu0 %843 }
  0xbe   : > { %939 = vst.msk [vmem:[#allocation2 + $0x1c] sm:$0xff] %vm933_vm11, %v846_v59 }
  0xbf   : > { %938 = vst.msk [vmem:[#allocation2 + $0x14] sm:$0xf0] %vm931_vm12, %v844_v60  ;;  %476 = vrot.lane.b32.xlu1 %v4777_v17, %s4507_s23  ;;  %474 = vrot.lane.b32.xlu0 %v4780_v18, %s4507_s23 }
  0xc1   : > { %v969_v62 = vpop.permute.xlu1 %968  ;;  %v967_v63 = vpop.permute.xlu0 %966 }
  0xc2   : > { %1065 = vst.msk [vmem:[#allocation2 + $0x3] sm:$0xff] %vm1064_vm14, %v969_v62 }
  0xc3   : > { %1063 = vst.msk [vmem:[#allocation2 - $0x5] sm:$0xe0] %vm1062_vm15, %v967_v63  ;;  %480 = vrot.lane.b32.xlu1 %v5011_v61, %s4507_s23  ;;  %478 = vrot.lane.b32.xlu0 %v4794_v20, %s4507_s23 }
  0xc5   : > { %v973_v5 = vpop.permute.xlu1 %972  ;;  %v971_v14 = vpop.permute.xlu0 %970 }
  0xc6   : > { %1068 = vst.msk [vmem:[#allocation2 + $0x13] sm:$0x1f] %vm1067_vm0, %v973_v5 }
  0xc7   : > { %1066 = vst.msk [vmem:[#allocation2 + $0xb] sm:$0xff] %vm1064_vm14, %v971_v14  ;;  %484 = vrot.lane.b32.xlu1 %v4806_v22, %s4507_s23  ;;  %482 = vrot.lane.b32.xlu0 %v4809_v23, %s4507_s23 }
  0xc9   : > { %v977_v15 = vpop.permute.xlu1 %976  ;;  %v975_v16 = vpop.permute.xlu0 %974 }
  0xca   : > { %1070 = vst.msk [vmem:[#allocation2 + $0x1b] sm:$0xff] %vm1064_vm14, %v977_v15  ;;  %v1783_v24 = vld [vmem:[#allocation2] sm:$0xff] }
  0xcb   : > { %1069 = vst.msk [vmem:[#allocation2 + $0x13] sm:$0xe0] %vm1062_vm15, %v975_v16  ;;  %607 = vrot.lane.b32.xlu1 %v4777_v17, %s4508_s24  ;;  %605 = vrot.lane.b32.xlu0 %v4780_v18, %s4508_s24 }
  0xcd   : > { %v457_v19 = vpop.permute.xlu1 %456  ;;  %v455_v21 = vpop.permute.xlu0 %454 }
  0xce   : > { %v1784_v25 = vld [vmem:[#allocation2 + $0x8] sm:$0xff]  ;;  %548 = vst.msk [vmem:[#allocation2 + $0x2f] sm:$0x1] %vm543_vm4, %v457_v19  ;;  %v1785_v35 = vld [vmem:[#allocation2 + $0x10] sm:$0xff]  ;;  %v5108_v19 = vld [vmem:[%s4670_s22 + $0xb8] sm:$0x1f] }
  0xcf   : > { %547 = vst.msk [vmem:[#allocation2 + $0x27] sm:$0xff] %vm540_vm2, %v455_v21  ;;  %v5033_v26 = vpack.c.bf16 %v1784_v25, %v1783_v24  ;;  %611 = vrot.lane.b32.xlu1 %v5011_v61, %s4508_s24  ;;  %609 = vrot.lane.b32.xlu0 %v4794_v20, %s4508_s24 }
  0xd1   : > { %4003 = vmatprep.mubr.bf16.mxu1 %v5033_v26  ;;  %v1819_v27 = vunpack.c.l.bf16 %v5033_v26  ;;  %v1820_v32 = vunpack.c.h.bf16 %v5033_v26  ;;  %v461_v33 = vpop.permute.xlu1 %460  ;;  %v459_v34 = vpop.permute.xlu0 %458 }
  0xd2   : > { %v1786_v36 = vld [vmem:[#allocation2 + $0x18] sm:$0xff]  ;;  %550 = vst.msk [vmem:[#allocation2 + $0x37] sm:$0xff] %vm540_vm2, %v461_v33 }
  0xd3   : > { %549 = vst.msk [vmem:[#allocation2 + $0x2f] sm:$0xfe] %vm538_vm3, %v459_v34  ;;  %v5044_v37 = vpack.c.bf16 %v1786_v36, %v1785_v35  ;;  %v1843_v38 = vsub.f32 %v1783_v24, %v1819_v27  ;;  %v1844_v39 = vsub.f32 %v1784_v25, %v1820_v32  ;;  %615 = vrot.lane.b32.xlu1 %v4806_v22, %s4508_s24 }
  0xd4   : > { %613 = vrot.lane.b32.xlu0 %v4809_v23, %s4508_s24 }
  0xd5   : > { %4004 = vmatmul.mubr.bf16.vlgmr.msra.gmra.mxu1 %v5044_v37  ;;  %v1867_v40 = vpack.c.bf16 %v1844_v39, %v1843_v38  ;;  %v1821_v41 = vunpack.c.l.bf16 %v5044_v37  ;;  %v1822_v42 = vunpack.c.h.bf16 %v5044_v37  ;;  %v586_v43 = vpop.permute.xlu1 %585  ;;  %v463_v44 = vpop.permute.xlu0 %462 }
  0xd6   : > { %678 = vst.msk [vmem:[#allocation2 + $0x26] sm:$0xff] %vm671_vm5, %v586_v43 }
  0xd7   : > { %551 = vst.msk [vmem:[#allocation2 + $0x3f] sm:$0xff] %vm540_vm2, %v463_v44  ;;  %3963 = vmatprep.mubr.bf16.mxu0 %v1867_v40  ;;  %v1845_v45 = vsub.f32 %v1785_v35, %v1821_v41  ;;  %v1846_v46 = vsub.f32 %v1786_v36, %v1822_v42  ;;  %738 = vrot.lane.b32.xlu1 %v4777_v17, %s4509_s17 }
  0xd8   : > { %736 = vrot.lane.b32.xlu0 %v4780_v18, %s4509_s17 }
  0xd9   : > { %v1868_v47 = vpack.c.bf16 %v1846_v46, %v1845_v45  ;;  %v590_v48 = vpop.permute.xlu1 %589  ;;  %v588_v49 = vpop.permute.xlu0 %587 }
  0xda   : > { %680 = vst.msk [vmem:[#allocation2 + $0x2e] sm:$0xfc] %vm669_vm6, %v590_v48 }
  0xdb   : > { %679 = vst.msk [vmem:[#allocation2 + $0x2e] sm:$0x3] %vm7131_vm7, %v588_v49  ;;  %3964 = vmatmul.mubr.bf16.vlgmr.msra.gmra.mxu0 %v1868_v47  ;;  %742 = vrot.lane.b32.xlu1 %v5011_v61, %s4509_s17 }
  0xdc   : > { %740 = vrot.lane.b32.xlu0 %v4794_v20, %s4509_s17 }
  0xdd   : > { %v594_v52 = vpop.permute.xlu1 %593  ;;  %v592_v53 = vpop.permute.xlu0 %591 }
  0xde   : > { %682 = vst.msk [vmem:[#allocation2 + $0x3e] sm:$0xff] %vm671_vm5, %v594_v52  ;;  %681 = vst.msk [vmem:[#allocation2 + $0x36] sm:$0xff] %vm671_vm5, %v592_v53 }
  0xdf   : > { %746 = vrot.lane.b32.xlu1 %v4806_v22, %s4509_s17 }
  0xe0   : > { %744 = vrot.lane.b32.xlu0 %v4809_v23, %s4509_s17 }
  0xe1   : > { %v719_v55 = vpop.permute.xlu1 %718  ;;  %v717_v56 = vpop.permute.xlu0 %716 }
  0xe2   : > { %810 = vst.msk [vmem:[#allocation2 + $0x2d] sm:$0x7] %vm805_vm10, %v719_v55 }
  0xe3   : > { %809 = vst.msk [vmem:[#allocation2 + $0x25] sm:$0xff] %vm802_vm8, %v717_v56  ;;  %869 = vrot.lane.b32.xlu1 %v4777_v17, %s4510_s12 }
  0xe4   : > { %867 = vrot.lane.b32.xlu0 %v4780_v18, %s4510_s12 }
  0xe5   : > { %v723_v57 = vpop.permute.xlu1 %722  ;;  %v721_v58 = vpop.permute.xlu0 %720 }
  0xe6   : > { %812 = vst.msk [vmem:[#allocation2 + $0x35] sm:$0xff] %vm802_vm8, %v723_v57 }
  0xe7   : > { %811 = vst.msk [vmem:[#allocation2 + $0x2d] sm:$0xf8] %vm800_vm9, %v721_v58  ;;  %873 = vrot.lane.b32.xlu1 %v5011_v61, %s4510_s12 }
  0xe8   : > { %871 = vrot.lane.b32.xlu0 %v4794_v20, %s4510_s12 }
  0xe9   : > { %v848_v59 = vpop.permute.xlu1 %847  ;;  %v725_v60 = vpop.permute.xlu0 %724 }
  0xea   : > { %940 = vst.msk [vmem:[#allocation2 + $0x24] sm:$0xff] %vm933_vm11, %v848_v59 }
  0xeb   : > { %813 = vst.msk [vmem:[#allocation2 + $0x3d] sm:$0xff] %vm802_vm8, %v725_v60  ;;  %877 = vrot.lane.b32.xlu1 %v4806_v22, %s4510_s12 }
  0xec   : > { %875 = vrot.lane.b32.xlu0 %v4809_v23, %s4510_s12 }
  0xed   : > { %v852_v62 = vpop.permute.xlu1 %851  ;;  %v850_v63 = vpop.permute.xlu0 %849 }
  0xee   : > { %942 = vst.msk [vmem:[#allocation2 + $0x2c] sm:$0xf0] %vm931_vm12, %v852_v62 }
  0xef   : > { %941 = vst.msk [vmem:[#allocation2 + $0x2c] sm:$0xf] %vm936_vm13, %v850_v63  ;;  %1000 = vrot.lane.b32.xlu1 %v4777_v17, %s4511_s26 }
  0xf0   : > { %998 = vrot.lane.b32.xlu0 %v4780_v18, %s4511_s26 }
  0xf1   : > { %v856_v5 = vpop.permute.xlu1 %855  ;;  %v854_v14 = vpop.permute.xlu0 %853 }
  0xf2   : > { %944 = vst.msk [vmem:[#allocation2 + $0x3c] sm:$0xff] %vm933_vm11, %v856_v5  ;;  %943 = vst.msk [vmem:[#allocation2 + $0x34] sm:$0xff] %vm933_vm11, %v854_v14 }
  0xf3   : > { %1004 = vrot.lane.b32.xlu1 %v5011_v61, %s4511_s26 }
  0xf4   : > { %1002 = vrot.lane.b32.xlu0 %v4794_v20, %s4511_s26 }
  0xf5   : > { %v981_v15 = vpop.permute.xlu1 %980  ;;  %v979_v16 = vpop.permute.xlu0 %978 }
  0xf6   : > { %1072 = vst.msk [vmem:[#allocation2 + $0x2b] sm:$0x1f] %vm1067_vm0, %v981_v15 }
  0xf7   : > { %1071 = vst.msk [vmem:[#allocation2 + $0x23] sm:$0xff] %vm1064_vm14, %v979_v16  ;;  %1008 = vrot.lane.b32.xlu1 %v4806_v22, %s4511_s26 }
  0xf8   : > { %1006 = vrot.lane.b32.xlu0 %v4809_v23, %s4511_s26 }
  0xf9   : > { %v985_v21 = vpop.permute.xlu1 %984  ;;  %v983_v24 = vpop.permute.xlu0 %982 }
  0xfa   : > { %1074 = vst.msk [vmem:[#allocation2 + $0x33] sm:$0xff] %vm1064_vm14, %v985_v21 }
  0xfb   : > { %1073 = vst.msk [vmem:[#allocation2 + $0x2b] sm:$0xe0] %vm1062_vm15, %v983_v24  ;;  %488 = vrot.lane.b32.xlu1 %v5108_v19, %s4507_s23 }
  0xfc   : > { %486 = vrot.lane.b32.xlu0 %v4876_v28, %s4507_s23 }
  0xfd   : > { %v465_v25 = vpop.permute.xlu1 %464  ;;  %v987_v27 = vpop.permute.xlu0 %986 }
  0xfe   : > { %v1787_v32 = vld [vmem:[#allocation2 + $0x20] sm:$0xff]  ;;  %v1788_v33 = vld [vmem:[#allocation2 + $0x28] sm:$0xff]  ;;  %552 = vst.msk [vmem:[#allocation2 + $0x47] sm:$0x1] %vm543_vm4, %v465_v25 }
  0xff   : > { %1075 = vst.msk [vmem:[#allocation2 + $0x3b] sm:$0xff] %vm1064_vm14, %v987_v27  ;;  %v5118_v34 = vpack.c.bf16 %v1788_v33, %v1787_v32  ;;  %492 = vrot.lane.b32.xlu1 %v4884_v29, %s4507_s23 }
 0x100   : > { %490 = vrot.lane.b32.xlu0 %v4887_v30, %s4507_s23 }
 0x101   : > { %4007 = vmatprep.mubr.bf16.mxu1 %v5118_v34  ;;  %v1823_v35 = vunpack.c.l.bf16 %v5118_v34  ;;  %v1824_v36 = vunpack.c.h.bf16 %v5118_v34  ;;  %v469_v38 = vpop.permute.xlu1 %468  ;;  %v467_v39 = vpop.permute.xlu0 %466 }
 0x102   : > { %554 = vst.msk [vmem:[#allocation2 + $0x4f] sm:$0xff] %vm540_vm2, %v469_v38  ;;  %v1789_v45 = vld [vmem:[#allocation2 + $0x30] sm:$0xff] }
 0x103   : > { %553 = vst.msk [vmem:[#allocation2 + $0x47] sm:$0xfe] %vm538_vm3, %v467_v39  ;;  %v1847_v40 = vsub.f32 %v1787_v32, %v1823_v35  ;;  %v1848_v41 = vsub.f32 %v1788_v33, %v1824_v36  ;;  %617 = vrot.lane.b32.xlu1 %v4876_v28, %s4508_s24  ;;  %v5193_v33 = vld [vmem:[%s4670_s22 + $0xd8] sm:$0x1f] }
 0x104   : > { %494 = vrot.lane.b32.xlu0 %v4898_v31, %s4507_s23 }
 0x105   : > { %v1869_v42 = vpack.c.bf16 %v1848_v41, %v1847_v40  ;;  %v473_v43 = vpop.permute.xlu1 %472  ;;  %v471_v44 = vpop.permute.xlu0 %470  ;;  %v5208_v40 = vld [vmem:[%s4670_s22 + $0xf8] sm:$0x1f] }
 0x106   : > { %v1790_v46 = vld [vmem:[#allocation2 + $0x38] sm:$0xff]  ;;  %556 = vst.msk [vmem:[#allocation2 + $0x5f] sm:$0x1] %vm543_vm4, %v473_v43 }
 0x107   : > { %555 = vst.msk [vmem:[#allocation2 + $0x57] sm:$0xff] %vm540_vm2, %v471_v44  ;;  %3967 = vmatprep.mubr.bf16.mxu0 %v1869_v42  ;;  %v5135_v47 = vpack.c.bf16 %v1790_v46, %v1789_v45  ;;  %621 = vrot.lane.b32.xlu1 %v4887_v30, %s4508_s24 }
 0x108   : > { %619 = vrot.lane.b32.xlu0 %v5108_v19, %s4508_s24 }
 0x109   : > { %4008 = vmatmul.mubr.bf16.gmra.mxu1 %v5135_v47  ;;  %v1825_v48 = vunpack.c.l.bf16 %v5135_v47  ;;  %v1826_v49 = vunpack.c.h.bf16 %v5135_v47  ;;  %v598_v52 = vpop.permute.xlu1 %597  ;;  %v596_v53 = vpop.permute.xlu0 %595 }
 0x10a   : > { %684 = vst.msk [vmem:[#allocation2 + $0x46] sm:$0xfc] %vm669_vm6, %v598_v52 }
 0x10b   : > { %683 = vst.msk [vmem:[#allocation2 + $0x46] sm:$0x3] %vm7131_vm7, %v596_v53  ;;  %v1849_v55 = vsub.f32 %v1789_v45, %v1825_v48  ;;  %v1850_v56 = vsub.f32 %v1790_v46, %v1826_v49  ;;  %625 = vrot.lane.b32.xlu1 %v4898_v31, %s4508_s24  ;;  %v4360_v46 = vld [vmem:[%s7124_s2 + $0x38] sm:$0xff]  }
 0x10c   : > { %623 = vrot.lane.b32.xlu0 %v4884_v29, %s4508_s24  ;;  %4027 = vmatprep.subr.bf16.mxu0 %v4360_v46 }
 0x10d   : > { %v1870_v57 = vpack.c.bf16 %v1850_v56, %v1849_v55  ;;  %v602_v58 = vpop.permute.xlu1 %601  ;;  %v600_v59 = vpop.permute.xlu0 %599  ;;  %4028 = vmatpush3.bf16.msra.mxu0 %v4360_v46 }
 0x10e   : > { %686 = vst.msk [vmem:[#allocation2 + $0x56] sm:$0xff] %vm671_vm5, %v602_v58  ;;  %685 = vst.msk [vmem:[#allocation2 + $0x4e] sm:$0xff] %vm671_vm5, %v600_v59 }
 0x10f   : > { %3968 = vmatmul.mubr.bf16.gmra.mxu0 %v1870_v57  ;;  %750 = vrot.lane.b32.xlu1 %v5108_v19, %s4509_s17 }
 0x110   : > { %748 = vrot.lane.b32.xlu0 %v4876_v28, %s4509_s17 }
 0x111   : > { %v727_v60 = vpop.permute.xlu1 %726  ;;  %v604_v62 = vpop.permute.xlu0 %603 }
 0x112   : > { %814 = vst.msk [vmem:[#allocation2 + $0x45] sm:$0x7] %vm805_vm10, %v727_v60 }
 0x113   : > { %687 = vst.msk [vmem:[#allocation2 + $0x5e] sm:$0x3] %vm7131_vm7, %v604_v62  ;;  %754 = vrot.lane.b32.xlu1 %v4884_v29, %s4509_s17 }
 0x114   : > { %752 = vrot.lane.b32.xlu0 %v4887_v30, %s4509_s17 }
 0x115   : > { %v731_v63 = vpop.permute.xlu1 %730  ;;  %v729_v5 = vpop.permute.xlu0 %728 }
 0x116   : > { %816 = vst.msk [vmem:[#allocation2 + $0x4d] sm:$0xff] %vm802_vm8, %v731_v63 }
 0x117   : > { %815 = vst.msk [vmem:[#allocation2 + $0x45] sm:$0xf8] %vm800_vm9, %v729_v5  ;;  %879 = vrot.lane.b32.xlu1 %v4876_v28, %s4510_s12 }
 0x118   : > { %756 = vrot.lane.b32.xlu0 %v4898_v31, %s4509_s17 }
 0x119   : > { %v735_v14 = vpop.permute.xlu1 %734  ;;  %v733_v15 = vpop.permute.xlu0 %732 }
 0x11a   : > { %818 = vst.msk [vmem:[#allocation2 + $0x5d] sm:$0x7] %vm805_vm10, %v735_v14 }
 0x11b   : > { %817 = vst.msk [vmem:[#allocation2 + $0x55] sm:$0xff] %vm802_vm8, %v733_v15  ;;  %883 = vrot.lane.b32.xlu1 %v4887_v30, %s4510_s12 }
 0x11c   : > { %881 = vrot.lane.b32.xlu0 %v5108_v19, %s4510_s12 }
 0x11d   : > { %v860_v16 = vpop.permute.xlu1 %859  ;;  %v858_v21 = vpop.permute.xlu0 %857 }
 0x11e   : > { %946 = vst.msk [vmem:[#allocation2 + $0x44] sm:$0xf0] %vm931_vm12, %v860_v16 }
 0x11f   : > { %945 = vst.msk [vmem:[#allocation2 + $0x44] sm:$0xf] %vm936_vm13, %v858_v21  ;;  %887 = vrot.lane.b32.xlu1 %v4898_v31, %s4510_s12  ;;  %v4361_v21 = vld [vmem:[%s7124_s2 + $0x30] sm:$0xff]  }
 0x120   : > { %885 = vrot.lane.b32.xlu0 %v4884_v29, %s4510_s12  ;;  %4029 = vmatprep.subr.bf16.mxu0 %v4361_v21 }
 0x121   : > { %v864_v24 = vpop.permute.xlu1 %863  ;;  %v862_v25 = vpop.permute.xlu0 %861  ;;  %4030 = vmatpush3.bf16.msra.mxu0 %v4361_v21 }
 0x122   : > { %948 = vst.msk [vmem:[#allocation2 + $0x54] sm:$0xff] %vm933_vm11, %v864_v24  ;;  %947 = vst.msk [vmem:[#allocation2 + $0x4c] sm:$0xff] %vm933_vm11, %v862_v25 }
 0x123   : > { %1012 = vrot.lane.b32.xlu1 %v5108_v19, %s4511_s26 }
 0x124   : > { %1010 = vrot.lane.b32.xlu0 %v4876_v28, %s4511_s26 }
 0x125   : > { %v989_v27 = vpop.permute.xlu1 %988  ;;  %v866_v32 = vpop.permute.xlu0 %865 }
 0x126   : > { %1076 = vst.msk [vmem:[#allocation2 + $0x43] sm:$0x1f] %vm1067_vm0, %v989_v27 }
 0x127   : > { %949 = vst.msk [vmem:[#allocation2 + $0x5c] sm:$0xf] %vm936_vm13, %v866_v32  ;;  %1016 = vrot.lane.b32.xlu1 %v4884_v29, %s4511_s26 }
 0x128   : > { %1014 = vrot.lane.b32.xlu0 %v4887_v30, %s4511_s26 }
 0x129   : > { %v993_v35 = vpop.permute.xlu1 %992  ;;  %v991_v36 = vpop.permute.xlu0 %990 }
 0x12a   : > { %1078 = vst.msk [vmem:[#allocation2 + $0x4b] sm:$0xff] %vm1064_vm14, %v993_v35 }
 0x12b   : > { %1077 = vst.msk [vmem:[#allocation2 + $0x43] sm:$0xe0] %vm1062_vm15, %v991_v36  ;;  %496 = vrot.lane.b32.xlu1 %v5193_v33, %s4507_s23  ;;  %v4362_v36 = vld [vmem:[%s7124_s2 + $0x28] sm:$0xff]  }
 0x12c   : > { %1018 = vrot.lane.b32.xlu0 %v4898_v31, %s4511_s26  ;;  %4031 = vmatprep.subr.bf16.mxu0 %v4362_v36 }
 0x12d   : > { %v997_v38 = vpop.permute.xlu1 %996  ;;  %v995_v39 = vpop.permute.xlu0 %994  ;;  %v1791_v43 = vld [vmem:[#allocation2 + $0x40] sm:$0xff]  ;;  %4032 = vmatpush3.bf16.msra.mxu0 %v4362_v36 }
 0x12e   : > { %1080 = vst.msk [vmem:[#allocation2 + $0x5b] sm:$0x1f] %vm1067_vm0, %v997_v38 }
 0x12f   : > { %1079 = vst.msk [vmem:[#allocation2 + $0x53] sm:$0xff] %vm1064_vm14, %v995_v39  ;;  %500 = vrot.lane.b32.xlu1 %v4968_v50, %s4507_s23 }
 0x130   : > { %498 = vrot.lane.b32.xlu0 %v4971_v51, %s4507_s23 }
 0x131   : > { %v477_v41 = vpop.permute.xlu1 %476  ;;  %v475_v42 = vpop.permute.xlu0 %474 }
 0x132   : > { %v1792_v44 = vld [vmem:[#allocation2 + $0x48] sm:$0xff]  ;;  %558 = vst.msk [vmem:[#allocation2 + $0x67] sm:$0xff] %vm540_vm2, %v477_v41  ;;  %v4363_v41 = vld [vmem:[%s7124_s2 + $0x20] sm:$0xff]  }
 0x133   : > { %557 = vst.msk [vmem:[#allocation2 + $0x5f] sm:$0xfe] %vm538_vm3, %v475_v42  ;;  %v5212_v45 = vpack.c.bf16 %v1792_v44, %v1791_v43  ;;  %504 = vrot.lane.b32.xlu1 %v5208_v40, %s4507_s23  ;;  %4033 = vmatprep.subr.bf16.mxu0 %v4363_v41 }
 0x134   : > { %502 = vrot.lane.b32.xlu0 %v4984_v54, %s4507_s23  ;;  %4034 = vmatpush3.bf16.msra.mxu0 %v4363_v41 }
 0x135   : > { %4011 = vmatprep.mubr.bf16.mxu1 %v5212_v45  ;;  %v1827_v48 = vunpack.c.l.bf16 %v5212_v45  ;;  %v1828_v49 = vunpack.c.h.bf16 %v5212_v45  ;;  %v481_v52 = vpop.permute.xlu1 %480  ;;  %v479_v53 = vpop.permute.xlu0 %478 }
 0x136   : > { %v1793_v55 = vld [vmem:[#allocation2 + $0x50] sm:$0xff]  ;;  %v1794_v56 = vld [vmem:[#allocation2 + $0x58] sm:$0xff]  ;;  %560 = vst.msk [vmem:[#allocation2 + $0x77] sm:$0x1] %vm543_vm4, %v481_v52 }
 0x137   : > { %559 = vst.msk [vmem:[#allocation2 + $0x6f] sm:$0xff] %vm540_vm2, %v479_v53  ;;  %v5226_v57 = vpack.c.bf16 %v1794_v56, %v1793_v55  ;;  %v1851_v58 = vsub.f32 %v1791_v43, %v1827_v48  ;;  %v1852_v59 = vsub.f32 %v1792_v44, %v1828_v49  ;;  %629 = vrot.lane.b32.xlu1 %v4971_v51, %s4508_s24  ;;  %v4364_v48 = vld [vmem:[%s7124_s2 + $0x18] sm:$0xff]   ;;  %v4365_v53 = vld [vmem:[%s7124_s2 + $0x10] sm:$0xff]  }
 0x138   : > { %627 = vrot.lane.b32.xlu0 %v5193_v33, %s4508_s24  ;;  %4035 = vmatprep.subr.bf16.mxu0 %v4364_v48 }
 0x139   : > { %4012 = vmatmul.mubr.bf16.gmra.mxu1 %v5226_v57  ;;  %v1871_v60 = vpack.c.bf16 %v1852_v59, %v1851_v58  ;;  %v1829_v62 = vunpack.c.l.bf16 %v5226_v57  ;;  %v1830_v63 = vunpack.c.h.bf16 %v5226_v57  ;;  %v485_v5 = vpop.permute.xlu1 %484  ;;  %v483_v14 = vpop.permute.xlu0 %482  ;;  %4036 = vmatpush3.bf16.msra.mxu0 %v4364_v48  ;;  %v4366_v58 = vld [vmem:[%s7124_s2 + $0x8] sm:$0xff]  }
 0x13a   : > { %562 = vst.msk [vmem:[#allocation2 + $0x7f] sm:$0xff] %vm540_vm2, %v485_v5  ;;  %4037 = vmatprep.subr.bf16.mxu0 %v4365_v53  ;;  %v4367_v5 = vld [vmem:[%s7124_s2] sm:$0xff]  }
 0x13b   : > { %561 = vst.msk [vmem:[#allocation2 + $0x77] sm:$0xfe] %vm538_vm3, %v483_v14  ;;  %3971 = vmatprep.mubr.bf16.mxu0 %v1871_v60  ;;  %v1853_v15 = vsub.f32 %v1793_v55, %v1829_v62  ;;  %v1854_v16 = vsub.f32 %v1794_v56, %v1830_v63  ;;  %633 = vrot.lane.b32.xlu1 %v4984_v54, %s4508_s24 }
 0x13c   : > { %631 = vrot.lane.b32.xlu0 %v4968_v50, %s4508_s24 }
 0x13d   : > { %v1872_v24 = vpack.c.bf16 %v1854_v16, %v1853_v15  ;;  %v608_v25 = vpop.permute.xlu1 %607  ;;  %v606_v27 = vpop.permute.xlu0 %605  ;;  %4038 = vmatpush3.bf16.msra.mxu0 %v4365_v53  ;;  %v1097_v53 = vmul.f32 %v4676_v2, %v4676_v2  ;;  %v1099_v2 = vmul.f32 %v4673_v1, %v4673_v1 }
 0x13e   : > { %689 = vst.msk [vmem:[#allocation2 + $0x66] sm:$0xff] %vm671_vm5, %v608_v25  ;;  %4039 = vmatprep.subr.bf16.mxu0 %v4366_v58 }
 0x13f   : > { %688 = vst.msk [vmem:[#allocation2 + $0x5e] sm:$0xfc] %vm669_vm6, %v606_v27  ;;  %3972 = vmatmul.mubr.bf16.gmra.mxu0 %v1872_v24  ;;  %758 = vrot.lane.b32.xlu1 %v5193_v33, %s4509_s17 }
 0x140   : > { %635 = vrot.lane.b32.xlu0 %v5208_v40, %s4508_s24  ;;  %s3583_s24 = sand.u32 1, %s4583_s9   ;;  %s4394_s9 = scalar_lea.vmem %s4393_s20, 256 }
 0x141   : > { %v612_v32 = vpop.permute.xlu1 %611  ;;  %v610_v35 = vpop.permute.xlu0 %609  ;;  %4040 = vmatpush3.bf16.msra.mxu0 %v4366_v58  ;;  %s7041_s19 = scalar_lea.sflag [#allocation6], %s3583_s24 }
 0x142   : > { %691 = vst.msk [vmem:[#allocation2 + $0x76] sm:$0x3] %vm7131_vm7, %v612_v32  ;;  %4041 = vmatprep.subr.bf16.mxu0 %v4367_v5 }
 0x143   : > { %690 = vst.msk [vmem:[#allocation2 + $0x6e] sm:$0xff] %vm671_vm5, %v610_v35  ;;  %762 = vrot.lane.b32.xlu1 %v4968_v50, %s4509_s17 }
 0x144   : > { %760 = vrot.lane.b32.xlu0 %v4971_v51, %s4509_s17 }
 0x145   : > { %v616_v38 = vpop.permute.xlu1 %615  ;;  %4042 = vmatpush3.bf16.msra.mxu0 %v4367_v5  ;;  %v1129_v5 = vsel %vm385_vm1, %v1097_v53, 0.0 }
 0x146   : > { %v614_v39 = vpop.permute.xlu0 %613  ;;  %693 = vst.msk [vmem:[#allocation2 + $0x7e] sm:$0xff] %vm671_vm5, %v616_v38  ;;  %4137 = vmatprep.subr.mxu0 %v7132_v0 }
 0x147   : > { %692 = vst.msk [vmem:[#allocation2 + $0x76] sm:$0xfc] %vm669_vm6, %v614_v39  ;;  %766 = vrot.lane.b32.xlu1 %v5208_v40, %s4509_s17 }
 0x148   : > { %764 = vrot.lane.b32.xlu0 %v4984_v54, %s4509_s17 }
 0x149   : > { %v739_v42 = vpop.permute.xlu1 %738 }
 0x14a   : > { %v737_v43 = vpop.permute.xlu0 %736  ;;  %820 = vst.msk [vmem:[#allocation2 + $0x65] sm:$0xff] %vm802_vm8, %v739_v42 }
 0x14b   : > { %819 = vst.msk [vmem:[#allocation2 + $0x5d] sm:$0xf8] %vm800_vm9, %v737_v43  ;;  %891 = vrot.lane.b32.xlu1 %v4971_v51, %s4510_s12 }
 0x14c   : > { %889 = vrot.lane.b32.xlu0 %v5193_v33, %s4510_s12 }
 0x14d   : > { %v743_v44 = vpop.permute.xlu1 %742 }
 0x14e   : > { %v741_v46 = vpop.permute.xlu0 %740  ;;  %822 = vst.msk [vmem:[#allocation2 + $0x75] sm:$0x7] %vm805_vm10, %v743_v44 }
 0x14f   : > { %821 = vst.msk [vmem:[#allocation2 + $0x6d] sm:$0xff] %vm802_vm8, %v741_v46  ;;  %895 = vrot.lane.b32.xlu1 %v4984_v54, %s4510_s12 }
 0x150   : > { %893 = vrot.lane.b32.xlu0 %v4968_v50, %s4510_s12 }
 0x151   : > { %v747_v49 = vpop.permute.xlu1 %746 }
 0x152   : > { %v745_v52 = vpop.permute.xlu0 %744  ;;  %824 = vst.msk [vmem:[#allocation2 + $0x7d] sm:$0xff] %vm802_vm8, %v747_v49 }
 0x153   : > { %823 = vst.msk [vmem:[#allocation2 + $0x75] sm:$0xf8] %vm800_vm9, %v745_v52  ;;  %1020 = vrot.lane.b32.xlu1 %v5193_v33, %s4511_s26 }
 0x154   : > { %897 = vrot.lane.b32.xlu0 %v5208_v40, %s4510_s12 }
 0x155   : > { %v870_v55 = vpop.permute.xlu1 %869 }
 0x156   : > { %v868_v56 = vpop.permute.xlu0 %867  ;;  %951 = vst.msk [vmem:[#allocation2 + $0x64] sm:$0xff] %vm933_vm11, %v870_v55 }
 0x157   : > { %950 = vst.msk [vmem:[#allocation2 + $0x5c] sm:$0xf0] %vm931_vm12, %v868_v56  ;;  %1024 = vrot.lane.b32.xlu1 %v4968_v50, %s4511_s26 }
 0x158   : > { %1022 = vrot.lane.b32.xlu0 %v4971_v51, %s4511_s26 }
 0x159   : > { %v874_v59 = vpop.permute.xlu1 %873 }
 0x15a   : > { %v872_v60 = vpop.permute.xlu0 %871  ;;  %953 = vst.msk [vmem:[#allocation2 + $0x74] sm:$0xf] %vm936_vm13, %v874_v59 }
 0x15b   : > { %952 = vst.msk [vmem:[#allocation2 + $0x6c] sm:$0xff] %vm933_vm11, %v872_v60  ;;  %1028 = vrot.lane.b32.xlu1 %v5208_v40, %s4511_s26 }
 0x15c   : > { %1026 = vrot.lane.b32.xlu0 %v4984_v54, %s4511_s26  ;;  %s7188_s26 = scalar_lea.vmem [#allocation7], %s6857_s21 }
 0x15d   : > { %v878_v62 = vpop.permute.xlu1 %877 }
 0x15e   : > { %v876_v63 = vpop.permute.xlu0 %875  ;;  %955 = vst.msk [vmem:[#allocation2 + $0x7c] sm:$0xff] %vm933_vm11, %v878_v62 }
 0x15f   : > { %954 = vst.msk [vmem:[#allocation2 + $0x74] sm:$0xf0] %vm931_vm12, %v876_v63 }
 0x161   : > { %v1001_v14 = vpop.permute.xlu1 %1000 }
 0x162   : > { %v999_v15 = vpop.permute.xlu0 %998  ;;  %1082 = vst.msk [vmem:[#allocation2 + $0x63] sm:$0xff] %vm1064_vm14, %v1001_v14 }
 0x163   : > { %1081 = vst.msk [vmem:[#allocation2 + $0x5b] sm:$0xe0] %vm1062_vm15, %v999_v15  ;;  %v1098_v15 = vmul.f32 %v4683_v3, %v4683_v3 }
 0x165   : > { %v1005_v16 = vpop.permute.xlu1 %1004  ;;  %v1132_v1 = vsel %vm385_vm1, %v1098_v15, 0.0 }
 0x166   : > { %v1003_v21 = vpop.permute.xlu0 %1002  ;;  %1084 = vst.msk [vmem:[#allocation2 + $0x73] sm:$0x1f] %vm1067_vm0, %v1005_v16 }
 0x167   : > { %1083 = vst.msk [vmem:[#allocation2 + $0x6b] sm:$0xff] %vm1064_vm14, %v1003_v21 }
 0x169   : > { %v1009_v24 = vpop.permute.xlu1 %1008 }
 0x16a   : > { %v1007_v25 = vpop.permute.xlu0 %1006  ;;  %1086 = vst.msk [vmem:[#allocation2 + $0x7b] sm:$0xff] %vm1064_vm14, %v1009_v24  ;;  %v1795_v35 = vld [vmem:[#allocation2 + $0x60] sm:$0xff]  ;;  %v1135_v24 = vsel %vm385_vm1, %v1099_v2, 0.0 }
 0x16b   : > { %1085 = vst.msk [vmem:[#allocation2 + $0x73] sm:$0xe0] %vm1062_vm15, %v1007_v25  ;;  %v1101_v25 = vmul.f32 %v4696_v6, %v4696_v6 }
 0x16d   : > { %v489_v27 = vpop.permute.xlu1 %488 }
 0x16e   : > { %v487_v32 = vpop.permute.xlu0 %486  ;;  %v1796_v36 = vld [vmem:[#allocation2 + $0x68] sm:$0xff]  ;;  %564 = vst.msk [vmem:[#allocation2 + $0x8f] sm:$0x1] %vm543_vm4, %v489_v27  ;;  %v1797_v44 = vld [vmem:[#allocation2 + $0x70] sm:$0xff]  ;;  %v1102_v27 = vmul.f32 %v4686_v4, %v4686_v4 }
 0x16f   : > { %563 = vst.msk [vmem:[#allocation2 + $0x87] sm:$0xff] %vm540_vm2, %v487_v32  ;;  %v5321_v38 = vpack.c.bf16 %v1796_v36, %v1795_v35 }
 0x170   : > { %v1145_v6 = vsel %vm385_vm1, %v1102_v27, 0.0  ;;  %v4387_v27 = vld [vmem:[%s4670_s22 + $0x78] sm:$0x1f] }
 0x171   : > { %4015 = vmatprep.mubr.bf16.mxu1 %v5321_v38  ;;  %v1831_v39 = vunpack.c.l.bf16 %v5321_v38  ;;  %v1832_v41 = vunpack.c.h.bf16 %v5321_v38  ;;  %v493_v42 = vpop.permute.xlu1 %492 }
 0x172   : > { %v491_v43 = vpop.permute.xlu0 %490  ;;  %v1798_v46 = vld [vmem:[#allocation2 + $0x78] sm:$0xff]  ;;  %566 = vst.msk [vmem:[#allocation2 + $0x97] sm:$0xff] %vm540_vm2, %v493_v42 }
 0x173   : > { %565 = vst.msk [vmem:[#allocation2 + $0x8f] sm:$0xfe] %vm538_vm3, %v491_v43  ;;  %v5328_v48 = vpack.c.bf16 %v1798_v46, %v1797_v44  ;;  %v1855_v49 = vsub.f32 %v1795_v35, %v1831_v39  ;;  %v1856_v52 = vsub.f32 %v1796_v36, %v1832_v41  ;;  %v1142_v35 = vsel %vm385_vm1, %v1101_v25, 0.0  ;;  %v4384_v39 = vld [vmem:[%s4670_s22 + $0x18] sm:$0x1f] }
 0x174   : > { %v1103_v36 = vmul.f32 %v4699_v7, %v4699_v7  ;;  %v1100_v41 = vmul.f32 %v4384_v39, %v4384_v39  ;;  %v1105_v7 = vmul.f32 %v4709_v9, %v4709_v9  ;;  %v1114_v39 = vmul.f32 %v4777_v17, %v4777_v17 }
 0x175   : > { %4016 = vmatmul.mubr.bf16.gmra.mxu1 %v5328_v48  ;;  %v1873_v55 = vpack.c.bf16 %v1856_v52, %v1855_v49  ;;  %v1833_v56 = vunpack.c.l.bf16 %v5328_v48  ;;  %v1834_v58 = vunpack.c.h.bf16 %v5328_v48  ;;  %v618_v59 = vpop.permute.xlu1 %617 }
 0x176   : > { %v495_v60 = vpop.permute.xlu0 %494  ;;  %694 = vst.msk [vmem:[#allocation2 + $0x86] sm:$0xff] %vm671_vm5, %v618_v59  ;;  %v1148_v43 = vsel %vm385_vm1, %v1103_v36, 0.0  ;;  %v1107_v59 = vmul.f32 %v4712_v10, %v4712_v10 }
 0x177   : > { %567 = vst.msk [vmem:[#allocation2 + $0x9f] sm:$0xff] %vm540_vm2, %v495_v60  ;;  %3975 = vmatprep.mubr.bf16.mxu0 %v1873_v55  ;;  %v1857_v62 = vsub.f32 %v1797_v44, %v1833_v56  ;;  %v1858_v63 = vsub.f32 %v1798_v46, %v1834_v58  ;;  %v4385_v44 = vld [vmem:[%s4670_s22 + $0x38] sm:$0x1f]  ;;  %v1106_v56 = vmul.f32 %v4706_v8, %v4706_v8  ;;  %v1154_v58 = vsel %vm385_vm1, %v1105_v7, 0.0 }
 0x178   : > { %v1104_v46 = vmul.f32 %v4385_v44, %v4385_v44  ;;  %v1160_v2 = vsel %vm385_vm1, %v1107_v59, 0.0  ;;  %v1109_v8 = vmul.f32 %v4722_v12, %v4722_v12  ;;  %v1116_v44 = vmul.f32 %v5011_v61, %v5011_v61 }
 0x179   : > { %v1874_v14 = vpack.c.bf16 %v1858_v63, %v1857_v62  ;;  %v622_v16 = vpop.permute.xlu1 %621  ;;  %v1157_v62 = vsel %vm385_vm1, %v1106_v56, 0.0  ;;  %v4386_v63 = vld [vmem:[%s4670_s22 + $0x58] sm:$0x1f]  ;;  %v1118_v61 = vmul.f32 %v4806_v22, %v4806_v22  ;;  %v1119_v59 = vmul.f32 %v4876_v28, %v4876_v28  ;;  %s312_s22 = scalar_lea.vmem [#allocation5], %s6857_s21 }
 0x17a   : > { %v620_v21 = vpop.permute.xlu0 %619  ;;  %696 = vst.msk [vmem:[#allocation2 + $0x8e] sm:$0xfc] %vm669_vm6, %v622_v16  ;;  %v1110_v16 = vmul.f32 %v4719_v11, %v4719_v11  ;;  %v1113_v11 = vmul.f32 %v4780_v18, %v4780_v18  ;;  %v1115_v18 = vmul.f32 %v4794_v20, %v4794_v20  ;;  %v1121_v28 = vmul.f32 %v4887_v30, %v4887_v30  ;;  %s3615_s23 = sshll.u32 %s312_s22, 4  ;;  %s3616_s23 = int_to_ptr.vmem [resolvable:$true] %s3615_s23 }
 0x17b   : > { %695 = vst.msk [vmem:[#allocation2 + $0x8e] sm:$0x3] %vm7131_vm7, %v620_v21  ;;  %1130 = vadd.xlane.f32.xlu0 %v1129_v5  ;;  %3976 = vmatmul.mubr.bf16.gmra.mxu0 %v1874_v14  ;;  %vm1138_vm7 = vcmask 28672   ;;  %v1108_v5 = vmul.f32 %v4386_v63, %v4386_v63  ;;  %v1166_v21 = vsel %vm385_vm1, %v1109_v8, 0.0  ;;  %v1193_v63 = vsel %vm385_vm1, %v1118_v61, 0.0  ;;  %s4388_s12 = scalar_lea.vmem %s3616_s23, 128  ;;  %p4395_p0 = scmp.lt.s32.totalorder %s3616_s23, %s4393_s20 }
 0x17c   : > { %v1139_v49 = vsel %vm1138_vm7, %v1100_v41, 0.0  ;;  %v1151_v55 = vsel %vm1138_vm7, %v1104_v46, 0.0  ;;  %v1178_v41 = vsel %vm385_vm1, %v1113_v11, 0.0  ;;  %v1184_v17 = vsel %vm385_vm1, %v1115_v18, 0.0  ;;  %p4389_p11 = scmp.ne.s32.totalorder %s3616_s23, %s4388_s12  ;;  %p4396_p1 = scmp.lt.s32.totalorder %s4394_s9, %s4388_s12 }
 0x17d   : > { %v626_v3 = vpop.permute.xlu1 %625  ;;  %v1163_v10 = vsel %vm1138_vm7, %v1108_v5, 0.0  ;;  %v1117_v46 = vmul.f32 %v4809_v23, %v4809_v23  ;;  %v1120_v5 = vmul.f32 %v5108_v19, %v5108_v19  ;;  %v1196_v8 = vsel %vm385_vm1, %v1119_v59, 0.0 }
 0x17e   : > { %v624_v32 = vpop.permute.xlu0 %623  ;;  %698 = vst.msk [vmem:[#allocation2 + $0x9e] sm:$0xff] %vm671_vm5, %v626_v3  ;;  %v1112_v3 = vmul.f32 %v4387_v27, %v4387_v27  ;;  %v1202_v30 = vsel %vm385_vm1, %v1121_v28, 0.0  ;;  %p4390_p12 = pnand %p4389_p11, %p4602_p5  ;;  %p4397_p2 = por %p4396_p1, %p4395_p0 }
 0x17f   : > { %697 = vst.msk [vmem:[#allocation2 + $0x96] sm:$0xff] %vm671_vm5, %v624_v32  ;;  %1136 = vadd.xlane.f32.xlu0 %v1135_v24  ;;  %1133 = vadd.xlane.f32.xlu1 %v1132_v1  ;;  %v1111_v24 = vmul.f32 %v4739_v13, %v4739_v13  ;;  %v1169_v1 = vsel %vm385_vm1, %v1110_v16, 0.0  ;;  %v4512_v13 = vmov 0   ;;  %v1190_v23 = vsel %vm385_vm1, %v1117_v46, 0.0 }
 0x180   : > { %4350 = vset.pattern.permute.xlu1 %v4512_v13  ;;  %4351 = vset.pattern.permute.xlu0 %v4512_v13  ;;  %v1199_v19 = vsel %vm1138_vm7, %v1120_v5, 0.0  ;;  %p4391_p13 = pneg %p4390_p12 }
 0x181   : > { %v751_v42 = vpop.permute.xlu1 %750  ;;  %v1172_v32 = vsel %vm385_vm1, %v1111_v24, 0.0  ;;  %v1122_v24 = vmul.f32 %v4884_v29, %v4884_v29 }
 0x182   : > { %v749_v4 = vpop.permute.xlu0 %748  ;;  %826 = vst.msk [vmem:[#allocation2 + $0x8d] sm:$0x7] %vm805_vm10, %v751_v42  ;;  %p4398_p3 = pnand %p4397_p2, %p4391_p13 }
 0x183   : > { %825 = vst.msk [vmem:[#allocation2 + $0x85] sm:$0xff] %vm802_vm8, %v749_v4  ;;  %1143 = vadd.xlane.f32.xlu0 %v1142_v35  ;;  %1146 = vadd.xlane.f32.xlu1 %v1145_v6  ;;  %v1175_v6 = vsel %vm1138_vm7, %v1112_v3, 0.0  ;;  %v1205_v11 = vsel %vm385_vm1, %v1122_v24, 0.0 }
 0x185   : > { %v755_v52 = vpop.permute.xlu1 %754 }
 0x186   : > { %v753_v53 = vpop.permute.xlu0 %752  ;;  %828 = vst.msk [vmem:[#allocation2 + $0x95] sm:$0xff] %vm802_vm8, %v755_v52 }
 0x187   : > { %827 = vst.msk [vmem:[#allocation2 + $0x8d] sm:$0xf8] %vm800_vm9, %v753_v53  ;;  %1149 = vadd.xlane.f32.xlu0 %v1148_v43  ;;  %1140 = vadd.xlane.f32.xlu1 %v1139_v49  ;;  %v1181_v43 = vsel %vm385_vm1, %v1114_v39, 0.0 }
 0x189   : > { %v880_v9 = vpop.permute.xlu1 %879 }
 0x18a   : > { %v757_v60 = vpop.permute.xlu0 %756  ;;  %956 = vst.msk [vmem:[#allocation2 + $0x84] sm:$0xff] %vm933_vm11, %v880_v9 }
 0x18b   : > { %829 = vst.msk [vmem:[#allocation2 + $0x9d] sm:$0xff] %vm802_vm8, %v757_v60  ;;  %1152 = vadd.xlane.f32.xlu0 %v1151_v55  ;;  %1155 = vadd.xlane.f32.xlu1 %v1154_v58  ;;  %v1187_v55 = vsel %vm1138_vm7, %v1116_v44, 0.0  ;;  %v1128_v44 = vmul.f32 %v5208_v40, %v5208_v40 }
 0x18d   : > { %v884_v14 = vpop.permute.xlu1 %883 }
 0x18e   : > { %v882_v15 = vpop.permute.xlu0 %881  ;;  %958 = vst.msk [vmem:[#allocation2 + $0x8c] sm:$0xf0] %vm931_vm12, %v884_v14 }
 0x18f   : > { %957 = vst.msk [vmem:[#allocation2 + $0x8c] sm:$0xf] %vm936_vm13, %v882_v15  ;;  %1158 = vadd.xlane.f32.xlu0 %v1157_v62  ;;  %1161 = vadd.xlane.f32.xlu1 %v1160_v2 }
 0x191   : > { %v888_v12 = vpop.permute.xlu1 %887 }
 0x192   : > { %v886_v25 = vpop.permute.xlu0 %885  ;;  %960 = vst.msk [vmem:[#allocation2 + $0x9c] sm:$0xff] %vm933_vm11, %v888_v12 }
 0x193   : > { %959 = vst.msk [vmem:[#allocation2 + $0x94] sm:$0xff] %vm933_vm11, %v886_v25  ;;  %1164 = vadd.xlane.f32.xlu0 %v1163_v10  ;;  %1167 = vadd.xlane.f32.xlu1 %v1166_v21 }
 0x195   : > { %v1013_v35 = vpop.permute.xlu1 %1012 }
 0x196   : > { %v1011_v36 = vpop.permute.xlu0 %1010  ;;  %1088 = vst.msk [vmem:[#allocation2 + $0x8b] sm:$0x1f] %vm1067_vm0, %v1013_v35  ;;  %v1124_v35 = vmul.f32 %v5193_v33, %v5193_v33  ;;  %v1126_v33 = vmul.f32 %v4968_v50, %v4968_v50 }
 0x197   : > { %1087 = vst.msk [vmem:[#allocation2 + $0x83] sm:$0xff] %vm1064_vm14, %v1011_v36  ;;  %1170 = vadd.xlane.f32.xlu0 %v1169_v1  ;;  %1173 = vadd.xlane.f32.xlu1 %v1172_v32  ;;  %v1123_v1 = vmul.f32 %v4898_v31, %v4898_v31  ;;  %v1125_v31 = vmul.f32 %v4971_v51, %v4971_v51 }
 0x199   : > { %v1017_v42 = vpop.permute.xlu1 %1016  ;;  %v1208_v13 = vsel %vm385_vm1, %v1123_v1, 0.0  ;;  %v1214_v18 = vsel %vm385_vm1, %v1125_v31, 0.0 }
 0x19a   : > { %v1015_v4 = vpop.permute.xlu0 %1014  ;;  %1090 = vst.msk [vmem:[#allocation2 + $0x93] sm:$0xff] %vm1064_vm14, %v1017_v42  ;;  %v1127_v42 = vmul.f32 %v4984_v54, %v4984_v54  ;;  %v1223_v54 = vsel %vm1138_vm7, %v1128_v44, 0.0 }
 0x19b   : > { %1089 = vst.msk [vmem:[#allocation2 + $0x8b] sm:$0xe0] %vm1062_vm15, %v1015_v4  ;;  %1176 = vadd.xlane.f32.xlu0 %v1175_v6  ;;  %1179 = vadd.xlane.f32.xlu1 %v1178_v41  ;;  %v1211_v41 = vsel %vm1138_vm7, %v1124_v35, 0.0  ;;  %vm1678_vm7 = vcmask 1042432  }
 0x19c   : > { %v1220_v50 = vsel %vm385_vm1, %v1127_v42, 0.0 }
 0x19d   : > { %v497_v49 = vpop.permute.xlu1 %496 }
 0x19e   : > { %v1019_v20 = vpop.permute.xlu0 %1018  ;;  %v1799_v7 = vld [vmem:[#allocation2 + $0x80] sm:$0xff]  ;;  %v1800_v52 = vld [vmem:[#allocation2 + $0x88] sm:$0xff]  ;;  %568 = vst.msk [vmem:[#allocation2 + $0xa7] sm:$0x1] %vm543_vm4, %v497_v49 }
 0x19f   : > { %1091 = vst.msk [vmem:[#allocation2 + $0x9b] sm:$0xff] %vm1064_vm14, %v1019_v20  ;;  %1182 = vadd.xlane.f32.xlu0 %v1181_v43  ;;  %v5412_v53 = vpack.c.bf16 %v1800_v52, %v1799_v7  ;;  %1185 = vadd.xlane.f32.xlu1 %v1184_v17  ;;  %v1217_v43 = vsel %vm385_vm1, %v1126_v33, 0.0  ;;  %vm1258_vm1 = vcmask 1046528  }
 0x1a1   : > { %4019 = vmatprep.mubr.bf16.mxu1 %v5412_v53  ;;  %v1835_v56 = vunpack.c.l.bf16 %v5412_v53  ;;  %v1836_v58 = vunpack.c.h.bf16 %v5412_v53  ;;  %v501_v9 = vpop.permute.xlu1 %500 }
 0x1a2   : > { %v499_v60 = vpop.permute.xlu0 %498  ;;  %570 = vst.msk [vmem:[#allocation2 + $0xaf] sm:$0xff] %vm540_vm2, %v501_v9  ;;  %v1801_v10 = vld [vmem:[#allocation2 + $0x90] sm:$0xff] }
 0x1a3   : > { %569 = vst.msk [vmem:[#allocation2 + $0xa7] sm:$0xfe] %vm538_vm3, %v499_v60  ;;  %1188 = vadd.xlane.f32.xlu0 %v1187_v55  ;;  %v1859_v62 = vsub.f32 %v1799_v7, %v1835_v56  ;;  %v1860_v22 = vsub.f32 %v1800_v52, %v1836_v58  ;;  %1191 = vadd.xlane.f32.xlu1 %v1190_v23 }
 0x1a5   : > { %v1875_v2 = vpack.c.bf16 %v1860_v22, %v1859_v62  ;;  %v505_v14 = vpop.permute.xlu1 %504 }
 0x1a6   : > { %v503_v15 = vpop.permute.xlu0 %502  ;;  %v1802_v16 = vld [vmem:[#allocation2 + $0x98] sm:$0xff]  ;;  %572 = vst.msk [vmem:[#allocation2 + $0xbf] sm:$0x1] %vm543_vm4, %v505_v14  ;;  %vm1363_vm4 = vcmask 1045504  }
 0x1a7   : > { %571 = vst.msk [vmem:[#allocation2 + $0xb7] sm:$0xff] %vm540_vm2, %v503_v15  ;;  %1194 = vadd.xlane.f32.xlu0 %v1193_v63  ;;  %3979 = vmatprep.mubr.bf16.mxu0 %v1875_v2  ;;  %v5433_v21 = vpack.c.bf16 %v1802_v16, %v1801_v10  ;;  %vm7194_vm2 = vcmask 91200  }
 0x1a8   : > { %1197 = vadd.xlane.f32.xlu1 %v1196_v8  ;;  %vm7195_vm3 = vmmov %vm7194_vm2 }
 0x1a9   : > { %4020 = vmatmul.mubr.bf16.gmra.mxu1 %v5433_v21  ;;  %v1837_v12 = vunpack.c.l.bf16 %v5433_v21  ;;  %v1838_v25 = vunpack.c.h.bf16 %v5433_v21  ;;  %v630_v27 = vpop.permute.xlu1 %629 }
 0x1aa   : > { %v628_v3 = vpop.permute.xlu0 %627  ;;  %700 = vst.msk [vmem:[#allocation2 + $0xa6] sm:$0xfc] %vm669_vm6, %v630_v27  ;;  %vm1573_vm6 = vcmask 1043456  }
 0x1ab   : > { %699 = vst.msk [vmem:[#allocation2 + $0xa6] sm:$0x3] %vm7194_vm2, %v628_v3  ;;  %1200 = vadd.xlane.f32.xlu0 %v1199_v19  ;;  %v1861_v32 = vsub.f32 %v1801_v10, %v1837_v12  ;;  %v1862_v29 = vsub.f32 %v1802_v16, %v1838_v25  ;;  %vm2851_vm2 = vcmask 1042434  }
 0x1ac   : > { %1203 = vadd.xlane.f32.xlu1 %v1202_v30 }
 0x1ad   : > { %v1876_v36 = vpack.c.bf16 %v1862_v29, %v1861_v32  ;;  %v634_v6 = vpop.permute.xlu1 %633 }
 0x1ae   : > { %v632_v39 = vpop.permute.xlu0 %631  ;;  %702 = vst.msk [vmem:[#allocation2 + $0xb6] sm:$0xff] %vm671_vm5, %v634_v6 }
 0x1af   : > { %701 = vst.msk [vmem:[#allocation2 + $0xae] sm:$0xff] %vm671_vm5, %v632_v39  ;;  %1206 = vadd.xlane.f32.xlu0 %v1205_v11  ;;  %3980 = vmatmul.mubr.bf16.gmra.mxu0 %v1876_v36  ;;  %vm1468_vm5 = vcmask 1044480  }
 0x1b0   : > { %1209 = vadd.xlane.f32.xlu1 %v1208_v13 }
 0x1b1   : > { %v759_v51 = vpop.permute.xlu1 %758 }
 0x1b2   : > { %v636_v4 = vpop.permute.xlu0 %635  ;;  %830 = vst.msk [vmem:[#allocation2 + $0xa5] sm:$0x7] %vm805_vm10, %v759_v51 }
 0x1b3   : > { %703 = vst.msk [vmem:[#allocation2 + $0xbe] sm:$0x3] %vm7195_vm3, %v636_v4  ;;  %1212 = vadd.xlane.f32.xlu0 %v1211_v41 }
 0x1b4   : > { %1215 = vadd.xlane.f32.xlu1 %v1214_v18 }
 0x1b5   : > { %v763_v17 = vpop.permute.xlu1 %762 }
 0x1b6   : > { %v761_v46 = vpop.permute.xlu0 %760  ;;  %832 = vst.msk [vmem:[#allocation2 + $0xad] sm:$0xff] %vm802_vm8, %v763_v17 }
 0x1b7   : > { %831 = vst.msk [vmem:[#allocation2 + $0xa5] sm:$0xf8] %vm800_vm9, %v761_v46  ;;  %1218 = vadd.xlane.f32.xlu0 %v1217_v43 }
 0x1b8   : > { %1221 = vadd.xlane.f32.xlu1 %v1220_v50 }
 0x1b9   : > { %v767_v49 = vpop.permute.xlu1 %766 }
 0x1ba   : > { %v765_v20 = vpop.permute.xlu0 %764  ;;  %834 = vst.msk [vmem:[#allocation2 + $0xbd] sm:$0x7] %vm805_vm10, %v767_v49 }
 0x1bb   : > { %833 = vst.msk [vmem:[#allocation2 + $0xb5] sm:$0xff] %vm802_vm8, %v765_v20  ;;  %1224 = vadd.xlane.f32.xlu0 %v1223_v54  ;;  %vm4513_vm8 = vmmov 0  }
 0x1bd   : > { %v892_v40 = vpop.permute.xlu1 %891 }
 0x1be   : > { %v890_v7 = vpop.permute.xlu0 %889  ;;  %962 = vst.msk [vmem:[#allocation2 + $0xa4] sm:$0xf0] %vm931_vm12, %v892_v40 }
 0x1bf   : > { %961 = vst.msk [vmem:[#allocation2 + $0xa4] sm:$0xf] %vm936_vm13, %v890_v7 }
 0x1c1   : > { %v896_v52 = vpop.permute.xlu1 %895 }
 0x1c2   : > { %v894_v55 = vpop.permute.xlu0 %893  ;;  %964 = vst.msk [vmem:[#allocation2 + $0xb4] sm:$0xff] %vm933_vm11, %v896_v52 }
 0x1c3   : > { %963 = vst.msk [vmem:[#allocation2 + $0xac] sm:$0xff] %vm933_vm11, %v894_v55 }
 0x1c5   : > { %v1021_v61 = vpop.permute.xlu1 %1020 }
 0x1c6   : > { %v898_v23 = vpop.permute.xlu0 %897  ;;  %1092 = vst.msk [vmem:[#allocation2 + $0xa3] sm:$0x1f] %vm1067_vm0, %v1021_v61 }
 0x1c7   : > { %965 = vst.msk [vmem:[#allocation2 + $0xbc] sm:$0xf] %vm936_vm13, %v898_v23 }
 0x1c9   : > { %v1025_v56 = vpop.permute.xlu1 %1024 }
 0x1ca   : > { %v1023_v58 = vpop.permute.xlu0 %1022  ;;  %1094 = vst.msk [vmem:[#allocation2 + $0xab] sm:$0xff] %vm1064_vm14, %v1025_v56 }
 0x1cb   : > { %1093 = vst.msk [vmem:[#allocation2 + $0xa3] sm:$0xe0] %vm1062_vm15, %v1023_v58 }
 0x1cd   : > { %v1029_v59 = vpop.permute.xlu1 %1028  ;;  %v1803_v60 = vld [vmem:[#allocation2 + $0xa0] sm:$0xff] }
 0x1ce   : > { %v1027_v9 = vpop.permute.xlu0 %1026  ;;  %1096 = vst.msk [vmem:[#allocation2 + $0xbb] sm:$0x1f] %vm1067_vm0, %v1029_v59  ;;  %vm2849_vm0 = vcmask 1041409  }
 0x1cf   : > { %1095 = vst.msk [vmem:[#allocation2 + $0xb3] sm:$0xff] %vm1064_vm14, %v1027_v9 }
 0x1d2   : > { %v1804_v62 = vld [vmem:[#allocation2 + $0xa8] sm:$0xff] }
 0x1d3   : > { %v1817_v22 = vpack.c.bf16 %v1804_v62, %v1803_v60 }
 0x1d5   : > { %4023 = vmatprep.mubr.bf16.mxu1 %v1817_v22  ;;  %v1839_v63 = vunpack.c.l.bf16 %v1817_v22  ;;  %v1840_v5 = vunpack.c.h.bf16 %v1817_v22 }
 0x1d6   : > { %v1805_v2 = vld [vmem:[#allocation2 + $0xb0] sm:$0xff]  ;;  %v1806_v8 = vld [vmem:[#allocation2 + $0xb8] sm:$0xff] }
 0x1d7   : > { %v1818_v28 = vpack.c.bf16 %v1806_v8, %v1805_v2  ;;  %v1863_v14 = vsub.f32 %v1803_v60, %v1839_v63  ;;  %v1864_v15 = vsub.f32 %v1804_v62, %v1840_v5 }
 0x1d9   : > { %4024 = vmatmul.mubr.bf16.gmra.mxu1 %v1818_v28  ;;  %v1877_v10 = vpack.c.bf16 %v1864_v15, %v1863_v14  ;;  %v1841_v16 = vunpack.c.l.bf16 %v1818_v28  ;;  %v1842_v19 = vunpack.c.h.bf16 %v1818_v28 }
 0x1db   : > { %3983 = vmatprep.mubr.bf16.mxu0 %v1877_v10  ;;  %v1865_v24 = vsub.f32 %v1805_v2, %v1841_v16  ;;  %v1866_v30 = vsub.f32 %v1806_v8, %v1842_v19 }
 0x1dd   : > { %v1878_v12 = vpack.c.bf16 %v1866_v30, %v1865_v24 }
 0x1df   : > { %3984 = vmatmul.mubr.bf16.gmra.mxu0 %v1878_v12 }
 0x1e0   : > { %4043 = vmatprep.mubr.bf16.mxu0 %v5033_v26 }
 0x1e7   : > { %4044 = vmatmul.mubr.bf16.vlgmr.msra.gmra.mxu0 %v5044_v37 }
 0x1e8   : > { %4047 = vmatprep.mubr.bf16.mxu0 %v5118_v34 }
 0x1ef   : > { %4048 = vmatmul.mubr.bf16.gmra.mxu0 %v5135_v47 }
 0x1f0   : > { %4051 = vmatprep.mubr.bf16.mxu0 %v5212_v45 }
 0x1f7   : > { %4052 = vmatmul.mubr.bf16.gmra.mxu0 %v5226_v57 }
 0x1f8   : > { %4055 = vmatprep.mubr.bf16.mxu0 %v5321_v38 }
 0x1ff   : > { %4056 = vmatmul.mubr.bf16.gmra.mxu0 %v5328_v48 }
 0x200   : > { %4059 = vmatprep.mubr.bf16.mxu0 %v5412_v53 }
 0x204   : > { %v1131_v25 = vpop.xlane.xlu0 %1130 }
 0x205   : > { %v1259_v37 = vrot.slane %v1131_v25, 1  ;;  %v1364_v34 = vrot.slane %v1131_v25, 2  ;;  %v1469_v57 = vrot.slane %v1131_v25, 3  ;;  %v1679_v1 = vrot.slane %v1131_v25, 5 }
 0x207   : > { %4060 = vmatmul.mubr.bf16.gmra.mxu0 %v5433_v21  ;;  %v1574_v21 = vrot.slane %v1131_v25, 4 }
 0x208   : > { %v5491_v26 = vpop.xlane.xlu0 %1136  ;;  %4063 = vmatprep.mubr.bf16.mxu0 %v1817_v22  ;;  %v5494_v45 = vpop.xlane.xlu1 %1133 }
 0x209   : > { %v1262_v47 = vrot.slane %v5491_v26, 1  ;;  %v1260_v38 = vrot.slane %v5494_v45, 1  ;;  %v1365_v48 = vrot.slane %v5494_v45, 2  ;;  %v1470_v53 = vrot.slane %v5494_v45, 3 }
 0x20a   : > { %v1367_v27 = vrot.slane %v5491_v26, 2  ;;  %v1472_v3 = vrot.slane %v5491_v26, 3  ;;  %v1577_v32 = vrot.slane %v5491_v26, 4  ;;  %v1682_v35 = vrot.slane %v5491_v26, 5 }
 0x20b   : > { %v1263_v29 = vsel %vm1258_vm1, %v1260_v38, %v1262_v47  ;;  %v1261_v36 = vsel %vm1258_vm1, %v1259_v37, %v1260_v38  ;;  %v1575_v13 = vrot.slane %v5494_v45, 4  ;;  %v1680_v39 = vrot.slane %v5494_v45, 5 }
 0x20c   : > { %v5503_v11 = vpop.xlane.xlu0 %1143  ;;  %v5509_v6 = vpop.xlane.xlu1 %1146  ;;  %v1366_v33 = vsel %vm1363_vm4, %v1364_v34, %v1365_v48  ;;  %v1471_v18 = vsel %vm1468_vm5, %v1469_v57, %v1470_v53  ;;  %v1340_v42 = vadd.f32 %v1263_v29, %v5494_v45  ;;  %v1339_v54 = vadd.f32 %v1261_v36, %v1131_v25 }
 0x20d   : > { %v1266_v31 = vrot.slane %v5503_v11, 1  ;;  %v1267_v41 = vrot.slane %v5509_v6, 1  ;;  %v1371_v51 = vrot.slane %v5503_v11, 2  ;;  %v1476_v4 = vrot.slane %v5503_v11, 3 }
 0x20e   : > { %v1581_v43 = vrot.slane %v5503_v11, 4  ;;  %v1686_v44 = vrot.slane %v5503_v11, 5  ;;  %v1372_v50 = vrot.slane %v5509_v6, 2  ;;  %v1477_v17 = vrot.slane %v5509_v6, 3 }
 0x20f   : > { %4064 = vmatmul.mubr.bf16.gmra.mxu0 %v1818_v28  ;;  %v1268_v49 = vsel %vm1258_vm1, %v1266_v31, %v1267_v41  ;;  %v1582_v20 = vrot.slane %v5509_v6, 4  ;;  %v1687_v40 = vrot.slane %v5509_v6, 5  ;;  %v1576_v23 = vsel %vm1573_vm6, %v1574_v21, %v1575_v13 }
 0x210   : > { %v5522_v46 = vpop.xlane.xlu0 %1149  ;;  %v5528_v52 = vpop.xlane.xlu1 %1140  ;;  %v1368_v56 = vsel %vm1363_vm4, %v1365_v48, %v1367_v27  ;;  %v1681_v60 = vsel %vm1678_vm7, %v1679_v1, %v1680_v39  ;;  %v1444_v2 = vadd.f32 %v1366_v33, %v1339_v54  ;;  %v1473_v30 = vsel %vm1468_vm5, %v1470_v53, %v1472_v3 }
 0x211   : > { %v1269_v7 = vrot.slane %v5522_v46, 1  ;;  %v1264_v55 = vrot.slane %v5528_v52, 1  ;;  %v1369_v61 = vrot.slane %v5528_v52, 2  ;;  %v1374_v58 = vrot.slane %v5522_v46, 2 }
 0x212   : > { %v1479_v59 = vrot.slane %v5522_v46, 3  ;;  %v1584_v9 = vrot.slane %v5522_v46, 4  ;;  %v1689_v62 = vrot.slane %v5522_v46, 5  ;;  %v1474_v63 = vrot.slane %v5528_v52, 3 }
 0x213   : > { %v1265_v22 = vsel %vm1258_vm1, %v1262_v47, %v1264_v55  ;;  %v5548_v8 = vsel %vm1258_vm1, %v1267_v41, %v1269_v7  ;;  %v1445_v10 = vadd.f32 %v1368_v56, %v1340_v42  ;;  %v5555_v16 = vsel %vm1363_vm4, %v1367_v27, %v1369_v61 }
 0x214   : > { %v5545_v5 = vpop.xlane.xlu0 %1152  ;;  %v5552_v15 = vpop.xlane.xlu1 %1155  ;;  %v1579_v19 = vrot.slane %v5528_v52, 4  ;;  %v1684_v24 = vrot.slane %v5528_v52, 5  ;;  %v5563_v12 = vadd.f32 %v1265_v22, %v5491_v26  ;;  %v1549_v48 = vadd.f32 %v1471_v18, %v1444_v2 }
 0x215   : > { %v1271_v28 = vrot.slane %v5545_v5, 1  ;;  %v1376_v14 = vrot.slane %v5545_v5, 2  ;;  %v1481_v37 = vrot.slane %v5545_v5, 3  ;;  %v1586_v34 = vrot.slane %v5545_v5, 4 }
 0x216   : > { %v1691_v47 = vrot.slane %v5545_v5, 5  ;;  %v1273_v57 = vrot.slane %v5552_v15, 1  ;;  %v1378_v38 = vrot.slane %v5552_v15, 2  ;;  %v1483_v1 = vrot.slane %v5552_v15, 3 }
 0x217   : > { %v1272_v25 = vsel %vm1258_vm1, %v1269_v7, %v1271_v28  ;;  %v5576_v53 = vsel %vm1363_vm4, %v1374_v58, %v1376_v14  ;;  %v1588_v27 = vrot.slane %v5552_v15, 4  ;;  %v1550_v36 = vadd.f32 %v1473_v30, %v1445_v10 }
 0x218   : > { %v5571_v21 = vpop.xlane.xlu0 %1158  ;;  %v5580_v29 = vpop.xlane.xlu1 %1161  ;;  %v5583_v31 = vadd.f32 %v1272_v25, %v5522_v46  ;;  %v1693_v41 = vrot.slane %v5552_v15, 5  ;;  %v1654_v33 = vadd.f32 %v1576_v23, %v1549_v48  ;;  %v1578_v22 = vsel %vm1573_vm6, %v1575_v13, %v1577_v32 }
 0x219   : > { %v1274_v18 = vrot.slane %v5571_v21, 1  ;;  %v1379_v42 = vrot.slane %v5571_v21, 2  ;;  %v1484_v54 = vrot.slane %v5571_v21, 3  ;;  %v1589_v7 = vrot.slane %v5571_v21, 4 }
 0x21a   : > { %v1694_v55 = vrot.slane %v5571_v21, 5  ;;  %v1759_v61 = vadd.f32 %v1681_v60, %v1654_v33  ;;  %v1276_v56 = vrot.slane %v5580_v29, 1  ;;  %v1683_v23 = vsel %vm1678_vm7, %v1680_v39, %v1682_v35 }
 0x21b   : > { %v1381_v28 = vrot.slane %v5580_v29, 2  ;;  %v1655_v14 = vadd.f32 %v1578_v22, %v1550_v36  ;;  %v1342_v60 = vadd.f32 %v1268_v49, %v5503_v11  ;;  %v1373_v10 = vsel %vm1363_vm4, %v1371_v51, %v1372_v50 }
 0x21c   : > { %v5602_v2 = vpop.xlane.xlu0 %1164  ;;  %v5611_v13 = vpop.xlane.xlu1 %1167  ;;  %2444 = vperm.xlu1 %4350, %v1759_v61   ;;  %v5614_v45 = vsel %vm1258_vm1, %v1273_v57, %v1274_v18  ;;  %v1478_v39 = vsel %vm1468_vm5, %v1476_v4, %v1477_v17  ;;  %v1486_v25 = vrot.slane %v5580_v29, 3  ;;  %v1591_v51 = vrot.slane %v5580_v29, 4 }
 0x21d   : > { %v1278_v49 = vrot.slane %v5602_v2, 1  ;;  %v1383_v30 = vrot.slane %v5602_v2, 2  ;;  %v1760_v48 = vadd.f32 %v1683_v23, %v1655_v14  ;;  %v1447_v36 = vadd.f32 %v1373_v10, %v1342_v60 }
 0x21e   : > { %v5626_v33 = vsel %vm1258_vm1, %v1274_v18, %v1276_v56  ;;  %v1696_v57 = vrot.slane %v5580_v29, 5  ;;  %v1583_v4 = vsel %vm1573_vm6, %v1581_v43, %v1582_v20  ;;  %v1688_v18 = vsel %vm1678_vm7, %v1686_v44, %v1687_v40 }
 0x21f   : > { %v1279_v61 = vsel %vm1258_vm1, %v1276_v56, %v1278_v49  ;;  %2449 = vperm.xlu0 %4351, %v1760_v48   ;;  %v1552_v0 = vadd.f32 %v1478_v39, %v1447_v36  ;;  %v1488_v23 = vrot.slane %v5602_v2, 3  ;;  %v1593_v14 = vrot.slane %v5602_v2, 4 }
 0x220   : > { %v5635_v22 = vpop.xlane.xlu0 %1170  ;;  %v5644_v60 = vpop.xlane.xlu1 %1173  ;;  %v5649_v43 = vsel %vm1363_vm4, %v1381_v28, %v1383_v30  ;;  %v1343_v10 = vadd.f32 %v5548_v8, %v5509_v6  ;;  %v1375_v11 = vsel %vm1363_vm4, %v1372_v50, %v1374_v58  ;;  %v5660_v39 = vadd.f32 %v1279_v61, %v5580_v29 }
 0x221   : > { %v1657_v44 = vadd.f32 %v1583_v4, %v1552_v0  ;;  %v1280_v49 = vrot.slane %v5611_v13, 1  ;;  %v1480_v30 = vsel %vm1468_vm5, %v1477_v17, %v1479_v59  ;;  %v1281_v56 = vrot.slane %v5635_v22, 1 }
 0x222   : > { %v1448_v36 = vadd.f32 %v1375_v11, %v1343_v10  ;;  %v1585_v17 = vsel %vm1573_vm6, %v1582_v20, %v1584_v9  ;;  %v1690_v10 = vsel %vm1678_vm7, %v1687_v40, %v1689_v62  ;;  %v1386_v11 = vrot.slane %v5635_v22, 2 }
 0x223   : > { %v1762_v0 = vadd.f32 %v1688_v18, %v1657_v44  ;;  %v1283_v18 = vrot.slane %v5644_v60, 1  ;;  %v1491_v4 = vrot.slane %v5635_v22, 3  ;;  %v5695_v6 = vsel %vm1258_vm1, %v1280_v49, %v1281_v56 }
 0x224   : > { %v5671_v50 = vpop.xlane.xlu0 %1176  ;;  %v1553_v61 = vadd.f32 %v1480_v30, %v1448_v36  ;;  %v5687_v44 = vpop.xlane.xlu1 %1179  ;;  %v1446_v30 = vadd.f32 %v5555_v16, %v5563_v12  ;;  %v1388_v40 = vrot.slane %v5644_v60, 2  ;;  %v1493_v48 = vrot.slane %v5644_v60, 3 }
 0x225   : > { %2459 = vperm.xlu1 %4350, %v1762_v0   ;;  %v1475_v0 = vsel %vm1468_vm5, %v1472_v3, %v1474_v63  ;;  %v1285_v20 = vrot.slane %v5671_v50, 1  ;;  %v1390_v58 = vrot.slane %v5671_v50, 2  ;;  %v5707_v12 = vsel %vm1258_vm1, %v1281_v56, %v1283_v18 }
 0x226   : > { %v1658_v36 = vadd.f32 %v1585_v17, %v1553_v61  ;;  %v1551_v8 = vadd.f32 %v1475_v0, %v1446_v30  ;;  %v1598_v49 = vrot.slane %v5644_v60, 4  ;;  %v1580_v17 = vsel %vm1573_vm6, %v1577_v32, %v1579_v19 }
 0x227   : > { %v1703_v63 = vrot.slane %v5644_v60, 5  ;;  %v1685_v56 = vsel %vm1678_vm7, %v1682_v35, %v1684_v24  ;;  %v1495_v30 = vrot.slane %v5671_v50, 3  ;;  %v1287_v19 = vrot.slane %v5687_v44, 1 }
 0x228   : > { %v1763_v16 = vadd.f32 %v1690_v10, %v1658_v36  ;;  %v5715_v3 = vpop.xlane.xlu0 %1182  ;;  %v1656_v61 = vadd.f32 %v1580_v17, %v1551_v8  ;;  %v1286_v10 = vsel %vm1258_vm1, %v1283_v18, %v1285_v20  ;;  %v1600_v36 = vrot.slane %v5671_v50, 4  ;;  %v5728_v0 = vpop.xlane.xlu1 %1185 }
 0x229   : > { %v5733_v52 = vsel %vm1363_vm4, %v1388_v40, %v1390_v58  ;;  %v1392_v26 = vrot.slane %v5687_v44, 2  ;;  %v1449_v35 = vadd.f32 %v5576_v53, %v5583_v31  ;;  %v1482_v24 = vsel %vm1468_vm5, %v1479_v59, %v1481_v37 }
 0x22a   : > { %2464 = vperm.xlu1 %4350, %v1763_v16   ;;  %v1761_v8 = vadd.f32 %v1685_v56, %v1656_v61  ;;  %v5744_v18 = vadd.f32 %v1286_v10, %v5644_v60  ;;  %v1587_v58 = vsel %vm1573_vm6, %v1584_v9, %v1586_v34  ;;  %v1288_v20 = vrot.slane %v5715_v3, 1 }
 0x22b   : > { %v1497_v53 = vrot.slane %v5687_v44, 3  ;;  %v1602_v31 = vrot.slane %v5687_v44, 4  ;;  %v1554_v17 = vadd.f32 %v1482_v24, %v1449_v35  ;;  %v1692_v59 = vsel %vm1678_vm7, %v1689_v62, %v1691_v47 }
 0x22c   : > { %v1393_v37 = vrot.slane %v5715_v3, 2  ;;  %v1498_v9 = vrot.slane %v5715_v3, 3  ;;  %v1290_v34 = vrot.slane %v5728_v0, 1  ;;  %v5763_v61 = vpop.xlane.xlu0 %1188  ;;  %v1603_v10 = vrot.slane %v5715_v3, 4 }
 0x22d   : > { %v1659_v56 = vadd.f32 %v1587_v58, %v1554_v17  ;;  %v1708_v35 = vrot.slane %v5715_v3, 5  ;;  %v1345_v5 = vadd.f32 %v5614_v45, %v5552_v15  ;;  %v5770_v46 = vsel %vm1258_vm1, %v1287_v19, %v1288_v20 }
 0x22e   : > { %2454 = vperm.xlu1 %4350, %v1761_v8   ;;  %v1395_v62 = vrot.slane %v5728_v0, 2  ;;  %v1380_v47 = vsel %vm1363_vm4, %v1378_v38, %v1379_v42  ;;  %v1485_v24 = vsel %vm1468_vm5, %v1483_v1, %v1484_v54  ;;  %v5783_v8 = vpop.xlane.xlu1 %1191  ;;  %v1292_v19 = vrot.slane %v5763_v61, 1 }
 0x22f   : > { %v1764_v45 = vadd.f32 %v1692_v59, %v1659_v56  ;;  %v1450_v58 = vadd.f32 %v1380_v47, %v1345_v5  ;;  %v1397_v17 = vrot.slane %v5763_v61, 2  ;;  %v5788_v32 = vsel %vm1258_vm1, %v1288_v20, %v1290_v34 }
 0x230   : > { %v1590_v1 = vsel %vm1573_vm6, %v1588_v27, %v1589_v7  ;;  %v1695_v20 = vsel %vm1678_vm7, %v1693_v41, %v1694_v55  ;;  %v1293_v5 = vsel %vm1258_vm1, %v1290_v34, %v1292_v19  ;;  %v1502_v47 = vrot.slane %v5763_v61, 3 }
 0x231   : > { %v1555_v56 = vadd.f32 %v1485_v24, %v1450_v58  ;;  %v1607_v38 = vrot.slane %v5763_v61, 4  ;;  %v1712_v16 = vrot.slane %v5763_v61, 5  ;;  %v1294_v27 = vrot.slane %v5783_v8, 1 }
 0x232   : > { %2469 = vperm.xlu1 %4350, %v1764_v45   ;;  %v5808_v45 = vpop.xlane.xlu0 %1194  ;;  %v5813_v24 = vsel %vm1363_vm4, %v1395_v62, %v1397_v17  ;;  %v1346_v15 = vadd.f32 %v5626_v33, %v5571_v21  ;;  %v1382_v41 = vsel %vm1363_vm4, %v1379_v42, %v1381_v28  ;;  %v5823_v34 = vadd.f32 %v1293_v5, %v5728_v0  ;;  %v5832_v33 = vpop.xlane.xlu1 %1197 }
 0x233   : > { %v1660_v59 = vadd.f32 %v1590_v1, %v1555_v56  ;;  %v1487_v19 = vsel %vm1468_vm5, %v1484_v54, %v1486_v25  ;;  %v1295_v17 = vrot.slane %v5808_v45, 1  ;;  %v1592_v58 = vsel %vm1573_vm6, %v1589_v7, %v1591_v51 }
 0x234   : > { %v1451_v28 = vadd.f32 %v1382_v41, %v1346_v15  ;;  %v1697_v54 = vsel %vm1678_vm7, %v1694_v55, %v1696_v57  ;;  %v1505_v41 = vrot.slane %v5808_v45, 3  ;;  %v1297_v7 = vrot.slane %v5832_v33, 1 }
 0x235   : > { %v1765_v1 = vadd.f32 %v1695_v20, %v1660_v59  ;;  %v1400_v59 = vrot.slane %v5808_v45, 2  ;;  %v5849_v15 = vsel %vm1258_vm1, %v1294_v27, %v1295_v17  ;;  %v1452_v21 = vadd.f32 %v5649_v43, %v5660_v39 }
 0x236   : > { %v1556_v20 = vadd.f32 %v1487_v19, %v1451_v28  ;;  %v1489_v55 = vsel %vm1468_vm5, %v1486_v25, %v1488_v23  ;;  %v5862_v19 = vpop.xlane.xlu0 %1200  ;;  %v1349_v28 = vadd.f32 %v5707_v12, %v5635_v22  ;;  %v1389_v43 = vsel %vm1363_vm4, %v1386_v11, %v1388_v40 }
 0x237   : > { %2474 = vperm.xlu1 %4350, %v1765_v1   ;;  %v1594_v1 = vsel %vm1573_vm6, %v1591_v51, %v1593_v14  ;;  %v1402_v25 = vrot.slane %v5832_v33, 2  ;;  %v1507_v23 = vrot.slane %v5832_v33, 3  ;;  %v1557_v39 = vadd.f32 %v1489_v55, %v1452_v21  ;;  %v5883_v14 = vpop.xlane.xlu1 %1203 }
 0x238   : > { %v1661_v27 = vadd.f32 %v1592_v58, %v1556_v20  ;;  %v1494_v51 = vsel %vm1468_vm5, %v1491_v4, %v1493_v48  ;;  %v1454_v58 = vadd.f32 %v1389_v43, %v1349_v28  ;;  %v1299_v20 = vrot.slane %v5862_v19, 1 }
 0x239   : > { %v1404_v42 = vrot.slane %v5862_v19, 2  ;;  %v1612_v40 = vrot.slane %v5832_v33, 4  ;;  %v1662_v5 = vadd.f32 %v1594_v1, %v1557_v39  ;;  %v7196_v56 = vrot.slane %v5602_v2, 5 }
 0x23a   : > { %v1766_v12 = vadd.f32 %v1697_v54, %v1661_v27  ;;  %v7197_v55 = vrot.slane %v5635_v22, 4  ;;  %v5899_v27 = vsel %vm1258_vm1, %v1295_v17, %v1297_v7  ;;  %v1559_v43 = vadd.f32 %v1494_v51, %v1454_v58 }
 0x23b   : > { %v1699_v21 = vsel %vm1678_vm7, %v1696_v57, %v7196_v56  ;;  %v1300_v1 = vsel %vm1258_vm1, %v1297_v7, %v1299_v20  ;;  %v7198_v29 = vrot.slane %v5635_v22, 5  ;;  %v5916_v7 = vsel %vm1363_vm4, %v1402_v25, %v1404_v42 }
 0x23c   : > { %v1599_v54 = vsel %vm1573_vm6, %v7197_v55, %v1598_v49  ;;  %2479 = vperm.xlu1 %4350, %v1766_v12   ;;  %v5911_v12 = vpop.xlane.xlu0 %1206  ;;  %v1767_v17 = vadd.f32 %v1699_v21, %v1662_v5  ;;  %v1348_v51 = vadd.f32 %v5695_v6, %v5611_v13  ;;  %v5921_v58 = vadd.f32 %v1300_v1, %v5832_v33 }
 0x23d   : > { %v1704_v2 = vsel %vm1678_vm7, %v7198_v29, %v1703_v63  ;;  %v1664_v55 = vadd.f32 %v1599_v54, %v1559_v43  ;;  %v1301_v20 = vrot.slane %v5883_v14, 1  ;;  %v7199_v29 = vrot.slane %v5611_v13, 2  ;;  %v5934_v54 = vpop.xlane.xlu1 %1209 }
 0x23e   : > { %v7200_v21 = vrot.slane %v5611_v13, 3  ;;  %v1406_v43 = vrot.slane %v5883_v14, 2  ;;  %v1302_v39 = vrot.slane %v5911_v12, 1  ;;  %v7202_v28 = vrot.slane %v5611_v13, 4 }
 0x23f   : > { %v1387_v5 = vsel %vm1363_vm4, %v7199_v29, %v1386_v11  ;;  %v1769_v6 = vadd.f32 %v1704_v2, %v1664_v55  ;;  %v7201_v29 = vrot.slane %v5635_v22, 4  ;;  %v7203_v2 = vrot.slane %v5635_v22, 5 }
 0x240   : > { %v1492_v42 = vsel %vm1468_vm5, %v7200_v21, %v1491_v4  ;;  %2484 = vperm.xlu1 %4350, %v1767_v17   ;;  %v1453_v1 = vadd.f32 %v1387_v5, %v1348_v51  ;;  %v7204_v55 = vrot.slane %v5611_v13, 5  ;;  %v1407_v5 = vrot.slane %v5911_v12, 2 }
 0x241   : > { %v1597_v4 = vsel %vm1573_vm6, %v7202_v28, %v7201_v29  ;;  %2494 = vperm.xlu0 %4351, %v1769_v6   ;;  %v1512_v21 = vrot.slane %v5911_v12, 3  ;;  %v1617_v11 = vrot.slane %v5911_v12, 4  ;;  %v1722_v57 = vrot.slane %v5911_v12, 5 }
 0x242   : > { %v1558_v17 = vadd.f32 %v1492_v42, %v1453_v1  ;;  %v1702_v51 = vsel %vm1678_vm7, %v7204_v55, %v7203_v2  ;;  %v1304_v56 = vrot.slane %v5934_v54, 1  ;;  %v1351_v28 = vadd.f32 %v5770_v46, %v5687_v44  ;;  %v5971_v1 = vpop.xlane.xlu0 %1212 }
 0x243   : > { %v5959_v22 = vsel %vm1258_vm1, %v1301_v20, %v1302_v39  ;;  %v1394_v13 = vsel %vm1363_vm4, %v1392_v26, %v1393_v37  ;;  %v1499_v6 = vsel %vm1468_vm5, %v1497_v53, %v1498_v9  ;;  %v1409_v46 = vrot.slane %v5934_v54, 2 }
 0x244   : > { %v1663_v42 = vadd.f32 %v1597_v4, %v1558_v17  ;;  %v1456_v29 = vadd.f32 %v1394_v13, %v1351_v28  ;;  %v1455_v20 = vadd.f32 %v5733_v52, %v5744_v18  ;;  %v1496_v26 = vsel %vm1468_vm5, %v1493_v48, %v1495_v30  ;;  %v5981_v4 = vpop.xlane.xlu1 %1215 }
 0x245   : > { %v1514_v2 = vrot.slane %v5934_v54, 3  ;;  %v1604_v53 = vsel %vm1573_vm6, %v1602_v31, %v1603_v10  ;;  %v1601_v52 = vsel %vm1573_vm6, %v1598_v49, %v1600_v36  ;;  %v1306_v48 = vrot.slane %v5971_v1, 1 }
 0x246   : > { %v1768_v17 = vadd.f32 %v1702_v51, %v1663_v42  ;;  %v1561_v18 = vadd.f32 %v1499_v6, %v1456_v29  ;;  %v1560_v55 = vadd.f32 %v1496_v26, %v1455_v20  ;;  %v1411_v30 = vrot.slane %v5971_v1, 2 }
 0x247   : > { %v5997_v51 = vsel %vm1258_vm1, %v1302_v39, %v1304_v56  ;;  %v1619_v28 = vrot.slane %v5934_v54, 4  ;;  %v7205_v31 = vrot.slane %v5687_v44, 5  ;;  %v7206_v49 = vrot.slane %v5671_v50, 5 }
 0x248   : > { %2489 = vperm.xlu1 %4350, %v1768_v17   ;;  %v1724_v13 = vrot.slane %v5934_v54, 5  ;;  %v1666_v6 = vadd.f32 %v1604_v53, %v1561_v18  ;;  %v1665_v29 = vadd.f32 %v1601_v52, %v1560_v55  ;;  %v1307_v39 = vsel %vm1258_vm1, %v1304_v56, %v1306_v48  ;;  %v6024_v53 = vpop.xlane.xlu1 %1221 }
 0x249   : > { %v1709_v42 = vsel %vm1678_vm7, %v7205_v31, %v1708_v35  ;;  %v1706_v36 = vsel %vm1678_vm7, %v1703_v63, %v7206_v49  ;;  %v1516_v20 = vrot.slane %v5971_v1, 3  ;;  %v1621_v26 = vrot.slane %v5971_v1, 4 }
 0x24a   : > { %v1726_v44 = vrot.slane %v5971_v1, 5  ;;  %v1308_v17 = vrot.slane %v5981_v4, 1  ;;  %v1771_v31 = vadd.f32 %v1709_v42, %v1666_v6  ;;  %v1770_v50 = vadd.f32 %v1706_v36, %v1665_v29 }
 0x24b   : > { %v6017_v60 = vadd.f32 %v1307_v39, %v5934_v54  ;;  %v6022_v63 = vsel %vm1363_vm4, %v1409_v46, %v1411_v30  ;;  %v1413_v56 = vrot.slane %v5981_v4, 2  ;;  %v1518_v52 = vrot.slane %v5981_v4, 3 }
 0x24c   : > { %v1458_v18 = vadd.f32 %v5813_v24, %v5823_v34  ;;  %v7207_v55 = vrot.slane %v5728_v0, 3  ;;  %2504 = vperm.xlu0 %4351, %v1771_v31   ;;  %2499 = vperm.xlu1 %4350, %v1770_v50   ;;  %v7208_v42 = vrot.slane %v5728_v0, 4  ;;  %v1352_v36 = vadd.f32 %v5788_v32, %v5715_v3 }
 0x24d   : > { %v1396_v24 = vsel %vm1363_vm4, %v1393_v37, %v1395_v62  ;;  %v1311_v39 = vrot.slane %v6024_v53, 1  ;;  %v7210_v32 = vrot.slane %v5728_v0, 5  ;;  %v1416_v61 = vrot.slane %v6024_v53, 2 }
 0x24e   : > { %v1503_v48 = vsel %vm1468_vm5, %v7207_v55, %v1502_v47  ;;  %v1608_v49 = vsel %vm1573_vm6, %v7208_v42, %v1607_v38  ;;  %v6048_v47 = vpop.xlane.xlu0 %1218  ;;  %v7209_v29 = vmov %v7207_v55  ;;  %v1457_v37 = vadd.f32 %v1396_v24, %v1352_v36 }
 0x24f   : > { %v1563_v6 = vadd.f32 %v1503_v48, %v1458_v18  ;;  %v1501_v38 = vsel %vm1468_vm5, %v1498_v9, %v7209_v29  ;;  %v1713_v31 = vsel %vm1678_vm7, %v7210_v32, %v1712_v16  ;;  %v7211_v62 = vmov %v7208_v42 }
 0x250   : > { %v1606_v50 = vsel %vm1573_vm6, %v1603_v10, %v7211_v62  ;;  %v7212_v18 = vmov %v7210_v32  ;;  %v1521_v48 = vrot.slane %v6024_v53, 3  ;;  %v1309_v16 = vrot.slane %v6048_v47, 1 }
 0x251   : > { %v1711_v9 = vsel %vm1678_vm7, %v1708_v35, %v7212_v18  ;;  %v1668_v55 = vadd.f32 %v1608_v49, %v1563_v6  ;;  %v1562_v42 = vadd.f32 %v1501_v38, %v1457_v37  ;;  %v1626_v36 = vrot.slane %v6024_v53, 4 }
 0x252   : > { %v1414_v10 = vrot.slane %v6048_v47, 2  ;;  %v1312_v0 = vsel %vm1258_vm1, %v1309_v16, %v1311_v39  ;;  %v1519_v3 = vrot.slane %v6048_v47, 3  ;;  %v1624_v35 = vrot.slane %v6048_v47, 4  ;;  %v6089_v37 = vpop.xlane.xlu0 %1224 }
 0x253   : > { %v1773_v29 = vadd.f32 %v1713_v31, %v1668_v55  ;;  %v1667_v49 = vadd.f32 %v1606_v50, %v1562_v42  ;;  %v1355_v32 = vadd.f32 %v5899_v27, %v5808_v45  ;;  %v1403_v38 = vsel %vm1363_vm4, %v1400_v59, %v1402_v25  ;;  %v6091_v31 = vpop.f32.mrf.mxu0 }
 0x254   : > { %v6094_v62 = vsel %vm1258_vm1, %v1308_v17, %v1309_v16  ;;  %v1361_v50 = vadd.f32 %v1312_v0, %v6048_v47  ;;  %v1508_v27 = vsel %vm1468_vm5, %v1505_v41, %v1507_v23  ;;  %v1354_v18 = vadd.f32 %v5849_v15, %v5783_v8 }
 0x255   : > { %2514 = vperm.xlu0 %4351, %v1773_v29   ;;  %v1772_v25 = vadd.f32 %v1711_v9, %v1667_v49  ;;  %v1460_v55 = vadd.f32 %v1403_v38, %v1355_v32  ;;  %v7213_v42 = vrot.slane %v5783_v8, 2  ;;  %v7214_v16 = vrot.slane %v5783_v8, 3 }
 0x256   : > { %v7215_v0 = vrot.slane %v5808_v45, 4  ;;  %v7216_v9 = vrot.slane %v5832_v33, 5  ;;  %v7217_v49 = vrot.slane %v5808_v45, 5  ;;  %v1418_v24 = vrot.slane %v6089_v37, 2 }
 0x257   : > { %v1401_v17 = vsel %vm1363_vm4, %v7213_v42, %v1400_v59  ;;  %v1506_v29 = vsel %vm1468_vm5, %v7214_v16, %v1505_v41  ;;  %v1313_v59 = vrot.slane %v6089_v37, 1  ;;  %2509 = vperm.xlu1 %4350, %v1772_v25   ;;  %v1565_v42 = vadd.f32 %v1508_v27, %v1460_v55 }
 0x258   : > { %v1613_v15 = vsel %vm1573_vm6, %v7215_v0, %v1612_v40  ;;  %v1718_v32 = vsel %vm1678_vm7, %v7217_v49, %v7216_v9  ;;  %v1459_v38 = vadd.f32 %v1401_v17, %v1354_v18  ;;  %v7218_v34 = vmov %v7215_v0  ;;  %v6136_v9 = vpop.f32.mrf.mxu0 }
 0x259   : > { %v7219_v41 = vrot.slane %v5783_v8, 4  ;;  %v7220_v30 = vmov %v7217_v49  ;;  %v7221_v0 = vrot.slane %v5783_v8, 5  ;;  %v1314_v25 = vsel %vm1258_vm1, %v1311_v39, %v1313_v59 }
 0x25a   : > { %v1564_v18 = vadd.f32 %v1506_v29, %v1459_v38  ;;  %v1523_v27 = vrot.slane %v6089_v37, 3  ;;  %v1357_v55 = vadd.f32 %v5959_v22, %v5883_v14  ;;  %v1670_v17 = vadd.f32 %v1613_v15, %v1565_v42 }
 0x25b   : > { %v1611_v16 = vsel %vm1573_vm6, %v7219_v41, %v7218_v34  ;;  %v1716_v6 = vsel %vm1678_vm7, %v7221_v0, %v7220_v30  ;;  %v1362_v34 = vadd.f32 %v1314_v25, %v6024_v53  ;;  %v1628_v45 = vrot.slane %v6089_v37, 4  ;;  %v6169_v41 = vpop.f32.mrf.mxu0 }
 0x25c   : > { %v1408_v8 = vsel %vm1363_vm4, %v1406_v43, %v1407_v5  ;;  %v1669_v30 = vadd.f32 %v1611_v16, %v1564_v18  ;;  %v1419_v39 = vsel %vm1363_vm4, %v1416_v61, %v1418_v24  ;;  %v7222_v22 = vrot.slane %v5883_v14, 3 }
 0x25d   : > { %v1462_v29 = vadd.f32 %v1408_v8, %v1357_v55  ;;  %v1775_v49 = vadd.f32 %v1718_v32, %v1670_v17  ;;  %v7223_v38 = vrot.slane %v5883_v14, 4  ;;  %v1461_v43 = vadd.f32 %v5916_v7, %v5921_v58 }
 0x25e   : > { %v1513_v15 = vsel %vm1468_vm5, %v7222_v22, %v1512_v21  ;;  %v7224_v42 = vrot.slane %v5862_v19, 3  ;;  %v1774_v16 = vadd.f32 %v1716_v6, %v1669_v30  ;;  %v7225_v32 = vrot.slane %v5883_v14, 5 }
 0x25f   : > { %v1618_v59 = vsel %vm1573_vm6, %v7223_v38, %v1617_v11  ;;  %v1567_v0 = vadd.f32 %v1513_v15, %v1462_v29  ;;  %v7226_v25 = vrot.slane %v5862_v19, 4  ;;  %2524 = vperm.xlu0 %4351, %v1775_v49   ;;  %v7228_v55 = vrot.slane %v5832_v33, 5 }
 0x260   : > { %v1510_v24 = vsel %vm1468_vm5, %v1507_v23, %v7224_v42  ;;  %v1723_v18 = vsel %vm1678_vm7, %v7225_v32, %v1722_v57  ;;  %v7227_v23 = vrot.slane %v5862_v19, 5  ;;  %v1464_v17 = vadd.f32 %v6022_v63, %v6017_v60  ;;  %2519 = vperm.xlu1 %4350, %v1774_v16  }
 0x261   : > { %v1615_v7 = vsel %vm1573_vm6, %v1612_v40, %v7226_v25  ;;  %v1566_v58 = vadd.f32 %v1510_v24, %v1461_v43  ;;  %v1517_v14 = vsel %vm1468_vm5, %v1514_v2, %v1516_v20  ;;  %v1672_v8 = vadd.f32 %v1618_v59, %v1567_v0 }
 0x262   : > { %v1720_v6 = vsel %vm1678_vm7, %v7228_v55, %v7227_v23  ;;  %v1622_v19 = vsel %vm1573_vm6, %v1619_v28, %v1621_v26  ;;  %v1358_v33 = vadd.f32 %v5997_v51, %v5911_v12  ;;  %v1410_v40 = vsel %vm1363_vm4, %v1407_v5, %v1409_v46  ;;  %v6215_v26 = vpop.f32.mrf.mxu0 }
 0x263   : > { %v1671_v60 = vadd.f32 %v1615_v7, %v1566_v58  ;;  %v1569_v63 = vadd.f32 %v1517_v14, %v1464_v17  ;;  %v1727_v20 = vsel %vm1678_vm7, %v1724_v13, %v1726_v44  ;;  %v1515_v51 = vsel %vm1468_vm5, %v1512_v21, %v1514_v2 }
 0x264   : > { %v1777_v30 = vadd.f32 %v1723_v18, %v1672_v8  ;;  %v1463_v29 = vadd.f32 %v1410_v40, %v1358_v33  ;;  %v1620_v5 = vsel %vm1573_vm6, %v1617_v11, %v1619_v28  ;;  %v1417_v1 = vsel %vm1363_vm4, %v1414_v10, %v1416_v61  ;;  %v6232_v2 = vpop.f32.mrf.mxu0  ;;  %v2912_v33 = vld [vmem:[%s7126_s4 + $0x78] sm:$0xff] }
 0x265   : > { %v1776_v46 = vadd.f32 %v1720_v6, %v1671_v60  ;;  %v1674_v44 = vadd.f32 %v1622_v19, %v1569_v63  ;;  %v1466_v22 = vadd.f32 %v1417_v1, %v1361_v50  ;;  %v1522_v21 = vsel %vm1468_vm5, %v1519_v3, %v1521_v48  ;;  %v2911_v63 = vld [vmem:[%s7126_s4 + $0x70] sm:$0xff] }
 0x266   : > { %2534 = vperm.xlu0 %4351, %v1777_v30   ;;  %v1568_v15 = vadd.f32 %v1515_v51, %v1463_v29  ;;  %v1725_v11 = vsel %vm1678_vm7, %v1722_v57, %v1724_v13  ;;  %v1627_v28 = vsel %vm1573_vm6, %v1624_v35, %v1626_v36  ;;  %v1360_v61 = vadd.f32 %v6094_v62, %v5981_v4 }
 0x267   : > { %2529 = vperm.xlu1 %4350, %v1776_v46   ;;  %v1779_v50 = vadd.f32 %v1727_v20, %v1674_v44  ;;  %v1571_v49 = vadd.f32 %v1522_v21, %v1466_v22  ;;  %v1415_v12 = vsel %vm1363_vm4, %v1413_v56, %v1414_v10  ;;  %v1520_v57 = vsel %vm1468_vm5, %v1518_v52, %v1519_v3  ;;  %v6270_v3 = vpop.f32.mrf.mxu0  ;;  %v2909_v22 = vld [vmem:[%s7126_s4 + $0x60] sm:$0xff] }
 0x268   : > { %v1733_v54 = vrot.slane %v6089_v37, 5  ;;  %v1673_v13 = vadd.f32 %v1620_v5, %v1568_v15  ;;  %v7229_v62 = vrot.slane %v6024_v53, 5  ;;  %v7230_v38 = vrot.slane %v6048_v47, 5  ;;  %v6287_v47 = vpop.f32.mrf.mxu1  ;;  %v2910_v5 = vld [vmem:[%s7126_s4 + $0x68] sm:$0xff] }
 0x269   : > { %v1465_v43 = vadd.f32 %v1415_v12, %v1360_v61  ;;  %v1676_v42 = vadd.f32 %v1627_v28, %v1571_v49  ;;  %v7231_v56 = vrot.slane %v5981_v4, 4  ;;  %v1467_v24 = vadd.f32 %v1419_v39, %v1362_v34  ;;  %v6283_v58 = vpop.f32.mrf.mxu0  ;;  %v2908_v28 = vld [vmem:[%s7126_s4 + $0x58] sm:$0xff]  ;;  %v2907_v12 = vld [vmem:[%s7126_s4 + $0x50] sm:$0xff] }
 0x26a   : > { %v1732_v59 = vsel %vm1678_vm7, %v7230_v38, %v7229_v62  ;;  %v1524_v52 = vsel %vm1468_vm5, %v1521_v48, %v1523_v27  ;;  %2544 = vperm.xlu0 %4351, %v1779_v50   ;;  %v1778_v37 = vadd.f32 %v1725_v11, %v1673_v13  ;;  %v1629_v0 = vsel %vm1573_vm6, %v1626_v36, %v1628_v45  ;;  %v6291_v55 = vpop.f32.mrf.mxu1 }
 0x26b   : > { %v1625_v10 = vsel %vm1573_vm6, %v7231_v56, %v1624_v35  ;;  %v1570_v16 = vadd.f32 %v1520_v57, %v1465_v43  ;;  %v1781_v32 = vadd.f32 %v1732_v59, %v1676_v42  ;;  %v7232_v18 = vmov %v7230_v38  ;;  %v6285_v45 = vpop.f32.mrf.mxu0  ;;  %v2905_v56 = vld [vmem:[%s7126_s4 + $0x40] sm:$0xff] }
 0x26c   : > { %v7233_v25 = vrot.slane %v5981_v4, 5  ;;  %v1572_v34 = vadd.f32 %v1524_v52, %v1467_v24  ;;  %2539 = vperm.xlu1 %4350, %v1778_v37   ;;  %v7234_v27 = vmov %v7229_v62  ;;  %v6295_v53 = vpop.f32.mrf.mxu1  ;;  %v6310_v60 = vand.u32 4294901760, %v2912_v33  ;;  %v2906_v62 = vld [vmem:[%s7126_s4 + $0x48] sm:$0xff]  ;;  %v2904_v37 = vld [vmem:[%s7126_s4 + $0x38] sm:$0xff] }
 0x26d   : > { %v1675_v39 = vadd.f32 %v1625_v10, %v1570_v16  ;;  %v1734_v7 = vsel %vm1678_vm7, %v7234_v27, %v1733_v54  ;;  %v6289_v4 = vpop.f32.mrf.mxu0  ;;  %v6316_v20 = vand.u32 4294901760, %v2911_v63  ;;  %v7237_v29 = vmov 0.0   ;;  %v2903_v16 = vld [vmem:[%s7126_s4 + $0x30] sm:$0xff] }
 0x26e   : > { %v1730_v35 = vsel %vm1678_vm7, %v7233_v25, %v7232_v18  ;;  %v1677_v48 = vadd.f32 %v1629_v0, %v1572_v34  ;;  %2554 = vperm.xlu0 %4351, %v1781_v32   ;;  %v6299_v14 = vpop.f32.mrf.mxu1  ;;  %7235 = vst [vmem:[#allocation10_spill] sm:$0xff] %v6310_v60  ;;  %4068 = vmatpush3.msra.mxu1 %v6310_v60  ;;  %v6330_v46 = vand.u32 4294901760, %v2910_v5  ;;  %v6342_v21 = vand.u32 4294901760, %v2909_v22  ;;  %v2902_v0 = vld [vmem:[%s7126_s4 + $0x28] sm:$0xff]  ;;  %v2901_v34 = vld [vmem:[%s7126_s4 + $0x20] sm:$0xff] }
 0x26f   : > { %v1780_v23 = vadd.f32 %v1730_v35, %v1675_v39  ;;  %v6293_v6 = vpop.f32.mrf.mxu0  ;;  %7236 = vst [vmem:[#allocation11_spill] sm:$0xff] %v6316_v20  ;;  %v6319_v51 = vsub.f32 %v2912_v33, %v6310_v60  ;;  %4069 = vmatprep.subr.mxu1 %v7237_v29  ;;  %v6334_v44 = vsub.f32 %v2911_v63, %v6316_v20  ;;  %v6358_v50 = vand.u32 4294901760, %v2908_v28  ;;  %v2899_v33 = vld [vmem:[%s7126_s4 + $0x10] sm:$0xff] }
 0x270   : > { %v1782_v36 = vadd.f32 %v1734_v7, %v1677_v48  ;;  %v6303_v19 = vpop.f32.mrf.mxu1  ;;  %4070 = vmatpush3.msra.mxu1 %v6316_v20  ;;  %7238 = vst [vmem:[#allocation12_spill] sm:$0xff] %v6330_v46  ;;  %7239 = vst [vmem:[#allocation13_spill] sm:$0xff] %v6342_v21  ;;  %v6346_v15 = vsub.f32 %v2910_v5, %v6330_v46  ;;  %v6362_v49 = vsub.f32 %v2909_v22, %v6342_v21  ;;  %v2900_v48 = vld [vmem:[%s7126_s4 + $0x18] sm:$0xff]  ;;  %v2617_v20 = vlaneseq }
 0x271   : > { %2549 = vperm.xlu1 %4350, %v1780_v23   ;;  %v6297_v17 = vpop.f32.mrf.mxu0  ;;  %4138 = vmatpush3.msra.mxu0 %v6319_v51  ;;  %7240 = vst [vmem:[#allocation14_spill] sm:$0xff] %v6358_v50  ;;  %v6370_v57 = vand.u32 4294901760, %v2907_v12  ;;  %v6374_v54 = vsub.f32 %v2908_v28, %v6358_v50  ;;  %v6386_v59 = vand.u32 4294901760, %v2906_v62  ;;  %v6403_v24 = vand.u32 4294901760, %v2905_v56  ;;  %v2898_v28 = vld [vmem:[%s7126_s4 + $0x8] sm:$0xff] }
 0x272   : > { %v6321_v30 = vpop.f32.mrf.mxu1  ;;  %4071 = vmatprep.subr.mxu1 %v7237_v29  ;;  %4139 = vmatprep.subr.mxu0 %v7237_v29  ;;  %v6421_v32 = vand.u32 4294901760, %v2904_v37  ;;  %v6426_v25 = vand.u32 4294901760, %v2903_v16  ;;  %v6428_v35 = vand.u32 4294901760, %v2902_v0  ;;  %v6462_v5 = vand.u32 4294901760, %v2900_v48 }
 0x273   : > { %v6301_v8 = vpop.f32.mrf.mxu0  ;;  %4072 = vmatpush3.msra.mxu1 %v6330_v46  ;;  %4140 = vmatpush3.msra.mxu0 %v6334_v44  ;;  %7241 = vst [vmem:[#allocation15_spill] sm:$0xff] %v6370_v57  ;;  %7242 = vst [vmem:[#allocation16_spill] sm:$0xff] %v6386_v59  ;;  %v6390_v43 = vsub.f32 %v2907_v12, %v6370_v57  ;;  %v6406_v52 = vsub.f32 %v2906_v62, %v6386_v59  ;;  %vm2853_vm5 = vcmask 1043459  }
 0x274   : > { %v6348_v11 = vpop.f32.mrf.mxu1  ;;  %4073 = vmatprep.subr.mxu1 %v7237_v29  ;;  %4141 = vmatprep.subr.mxu0 %v7237_v29  ;;  %7243 = vst [vmem:[#allocation17_spill] sm:$0xff] %v6403_v24  ;;  %7245 = vst [vmem:[#allocation19_spill] sm:$0xff] %v6421_v32  ;;  %v6424_v18 = vsub.f32 %v2905_v56, %v6403_v24  ;;  %v6445_v7 = vsub.f32 %v2904_v37, %v6421_v32  ;;  %v6478_v56 = vand.u32 4294901760, %v2899_v33  ;;  %v2897_v37 = vld [vmem:[%s7126_s4] sm:$0xff] }
 0x275   : > { %2559 = vperm.xlu1 %4350, %v1782_v36   ;;  %v6308_v40 = vpop.f32.mrf.mxu0  ;;  %4074 = vmatpush3.msra.mxu1 %v6342_v21  ;;  %7244 = vst [vmem:[#allocation18_spill] sm:$0xff] %v6406_v52  ;;  %7247 = vst [vmem:[#allocation21_spill] sm:$0xff] %v6426_v25  ;;  %v6448_v23 = vsub.f32 %v2903_v16, %v6426_v25  ;;  %v6450_v36 = vand.u32 4294901760, %v2901_v34  ;;  %v6460_v63 = vsub.f32 %v2902_v0, %v6428_v35 }
 0x276   : > { %4142 = vmatpush3.msra.mxu0 %v6346_v15  ;;  %4075 = vmatprep.subr.mxu1 %v7237_v29  ;;  %v6376_v13 = vpop.f32.mrf.mxu1  ;;  %7246 = vst [vmem:[#allocation20_spill] sm:$0xff] %v6424_v18  ;;  %7248 = vst [vmem:[#allocation22_spill] sm:$0xff] %v6428_v35  ;;  %v6488_v16 = vsub.f32 %v2900_v48, %v6462_v5  ;;  %v6490_v0 = vand.u32 4294901760, %v2898_v28  ;;  %v6505_v48 = vand.u32 4294901760, %v2897_v37 }
 0x277   : > { %v6327_v1 = vpop.f32.mrf.mxu0  ;;  %4143 = vmatprep.subr.mxu0 %v7237_v29  ;;  %4076 = vmatpush3.msra.mxu1 %v6358_v50  ;;  %7249 = vst [vmem:[#allocation23_spill] sm:$0xff] %v6445_v7  ;;  %7250 = vst [vmem:[#allocation24_spill] sm:$0xff] %v6448_v23  ;;  %v6476_v62 = vsub.f32 %v2901_v34, %v6450_v36 }
 0x278   : > { %4144 = vmatpush3.msra.mxu0 %v6362_v49  ;;  %4077 = vmatprep.subr.mxu1 %v7237_v29  ;;  %v6392_v42 = vpop.f32.mrf.mxu1  ;;  %7251 = vst [vmem:[#allocation25_spill] sm:$0xff] %v6450_v36  ;;  %7252 = vst [vmem:[#allocation26_spill] sm:$0xff] %v6460_v63 }
 0x279   : > { %v6355_v61 = vpop.f32.mrf.mxu0  ;;  %4145 = vmatprep.subr.mxu0 %v7237_v29  ;;  %4078 = vmatpush3.msra.mxu1 %v6370_v57  ;;  %7253 = vst [vmem:[#allocation27_spill] sm:$0xff] %v6462_v5  ;;  %7254 = vst [vmem:[#allocation28_spill] sm:$0xff] %v6476_v62 }
 0x27a   : > { %4146 = vmatpush3.msra.mxu0 %v6374_v54  ;;  %4079 = vmatprep.subr.mxu1 %v7237_v29  ;;  %v6433_v39 = vpop.f32.mrf.mxu1  ;;  %7255 = vst [vmem:[#allocation29_spill] sm:$0xff] %v6478_v56  ;;  %7256 = vst [vmem:[#allocation30_spill] sm:$0xff] %v6488_v16 }
 0x27b   : > { %v6383_v38 = vpop.f32.mrf.mxu0  ;;  %4147 = vmatprep.subr.mxu0 %v7237_v29  ;;  %4080 = vmatpush3.msra.mxu1 %v6386_v59  ;;  %7257 = vst [vmem:[#allocation31_spill] sm:$0xff] %v6490_v0  ;;  %7259 = vst [vmem:[#allocation33_spill] sm:$0xff] %v6505_v48  ;;  %v6515_v59 = vsub.f32 %v2898_v28, %v6490_v0 }
 0x27c   : > { %4148 = vmatpush3.msra.mxu0 %v6390_v43  ;;  %4081 = vmatprep.subr.mxu1 %v7237_v29  ;;  %v6464_v22 = vpop.f32.mrf.mxu1 }
 0x27d   : > { %v6399_v10 = vpop.f32.mrf.mxu0  ;;  %4149 = vmatprep.subr.mxu0 %v7237_v29  ;;  %4082 = vmatpush3.msra.mxu1 %v6403_v24  ;;  %7260 = vst [vmem:[#allocation34_spill] sm:$0xff] %v6515_v59 }
 0x27e   : > { %4150 = vmatpush3.msra.mxu0 %v6406_v52  ;;  %4083 = vmatprep.subr.mxu1 %v7237_v29  ;;  %v6492_v34 = vpop.f32.mrf.mxu1 }
 0x27f   : > { %4151 = vmatprep.subr.mxu0 %v7237_v29  ;;  %v6440_v27 = vpop.f32.mrf.mxu0  ;;  %4084 = vmatpush3.msra.mxu1 %v6421_v32 }
 0x280   : > { %4152 = vmatpush3.msra.mxu0 %v6424_v18  ;;  %4085 = vmatprep.subr.mxu1 %v7237_v29  ;;  %v6507_v32 = vpop.f32.mrf.mxu1 }
 0x281   : > { %4153 = vmatprep.subr.mxu0 %v7237_v29  ;;  %4086 = vmatpush3.msra.mxu1 %v6426_v25  ;;  %v6471_v12 = vpop.f32.mrf.mxu0 }
 0x282   : > { %4154 = vmatpush3.msra.mxu0 %v6445_v7  ;;  %4087 = vmatprep.subr.mxu1 %v7237_v29  ;;  %v6528_v57 = vpop.f32.mrf.mxu1 }
 0x283   : > { %4155 = vmatprep.subr.mxu0 %v7237_v29  ;;  %4088 = vmatpush3.msra.mxu1 %v6428_v35  ;;  %v6498_v25 = vpop.f32.mrf.mxu0 }
 0x284   : > { %4156 = vmatpush3.msra.mxu0 %v6448_v23  ;;  %4089 = vmatprep.subr.mxu1 %v7237_v29  ;;  %v6547_v50 = vpop.f32.mrf.mxu1  ;;  %v2126_v23 = vadd.f32 %v6299_v14, %v6215_v26  ;;  %v6573_v26 = vld [vmem:[%s7125_s3] ss:$0 sm:$0xff] }
 0x285   : > { %4157 = vmatprep.subr.mxu0 %v7237_v29  ;;  %4090 = vmatpush3.msra.mxu1 %v6450_v36  ;;  %v6503_v36 = vsub.f32 %v2899_v33, %v6478_v56 }
 0x286   : > { %4158 = vmatpush3.msra.mxu0 %v6460_v63  ;;  %4091 = vmatprep.subr.mxu1 %v7237_v29 }
 0x287   : > { %4159 = vmatprep.subr.mxu0 %v7237_v29  ;;  %4092 = vmatpush3.msra.mxu1 %v6462_v5  ;;  %7258 = vst [vmem:[#allocation32_spill] sm:$0xff] %v6503_v36  ;;  %v6524_v5 = vsub.f32 %v2897_v37, %v6505_v48 }
 0x288   : > { %4160 = vmatpush3.msra.mxu0 %v6476_v62  ;;  %4093 = vmatprep.subr.mxu1 %v7237_v29  ;;  %v6557_v62 = vshrl.u32 %v2617_v20, 7 }
 0x289   : > { %4161 = vmatprep.subr.mxu0 %v7237_v29  ;;  %4094 = vmatpush3.msra.mxu1 %v6478_v56  ;;  %7261 = vst [vmem:[#allocation35_spill] sm:$0xff] %v6524_v5 }
 0x28a   : > { %4162 = vmatpush3.msra.mxu0 %v6488_v16  ;;  %4095 = vmatprep.subr.mxu1 %v7237_v29 }
 0x28b   : > { %4163 = vmatprep.subr.mxu0 %v7237_v29  ;;  %4169 = vmatprep.mubr.msk.f32.mxu0 %vm4513_vm8, %v7237_v29 }
 0x28c   : > { %4164 = vmatpush3.msra.mxu0 %v6503_v36  ;;  %4096 = vmatpush3.msra.mxu1 %v6490_v0  ;;  %v2131_v0 = vadd.f32 %v6287_v47, %v6091_v31  ;;  %v6555_v36 = vpop.f32.mrf.mxu1 }
 0x28d   : > { %4165 = vmatprep.subr.mxu0 %v7237_v29  ;;  %4097 = vmatprep.subr.mxu1 %v7237_v29 }
 0x28e   : > { %4166 = vmatpush3.msra.mxu0 %v6515_v59  ;;  %4098 = vmatpush3.msra.mxu1 %v6505_v48  ;;  %v2123_v48 = vadd.f32 %v6291_v55, %v6136_v9  ;;  %v2134_v59 = vadd.f32 %v6295_v53, %v6169_v41  ;;  %v6561_v7 = vpop.f32.mrf.mxu1  ;;  %v6564_v41 = vadd.s32 16, %v6557_v62 }
 0x28f   : > { %4167 = vmatprep.subr.mxu0 %v7237_v29  ;;  %4099 = vmatprep.mubr.msk.f32.mxu1 %vm4513_vm8, %v7237_v29 }
 0x290   : > { %4168 = vmatpush3.msra.mxu0 %v6524_v5  ;;  %4102 = vmatprep.subr.mxu1 %v7237_v29  ;;  %v6568_v20 = vpop.f32.mrf.mxu1  ;;  %vm2623_vm9 = vcmp.lt.s32.totalorder %v6564_v41, 19 }
 0x291   : > { %4207 = vmatprep.subr.mxu0 %v7237_v29 }
 0x297   : > { %v6494_v35 = vpop.permute.xlu1 %2444 }
 0x29f   : > { %v6511_v24 = vpop.f32.mrf.mxu0 }
 0x2a0   : > { %v6530_v28 = vpop.permute.xlu1 %2459 }
 0x2a1   : > { %v6520_v33 = vpop.f32.mrf.mxu0 }
 0x2a3   : > { %v6534_v56 = vpop.f32.mrf.mxu0 }
 0x2a5   : > { %v6540_v37 = vpop.f32.mrf.mxu0  ;;  %v2465_v21 = vpop.permute.xlu1 %2464 }
 0x2a7   : > { %v4045_v46 = vpop.f32.mrf.mxu0 }
 0x2a8   : > { %v2396_v60 = vadd.f32 %v4045_v46, %v2131_v0 }
 0x2a9   : > { %v2299_v5 = vpop.f32.mrf.mxu0  ;;  %v2455_v47 = vpop.permute.xlu1 %2454 }
 0x2aa   : > { %v2394_v31 = vadd.f32 %v2299_v5, %v2123_v48  ;;  %v2420_v16 = vmul.f32 2.0, %v2396_v60  ;;  %v2139_v60 = vadd.f32 %v6321_v30, %v6270_v3  ;;  %v2150_v3 = vadd.f32 %v6348_v11, %v6283_v58  ;;  %v4022_v11 = vpop.f32.mrf.mxu1 }
 0x2ab   : > { %v4046_v63 = vpop.f32.mrf.mxu0 }
 0x2ac   : > { %v2418_v18 = vmul.f32 2.0, %v2394_v31  ;;  %v2397_v9 = vadd.f32 %v4046_v63, %v2134_v59  ;;  %v2564_v0 = vsub.f32 %v2455_v47, %v2420_v16  ;;  %v2147_v63 = vadd.f32 %v6303_v19, %v6232_v2  ;;  %v2450_v16 = vpop.permute.xlu0 %2449 }
 0x2ad   : > { %v2302_v55 = vpop.f32.mrf.mxu0  ;;  %v2470_v5 = vpop.permute.xlu1 %2469  ;;  %v2142_v47 = vadd.f32 %v6376_v13, %v6285_v45 }
 0x2ae   : > { %v2395_v46 = vadd.f32 %v2302_v55, %v2126_v23  ;;  %v2562_v14 = vsub.f32 %v6494_v35, %v2418_v18  ;;  %v2421_v59 = vmul.f32 2.0, %v2397_v9  ;;  %v2595_v55 = vadd.f32 %v6573_v26, %v2564_v0 }
 0x2af   : > { %v4049_v53 = vpop.f32.mrf.mxu0 }
 0x2b0   : > { %v2419_v23 = vmul.f32 2.0, %v2395_v46  ;;  %v2400_v18 = vadd.f32 %v4049_v53, %v2147_v63  ;;  %v6585_v9 = vadd.f32 %v6573_v26, %v2562_v14  ;;  %v2565_v2 = vsub.f32 %v6530_v28, %v2421_v59 }
 0x2b1   : > { %v2315_v48 = vpop.f32.mrf.mxu0  ;;  %v6595_v53 = vsel %vm2623_vm9, %v2595_v55, inf }
 0x2b2   : > { %v2563_v30 = vsub.f32 %v2450_v16, %v2419_v23  ;;  %v2398_v31 = vadd.f32 %v2315_v48, %v2139_v60  ;;  %v2475_v23 = vpop.permute.xlu1 %2474  ;;  %v2424_v14 = vmul.f32 2.0, %v2400_v18  ;;  %v6598_v28 = vadd.f32 %v6573_v26, %v2565_v2 }
 0x2b3   : > { %v4050_v35 = vpop.f32.mrf.mxu0  ;;  %v2166_v2 = vadd.f32 %v6464_v22, %v6297_v17 }
 0x2b4   : > { %v6589_v19 = vadd.f32 %v6573_v26, %v2563_v30  ;;  %v2422_v58 = vmul.f32 2.0, %v2398_v31  ;;  %v2401_v46 = vadd.f32 %v4050_v35, %v2150_v3  ;;  %v2155_v3 = vadd.f32 %v6433_v39, %v6293_v6 }
 0x2b5   : > { %v2318_v60 = vpop.f32.mrf.mxu0  ;;  %v2163_v35 = vadd.f32 %v6392_v42, %v6289_v4  ;;  %v2158_v6 = vadd.f32 %v6492_v34, %v6301_v8  ;;  %v2619_v39 = vadd.s32 8, %v6557_v62  ;;  %v2171_v4 = vadd.f32 %v6528_v57, %v6327_v1 }
 0x2b6   : > { %v2654_v45 = vmin.f32 %v6585_v9, %v6589_v19  ;;  %v2566_v13 = vsub.f32 %v2465_v21, %v2422_v58  ;;  %v2399_v0 = vadd.f32 %v2318_v60, %v2142_v47  ;;  %v2189_v21 = vpop.f32.mrf.mxu1  ;;  %v2425_v30 = vmul.f32 2.0, %v2401_v46 }
 0x2b7   : > { %v4053_v63 = vpop.f32.mrf.mxu0  ;;  %v2568_v60 = vsub.f32 %v2475_v23, %v2424_v14  ;;  %v2480_v46 = vpop.permute.xlu1 %2479  ;;  %v6624_v23 = vadd.f32 %v6547_v50, %v6355_v61 }
 0x2b8   : > { %v2655_v59 = vmin.f32 %v2654_v45, %v6595_v53  ;;  %v6602_v16 = vadd.f32 %v6573_v26, %v2566_v13  ;;  %v2423_v48 = vmul.f32 2.0, %v2399_v0  ;;  %v4025_v58 = vpop.f32.mrf.mxu1  ;;  %v2569_v17 = vsub.f32 %v2480_v46, %v2425_v30 }
 0x2b9   : > { %v2331_v31 = vpop.f32.mrf.mxu0  ;;  %v2404_v14 = vadd.f32 %v4053_v63, %v2163_v35  ;;  %v6635_v1 = vadd.f32 %v6573_v26, %v2568_v60  ;;  %v6648_v63 = vcvt.s32.f32 %v2619_v39  ;;  %v6663_v35 = vadd.f32 %v2189_v21, %v6498_v25 }
 0x2ba   : > { %v2656_v47 = vrot.slane %v2655_v59, 4  ;;  %v2662_v55 = vmin.f32 %v6598_v28, %v6602_v16  ;;  %v2567_v18 = vsub.f32 %v2470_v5, %v2423_v48  ;;  %v2402_v45 = vadd.f32 %v2331_v31, %v2155_v3 }
 0x2bb   : > { %v4054_v13 = vpop.f32.mrf.mxu0  ;;  %v6618_v5 = vadd.f32 %v6507_v32, %v6308_v40  ;;  %v6632_v40 = vadd.f32 %v6555_v36, %v6383_v38  ;;  %v2202_v32 = vpop.f32.mrf.mxu1  ;;  %v6638_v57 = vadd.f32 %v6573_v26, %v2569_v17  ;;  %v6667_v46 = vadd.f32 %v4025_v58, %v6511_v24 }
 0x2bc   : > { %v2657_v0 = vmin.f32 %v2655_v59, %v2656_v47  ;;  %v2598_v52 = vadd.f32 %v6573_v26, %v2567_v18  ;;  %v2426_v42 = vmul.f32 2.0, %v2402_v45  ;;  %v6643_v59 = vadd.f32 %v6561_v7, %v6399_v10  ;;  %v2485_v36 = vpop.permute.xlu1 %2484  ;;  %v2495_v17 = vpop.permute.xlu0 %2494 }
 0x2bd   : > { %v2334_v22 = vpop.f32.mrf.mxu0  ;;  %v2670_v48 = vmin.f32 %v6635_v1, %v6638_v57  ;;  %v6657_v10 = vcvt.s32.f32 %v6564_v41  ;;  %v6660_v18 = vadd.f32 %v4022_v11, %v6471_v12  ;;  %v4026_v60 = vpop.f32.mrf.mxu1 }
 0x2be   : > { %v2658_v8 = vrot.slane %v2657_v0, 2  ;;  %v6628_v34 = vsel %vm2623_vm9, %v2598_v52, inf  ;;  %v6646_v52 = vcvt.s32.f32 %v6557_v62  ;;  %v2570_v30 = vsub.f32 %v2485_v36, %v2426_v42 }
 0x2bf   : > { %v2663_v61 = vmin.f32 %v2662_v55, %v6628_v34  ;;  %v4057_v50 = vpop.f32.mrf.mxu0  ;;  %v2403_v31 = vadd.f32 %v2334_v22, %v2158_v6  ;;  %v6654_v55 = vadd.f32 %v6568_v20, %v6440_v27  ;;  %v2428_v62 = vmul.f32 2.0, %v2404_v14 }
 0x2c0   : > { %v2659_v38 = vmin.f32 %v2657_v0, %v2658_v8  ;;  %v2601_v6 = vadd.f32 %v6573_v26, %v2570_v30  ;;  %v6670_v27 = vadd.f32 %v2202_v32, %v6520_v33  ;;  %v2405_v0 = vadd.f32 %v4054_v13, %v2166_v2  ;;  %v2205_v33 = vpop.f32.mrf.mxu1 }
 0x2c1   : > { %v2664_v3 = vrot.slane %v2663_v61, 4  ;;  %v2347_v47 = vpop.f32.mrf.mxu0  ;;  %v2427_v11 = vmul.f32 2.0, %v2403_v31  ;;  %v2572_v24 = vsub.f32 %v2495_v17, %v2428_v62  ;;  %v6688_v8 = vadd.f32 %v4026_v60, %v6534_v56 }
 0x2c2   : > { %v2660_v7 = vrot.slane %v2659_v38, 1  ;;  %v6676_v25 = vsel %vm2623_vm9, %v2601_v6, inf  ;;  %v2406_v21 = vadd.f32 %v2347_v47, %v2171_v4  ;;  %v2408_v47 = vadd.f32 %v4057_v50, %v6618_v5 }
 0x2c3   : > { %v2665_v45 = vmin.f32 %v2663_v61, %v2664_v3  ;;  %v4058_v39 = vpop.f32.mrf.mxu0  ;;  %v2490_v14 = vpop.permute.xlu1 %2489 }
 0x2c4   : > { %v6672_v20 = vmin.f32 %v2659_v38, %v2660_v7  ;;  %v2429_v38 = vmul.f32 2.0, %v2405_v0  ;;  %v2571_v36 = vsub.f32 %v2490_v14, %v2427_v11  ;;  %v2430_v7 = vmul.f32 2.0, %v2406_v21 }
 0x2c5   : > { %v2666_v12 = vrot.slane %v2665_v45, 2  ;;  %v2350_v42 = vpop.f32.mrf.mxu0  ;;  %v2409_v62 = vadd.f32 %v4058_v39, %v6624_v23 }
 0x2c6   : > { %vm2721_vm10 = vcmp.eq.f32.partialorder %v6585_v9, %v6672_v20  ;;  %vm2722_vm11 = vcmp.eq.f32.partialorder %v6589_v19, %v6672_v20  ;;  %vm2723_vm12 = vcmp.eq.f32.partialorder %v6595_v53, %v6672_v20  ;;  %v2873_v13 = vadd.f32 1e-05, %v6672_v20 }
 0x2c7   : > { %v2745_v2 = vsel %vm2721_vm10, %v6646_v52, 24.0  ;;  %v2746_v58 = vsel %vm2722_vm11, %v6648_v63, 24.0  ;;  %v2667_v22 = vmin.f32 %v2665_v45, %v2666_v12  ;;  %v4061_v4 = vpop.f32.mrf.mxu0  ;;  %v6691_v9 = vadd.f32 %v2205_v33, %v6540_v37  ;;  %v2500_v17 = vpop.permute.xlu1 %2499 }
 0x2c8   : > { %v2769_v19 = vmin.f32 %v2745_v2, %v2746_v58  ;;  %v2671_v53 = vmin.f32 %v2670_v48, %v6676_v25  ;;  %v2747_v32 = vsel %vm2723_vm12, %v6657_v10, 24.0  ;;  %4368 = vlog2.f32 %v2873_v13  ;;  %v2505_v11 = vpop.permute.xlu0 %2504 }
 0x2c9   : > { %v2668_v61 = vrot.slane %v2667_v22, 1  ;;  %v2363_v3 = vpop.f32.mrf.mxu0  ;;  %v6699_v37 = vadd.f32 %v6573_v26, %v2572_v24  ;;  %v6703_v6 = vadd.f32 %v6573_v26, %v2571_v36  ;;  %v2407_v0 = vadd.f32 %v2350_v42, %v6632_v40 }
 0x2ca   : > { %v2770_v30 = vmin.f32 %v2769_v19, %v2747_v32  ;;  %v2672_v31 = vrot.slane %v2671_v53, 4  ;;  %v2412_v12 = vadd.f32 %v4061_v4, %v6643_v59  ;;  %v2573_v42 = vsub.f32 %v2500_v17, %v2429_v38 }
 0x2cb   : > { %v6696_v56 = vmin.f32 %v2667_v22, %v2668_v61  ;;  %v4062_v48 = vpop.f32.mrf.mxu0  ;;  %v2410_v33 = vadd.f32 %v2363_v3, %v6654_v55  ;;  %v2432_v19 = vmul.f32 2.0, %v2408_v47  ;;  %v2574_v14 = vsub.f32 %v2505_v11, %v2430_v7 }
 0x2cc   : > { %v2771_v60 = vrot.slane %v2770_v30, 4  ;;  %v2673_v45 = vmin.f32 %v2671_v53, %v2672_v31  ;;  %v2604_v13 = vadd.f32 %v6573_v26, %v2573_v42  ;;  %v2413_v59 = vadd.f32 %v4062_v48, %v6660_v18 }
 0x2cd   : > { %vm2724_vm13 = vcmp.eq.f32.partialorder %v6598_v28, %v6696_v56  ;;  %vm2725_vm14 = vcmp.eq.f32.partialorder %v6602_v16, %v6696_v56  ;;  %vm2726_vm15 = vcmp.eq.f32.partialorder %v6628_v34, %v6696_v56  ;;  %v2874_v5 = vadd.f32 1e-05, %v6696_v56  ;;  %v2366_v40 = vpop.f32.mrf.mxu0 }
 0x2ce   : > { %v2772_v23 = vmin.f32 %v2770_v30, %v2771_v60  ;;  %v2748_v50 = vsel %vm2724_vm13, %v6646_v52, 24.0  ;;  %v2749_v39 = vsel %vm2725_vm14, %v6648_v63, 24.0  ;;  %v2674_v28 = vrot.slane %v2673_v45, 2 }
 0x2cf   : > { %v2777_v21 = vmin.f32 %v2748_v50, %v2749_v39  ;;  %4370 = vlog2.f32 %v2874_v5  ;;  %v2750_v24 = vsel %vm2726_vm15, %v6657_v10, 24.0  ;;  %v2678_v34 = vmin.f32 %v6703_v6, %v6699_v37  ;;  %v4065_v22 = vpop.f32.mrf.mxu0 }
 0x2d0   : > { %v2773_v16 = vrot.slane %v2772_v23, 2  ;;  %v2675_v58 = vmin.f32 %v2673_v45, %v2674_v28  ;;  %v6722_v53 = vmul.f32 2.0, %v2409_v62  ;;  %v6726_v38 = vsel %vm2623_vm9, %v2604_v13, inf  ;;  %v2515_v47 = vpop.permute.xlu0 %2514 }
 0x2d1   : > { %v2778_v2 = vmin.f32 %v2777_v21, %v2750_v24  ;;  %v2431_v36 = vmul.f32 2.0, %v2407_v0  ;;  %v2679_v3 = vmin.f32 %v2678_v34, %v6726_v38  ;;  %v6729_v30 = vmul.f32 2.0, %v2412_v12  ;;  %v2379_v60 = vpop.f32.mrf.mxu0 }
 0x2d2   : > { %v2774_v4 = vmin.f32 %v2772_v23, %v2773_v16  ;;  %v2676_v61 = vrot.slane %v2675_v58, 1  ;;  %v2411_v18 = vadd.f32 %v2366_v40, %v6663_v35  ;;  %v6732_v62 = vmul.f32 2.0, %v2410_v33  ;;  %v2510_v40 = vpop.permute.xlu1 %2509 }
 0x2d3   : > { %v2779_v32 = vrot.slane %v2778_v2, 4  ;;  %v6734_v48 = vmul.f32 2.0, %v2413_v59  ;;  %v2680_v45 = vrot.slane %v2679_v3, 4  ;;  %v2576_v5 = vsub.f32 %v2515_v47, %v2432_v19  ;;  %v4066_v16 = vpop.f32.mrf.mxu0 }
 0x2d4   : > { %v2775_v55 = vrot.slane %v2774_v4, 1  ;;  %v2677_v7 = vmin.f32 %v2675_v58, %v2676_v61  ;;  %v6737_v0 = vadd.f32 %v6573_v26, %v2574_v14  ;;  %v2416_v23 = vadd.f32 %v4065_v22, %v6667_v46 }
 0x2d5   : > { %v2780_v31 = vmin.f32 %v2778_v2, %v2779_v32  ;;  %v4369_v35 = vpop.eup %4368  ;;  %v6745_v11 = vmul.f32 2.0, %v2411_v18  ;;  %v2681_v46 = vmin.f32 %v2679_v3, %v2680_v45  ;;  %v2575_v24 = vsub.f32 %v2510_v40, %v2431_v36 }
 0x2d6   : > { %vm2727_vm3 = vcmp.eq.f32.partialorder %v6635_v1, %v2677_v7  ;;  %vm2728_vm1 = vcmp.eq.f32.partialorder %v6638_v57, %v2677_v7  ;;  %vm2729_vm4 = vcmp.eq.f32.partialorder %v6676_v25, %v2677_v7  ;;  %v2776_v39 = vmin.f32 %v2774_v4, %v2775_v55 }
 0x2d7   : > { %v2781_v50 = vrot.slane %v2780_v31, 2  ;;  %v2751_v17 = vsel %vm2727_vm3, %v6646_v52, 24.0  ;;  %v2752_v12 = vsel %vm2728_vm1, %v6648_v63, 24.0  ;;  %v2875_v42 = vadd.f32 1e-05, %v2677_v7 }
 0x2d8   : > { %v2785_v28 = vmin.f32 %v2751_v17, %v2752_v12  ;;  %v2753_v1 = vsel %vm2729_vm4, %v6657_v10, 24.0  ;;  %v2607_v57 = vadd.f32 %v6573_v26, %v2576_v5  ;;  %v6749_v25 = vmul.f32 2.0, %v2416_v23  ;;  %v2382_v5 = vpop.f32.mrf.mxu0 }
 0x2d9   : > { %v2782_v21 = vmin.f32 %v2780_v31, %v2781_v50  ;;  %4372 = vlog2.f32 %v2875_v42  ;;  %v2682_v2 = vrot.slane %v2681_v46, 2  ;;  %v4277_v13 = vtrunc.f32 %v2776_v39 }
 0x2da   : > { %v2786_v33 = vmin.f32 %v2785_v28, %v2753_v1  ;;  %v6752_v59 = vadd.f32 %v6573_v26, %v2575_v24  ;;  %v2414_v22 = vadd.f32 %v2379_v60, %v6670_v27  ;;  %v6756_v4 = vadd.f32 %v4066_v16, %v6688_v8  ;;  %v2525_v61 = vpop.permute.xlu0 %2524 }
 0x2db   : > { %v2783_v34 = vrot.slane %v2782_v21, 1  ;;  %v2683_v36 = vmin.f32 %v2681_v46, %v2682_v2  ;;  %v2520_v55 = vpop.permute.xlu1 %2519  ;;  %v2578_v18 = vsub.f32 %v2525_v61, %v6732_v62  ;;  %v2882_v31 = vmul.f32 0.6931472, %v4369_v35 }
 0x2dc   : > { %v4371_v58 = vpop.eup %4370  ;;  %v2787_v32 = vrot.slane %v2786_v33, 4  ;;  %v2686_v3 = vmin.f32 %v6737_v0, %v6752_v59  ;;  %v2850_v47 = vsel %vm2849_vm0, %v6696_v56, %v6672_v20  ;;  %v6766_v45 = vsel %vm2623_vm9, %v2607_v57, inf }
 0x2dd   : > { %v2784_v19 = vmin.f32 %v2782_v21, %v2783_v34  ;;  %v2884_v14 = vmul.f32 0.6931472, %v4371_v58  ;;  %v2684_v8 = vrot.slane %v2683_v36, 1  ;;  %v2577_v23 = vsub.f32 %v2520_v55, %v6722_v53 }
 0x2de   : > { %v2788_v60 = vmin.f32 %v2786_v33, %v2787_v32  ;;  %v2687_v50 = vmin.f32 %v2686_v3, %v6766_v45  ;;  %v2852_v62 = vsel %vm2851_vm2, %v2677_v7, %v2850_v47  ;;  %v4278_v35 = vcvt.f32.s32 %v4277_v13 }
 0x2df   : > { %v4279_v27 = vtrunc.f32 %v2784_v19  ;;  %v2928_v39 = vsel %vm2849_vm0, %v2884_v14, %v2882_v31  ;;  %v2685_v12 = vmin.f32 %v2683_v36, %v2684_v8  ;;  %v2438_v20 = vmul.f32 2.0, %v2414_v22 }
 0x2e0   : > { %v2789_v17 = vrot.slane %v2788_v60, 2  ;;  %v2688_v21 = vrot.slane %v2687_v50, 4  ;;  %v6773_v28 = vadd.f32 %v6573_v26, %v2578_v18  ;;  %v2415_v42 = vadd.f32 %v2382_v5, %v6691_v9 }
 0x2e1   : > { %v4280_v56 = vcvt.f32.s32 %v4279_v27  ;;  %v2535_v40 = vpop.permute.xlu0 %2534  ;;  %vm2730_vm6 = vcmp.eq.f32.partialorder %v6703_v6, %v2685_v12  ;;  %vm2731_vm7 = vcmp.eq.f32.partialorder %v6699_v37, %v2685_v12  ;;  %vm2732_vm10 = vcmp.eq.f32.partialorder %v6726_v38, %v2685_v12 }
 0x2e2   : > { %v2790_v46 = vmin.f32 %v2788_v60, %v2789_v17  ;;  %v2530_v53 = vpop.permute.xlu1 %2529  ;;  %v2754_v7 = vsel %vm2730_vm6, %v6646_v52, 24.0  ;;  %v2755_v16 = vsel %vm2731_vm7, %v6648_v63, 24.0  ;;  %v2876_v1 = vadd.f32 1e-05, %v2685_v12 }
 0x2e3   : > { %v6782_v57 = vadd.f32 %v6573_v26, %v2577_v23  ;;  %v2756_v34 = vsel %vm2732_vm10, %v6657_v10, 24.0  ;;  %v2793_v9 = vmin.f32 %v2754_v7, %v2755_v16  ;;  %v2689_v33 = vmin.f32 %v2687_v50, %v2688_v21 }
 0x2e4   : > { %v2791_v24 = vrot.slane %v2790_v46, 1  ;;  %4374 = vlog2.f32 %v2876_v1  ;;  %v2580_v37 = vsub.f32 %v2535_v40, %v6729_v30  ;;  %v2579_v38 = vsub.f32 %v2530_v53, %v6745_v11 }
 0x2e5   : > { %v2545_v6 = vpop.permute.xlu0 %2544  ;;  %v2854_v2 = vsel %vm2853_vm5, %v2685_v12, %v2852_v62  ;;  %v2794_v13 = vmin.f32 %v2793_v9, %v2756_v34  ;;  %v2690_v22 = vrot.slane %v2689_v33, 2  ;;  %v2439_v19 = vmul.f32 2.0, %v2415_v42 }
 0x2e6   : > { %v2792_v58 = vmin.f32 %v2790_v46, %v2791_v24  ;;  %vm2855_vm11 = vcmask 1044484   ;;  %v4373_v14 = vpop.eup %4372  ;;  %v2694_v61 = vmin.f32 %v6782_v57, %v6773_v28  ;;  %v2610_v36 = vadd.f32 %v6573_v26, %v2579_v38 }
 0x2e7   : > { %v2540_v32 = vpop.permute.xlu1 %2539  ;;  %v2582_v55 = vsub.f32 %v2545_v6, %v2438_v20  ;;  %v2865_v3 = vsel %vm2849_vm0, %v4280_v56, %v4278_v35  ;;  %v2795_v18 = vrot.slane %v2794_v13, 4  ;;  %v2691_v11 = vmin.f32 %v2689_v33, %v2690_v22 }
 0x2e8   : > { %v4281_v30 = vtrunc.f32 %v2792_v58  ;;  %v2581_v31 = vsub.f32 %v2540_v32, %v6734_v48  ;;  %v6794_v47 = vadd.f32 %v6573_v26, %v2580_v37  ;;  %v6798_v27 = vsel %vm2623_vm9, %v2610_v36, inf }
 0x2e9   : > { %v2613_v60 = vadd.f32 %v6573_v26, %v2582_v55  ;;  %v2886_v8 = vmul.f32 0.6931472, %v4373_v14  ;;  %v2796_v23 = vmin.f32 %v2794_v13, %v2795_v18  ;;  %v2692_v50 = vrot.slane %v2691_v11, 1  ;;  %v2555_v62 = vpop.permute.xlu0 %2554 }
 0x2ea   : > { %v4282_v5 = vcvt.f32.s32 %v4281_v30  ;;  %v6802_v35 = vadd.f32 %v6573_v26, %v2581_v31  ;;  %v2695_v48 = vmin.f32 %v2694_v61, %v6798_v27  ;;  %v2584_v12 = vsub.f32 %v2555_v62, %v6749_v25 }
 0x2eb   : > { %v2441_v20 = vmul.f32 2.0, %v6756_v4  ;;  %v2929_v56 = vsel %vm2851_vm2, %v2886_v8, %v2928_v39  ;;  %v2797_v40 = vrot.slane %v2796_v23, 2  ;;  %v2693_v21 = vmin.f32 %v2691_v11, %v2692_v50 }
 0x2ec   : > { %v2550_v17 = vpop.permute.xlu1 %2549  ;;  %v2702_v42 = vmin.f32 %v6794_v47, %v6802_v35  ;;  %v6812_v46 = vsel %vm2623_vm9, %v2613_v60, inf  ;;  %v2696_v53 = vrot.slane %v2695_v48, 4  ;;  %v6815_v7 = vadd.f32 %v6573_v26, %v2584_v12 }
 0x2ed   : > { %v2583_v16 = vsub.f32 %v2550_v17, %v2439_v19  ;;  %v2866_v25 = vsel %vm2851_vm2, %v4282_v5, %v2865_v3  ;;  %v2798_v1 = vmin.f32 %v2796_v23, %v2797_v40  ;;  %vm2733_vm12 = vcmp.eq.f32.partialorder %v6737_v0, %v2693_v21 }
 0x2ee   : > { %vm2734_vm13 = vcmp.eq.f32.partialorder %v6752_v59, %v2693_v21  ;;  %vm2735_vm14 = vcmp.eq.f32.partialorder %v6766_v45, %v2693_v21  ;;  %v2757_v4 = vsel %vm2733_vm12, %v6646_v52, 24.0  ;;  %v2877_v34 = vadd.f32 1e-05, %v2693_v21 }
 0x2ef   : > { %v2758_v39 = vsel %vm2734_vm13, %v6648_v63, 24.0  ;;  %v2759_v24 = vsel %vm2735_vm14, %v6657_v10, 24.0  ;;  %v2799_v9 = vrot.slane %v2798_v1, 1  ;;  %v2697_v6 = vmin.f32 %v2695_v48, %v2696_v53 }
 0x2f0   : > { %v2801_v33 = vmin.f32 %v2757_v4, %v2758_v39  ;;  %v2560_v37 = vpop.permute.xlu1 %2559  ;;  %v2703_v38 = vmin.f32 %v2702_v42, %v6812_v46  ;;  %v6826_v0 = vadd.f32 %v6573_v26, %v2583_v16  ;;  %4376 = vlog2.f32 %v2877_v34 }
 0x2f1   : > { %v2585_v58 = vsub.f32 %v2560_v37, %v2441_v20  ;;  %v6829_v59 = vsel %vm2855_vm11, %v2693_v21, %v2854_v2  ;;  %v4375_v45 = vpop.eup %4374  ;;  %v2800_v13 = vmin.f32 %v2798_v1, %v2799_v9  ;;  %v2698_v19 = vrot.slane %v2697_v6, 2 }
 0x2f2   : > { %v2802_v22 = vmin.f32 %v2801_v33, %v2759_v24  ;;  %v2704_v14 = vrot.slane %v2703_v38, 4  ;;  %v2710_v61 = vmin.f32 %v6826_v0, %v6815_v7  ;;  %v2888_v36 = vmul.f32 0.6931472, %v4375_v45 }
 0x2f3   : > { %v2616_v32 = vadd.f32 %v6573_v26, %v2585_v58  ;;  %v4283_v55 = vtrunc.f32 %v2800_v13  ;;  %v2699_v30 = vmin.f32 %v2697_v6, %v2698_v19  ;;  %vm2857_vm4 = vcmask 1045509  }
 0x2f4   : > { %v2803_v3 = vrot.slane %v2802_v22, 4  ;;  %v2705_v18 = vmin.f32 %v2703_v38, %v2704_v14  ;;  %v2930_v2 = vsel %vm2853_vm5, %v2888_v36, %v2929_v56  ;;  %vm2861_vm6 = vcmask 1047559  }
 0x2f5   : > { %v6836_v11 = vsel %vm2623_vm9, %v2616_v32, inf  ;;  %v4284_v31 = vcvt.f32.s32 %v4283_v55  ;;  %v2700_v8 = vrot.slane %v2699_v30, 1 }
 0x2f6   : > { %v2804_v60 = vmin.f32 %v2802_v22, %v2803_v3  ;;  %v2706_v5 = vrot.slane %v2705_v18, 2  ;;  %v2711_v26 = vmin.f32 %v2710_v61, %v6836_v11 }
 0x2f7   : > { %v2701_v50 = vmin.f32 %v2699_v30, %v2700_v8  ;;  %v2867_v17 = vsel %vm2853_vm5, %v4284_v31, %v2866_v25  ;;  %vm2859_vm5 = vcmask 1046534  }
 0x2f8   : > { %v2805_v23 = vrot.slane %v2804_v60, 2  ;;  %v2707_v62 = vmin.f32 %v2705_v18, %v2706_v5  ;;  %v2712_v48 = vrot.slane %v2711_v26, 4 }
 0x2f9   : > { %vm2736_vm15 = vcmp.eq.f32.partialorder %v6782_v57, %v2701_v50  ;;  %vm2737_vm9 = vcmp.eq.f32.partialorder %v6773_v28, %v2701_v50  ;;  %vm2738_vm0 = vcmp.eq.f32.partialorder %v6798_v27, %v2701_v50  ;;  %v2878_v33 = vadd.f32 1e-05, %v2701_v50 }
 0x2fa   : > { %v2806_v12 = vmin.f32 %v2804_v60, %v2805_v23  ;;  %v2760_v41 = vsel %vm2736_vm15, %v6646_v52, 24.0  ;;  %v2761_v20 = vsel %vm2737_vm9, %v6648_v63, 24.0  ;;  %v2708_v56 = vrot.slane %v2707_v62, 1 }
 0x2fb   : > { %v2809_v21 = vmin.f32 %v2760_v41, %v2761_v20  ;;  %v2713_v42 = vmin.f32 %v2711_v26, %v2712_v48  ;;  %v2762_v53 = vsel %vm2738_vm0, %v6657_v10, 24.0  ;;  %4378 = vlog2.f32 %v2878_v33 }
 0x2fc   : > { %v2807_v40 = vrot.slane %v2806_v12, 1  ;;  %v2709_v16 = vmin.f32 %v2707_v62, %v2708_v56  ;;  %v2858_v61 = vsel %vm2857_vm4, %v2701_v50, %v6829_v59  ;;  %v3037_v33 = vand.u32 4294901760, %v6334_v44 }
 0x2fd   : > { %v4377_v25 = vpop.eup %4376  ;;  %v2810_v4 = vmin.f32 %v2809_v21, %v2762_v53  ;;  %v2714_v57 = vrot.slane %v2713_v42, 2 }
 0x2fe   : > { %v2808_v1 = vmin.f32 %v2806_v12, %v2807_v40  ;;  %vm2739_vm2 = vcmp.eq.f32.partialorder %v6794_v47, %v2709_v16  ;;  %vm2740_vm3 = vcmp.eq.f32.partialorder %v6802_v35, %v2709_v16  ;;  %vm2741_vm1 = vcmp.eq.f32.partialorder %v6812_v46, %v2709_v16 }
 0x2ff   : > { %v2811_v27 = vrot.slane %v2810_v4, 4  ;;  %v2763_v39 = vsel %vm2739_vm2, %v6646_v52, 24.0  ;;  %v2764_v24 = vsel %vm2740_vm3, %v6648_v63, 24.0  ;;  %v2715_v9 = vmin.f32 %v2713_v42, %v2714_v57 }
 0x300   : > { %v4285_v28 = vtrunc.f32 %v2808_v1  ;;  %v2817_v34 = vmin.f32 %v2763_v39, %v2764_v24  ;;  %v2890_v6 = vmul.f32 0.6931472, %v4377_v25  ;;  %v2765_v38 = vsel %vm2741_vm1, %v6657_v10, 24.0 }
 0x301   : > { %v2812_v37 = vmin.f32 %v2810_v4, %v2811_v27  ;;  %v2879_v47 = vadd.f32 1e-05, %v2709_v16  ;;  %v2716_v45 = vrot.slane %v2715_v9, 1  ;;  %v2860_v30 = vsel %vm2859_vm5, %v2709_v16, %v2858_v61  ;;  %v7262_v61 = vld [vmem:[#allocation18_spill] sm:$0xff] }
 0x302   : > { %v4286_v58 = vcvt.f32.s32 %v4285_v28  ;;  %v2818_v35 = vmin.f32 %v2817_v34, %v2765_v38  ;;  %v2931_v46 = vsel %vm2855_vm11, %v2890_v6, %v2930_v2  ;;  %v3030_v24 = vand.u32 4294901760, %v6319_v51 }
 0x303   : > { %v2813_v13 = vrot.slane %v2812_v37, 2  ;;  %v2717_v14 = vmin.f32 %v2715_v9, %v2716_v45  ;;  %4380 = vlog2.f32 %v2879_v47  ;;  %v3044_v38 = vand.u32 4294901760, %v6346_v15 }
 0x304   : > { %v2868_v22 = vsel %vm2855_vm11, %v4286_v58, %v2867_v17  ;;  %v2819_v19 = vrot.slane %v2818_v35, 4  ;;  %v3031_v6 = vsub.f32 %v6319_v51, %v3030_v24  ;;  %v3038_v47 = vsub.f32 %v6334_v44, %v3037_v33 }
 0x305   : > { %v2814_v32 = vmin.f32 %v2812_v37, %v2813_v13  ;;  %vm2742_vm7 = vcmp.eq.f32.partialorder %v6826_v0, %v2717_v14  ;;  %vm2743_vm10 = vcmp.eq.f32.partialorder %v6815_v7, %v2717_v14  ;;  %vm2744_vm12 = vcmp.eq.f32.partialorder %v6836_v11, %v2717_v14 }
 0x306   : > { %v2820_v36 = vmin.f32 %v2818_v35, %v2819_v19  ;;  %v2766_v55 = vsel %vm2742_vm7, %v6646_v52, 24.0  ;;  %v2767_v3 = vsel %vm2743_vm10, %v6648_v63, 24.0  ;;  %v2880_v31 = vadd.f32 1e-05, %v2717_v14 }
 0x307   : > { %v2825_v2 = vmin.f32 %v2766_v55, %v2767_v3  ;;  %v2862_v60 = vsel %vm2861_vm6, %v2717_v14, %v2860_v30  ;;  %v2768_v59 = vsel %vm2744_vm12, %v6657_v10, 24.0  ;;  %v2815_v0 = vrot.slane %v2814_v32, 1  ;;  %v7263_v3 = vld [vmem:[#allocation20_spill] sm:$0xff] }
 0x308   : > { %v2821_v18 = vrot.slane %v2820_v36, 2  ;;  %2864 = vst [vmem:[%s312_s22] sm:$0xff] %v2862_v60  ;;  %4382 = vlog2.f32 %v2880_v31  ;;  %v4379_v50 = vpop.eup %4378  ;;  %v3032_v51 = vand.u32 4294901760, %v3031_v6  ;;  %v3051_v35 = vand.u32 4294901760, %v6362_v49  ;;  %v7274_v6 = vld [vmem:[#allocation12_spill] sm:$0xff] }
 0x309   : > { %v2826_v8 = vmin.f32 %v2825_v2, %v2768_v59  ;;  %v2816_v5 = vmin.f32 %v2814_v32, %v2815_v0  ;;  %v2892_v41 = vmul.f32 0.6931472, %v4379_v50  ;;  %v3045_v45 = vsub.f32 %v6346_v15, %v3044_v38  ;;  %v7264_v2 = vld [vmem:[#allocation23_spill] sm:$0xff]  ;;  %v7265_v59 = vld [vmem:[#allocation24_spill] sm:$0xff] }
 0x30a   : > { %v2822_v7 = vmin.f32 %v2820_v36, %v2821_v18  ;;  %v3039_v44 = vand.u32 4294901760, %v3038_v47  ;;  %v3058_v13 = vand.u32 4294901760, %v6374_v54  ;;  %v3065_v14 = vand.u32 4294901760, %v6390_v43  ;;  %v7276_v47 = vld [vmem:[#allocation14_spill] sm:$0xff] }
 0x30b   : > { %v2827_v52 = vrot.slane %v2826_v8, 4  ;;  %v4287_v48 = vtrunc.f32 %v2816_v5  ;;  %v2932_v16 = vsel %vm2857_vm4, %v2892_v41, %v2931_v46  ;;  %v3046_v19 = vand.u32 4294901760, %v3045_v45  ;;  %v7280_v45 = vld [vmem:[#allocation19_spill] sm:$0xff] }
 0x30c   : > { %v2823_v11 = vrot.slane %v2822_v7, 1  ;;  %v3059_v32 = vsub.f32 %v6374_v54, %v3058_v13  ;;  %v3072_v36 = vand.u32 4294901760, %v7262_v61  ;;  %v3079_v54 = vand.u32 4294901760, %v7263_v3 }
 0x30d   : > { %v2828_v63 = vmin.f32 %v2826_v8, %v2827_v52  ;;  %v4288_v40 = vcvt.f32.s32 %v4287_v48  ;;  %v3093_v0 = vand.u32 4294901760, %v7265_v59 }
 0x30e   : > { %v2824_v26 = vmin.f32 %v2822_v7, %v2823_v11  ;;  %v3060_v55 = vand.u32 4294901760, %v3059_v32  ;;  %v3073_v30 = vsub.f32 %v7262_v61, %v3072_v36  ;;  %v3080_v31 = vsub.f32 %v7263_v3, %v3079_v54  ;;  %v7266_v11 = vld [vmem:[#allocation26_spill] sm:$0xff]  ;;  %v7287_v32 = vld [vmem:[#allocation33_spill] sm:$0xff] }
 0x30f   : > { %v2829_v23 = vrot.slane %v2828_v63, 2  ;;  %v2869_v28 = vsel %vm2857_vm4, %v4288_v40, %v2868_v22  ;;  %v3052_v22 = vsub.f32 %v6362_v49, %v3051_v35  ;;  %v3066_v49 = vsub.f32 %v6390_v43, %v3065_v14 }
 0x310   : > { %v4381_v62 = vpop.eup %4380  ;;  %v4289_v12 = vtrunc.f32 %v2824_v26  ;;  %v3086_v43 = vand.u32 4294901760, %v7264_v2  ;;  %v3074_v60 = vand.u32 4294901760, %v3073_v30  ;;  %v3081_v8 = vand.u32 4294901760, %v3080_v31  ;;  %v7267_v26 = vld [vmem:[#allocation28_spill] sm:$0xff] }
 0x311   : > { %v2830_v17 = vmin.f32 %v2828_v63, %v2829_v23  ;;  %v2894_v20 = vmul.f32 0.6931472, %v4381_v62  ;;  %v3053_v15 = vand.u32 4294901760, %v3052_v22  ;;  %v3067_v18 = vand.u32 4294901760, %v3066_v49  ;;  %v7284_v22 = vld [vmem:[#allocation27_spill] sm:$0xff] }
 0x312   : > { %v4290_v42 = vcvt.f32.s32 %v4289_v12  ;;  %v3087_v7 = vsub.f32 %v7264_v2, %v3086_v43  ;;  %v3100_v52 = vand.u32 4294901760, %v7266_v11  ;;  %v3094_v5 = vsub.f32 %v7265_v59, %v3093_v0 }
 0x313   : > { %v2831_v10 = vrot.slane %v2830_v17, 1  ;;  %v2933_v1 = vsel %vm2859_vm5, %v2894_v20, %v2932_v16  ;;  %v3107_v23 = vand.u32 4294901760, %v7267_v26 }
 0x314   : > { %v2870_v39 = vsel %vm2859_vm5, %v4290_v42, %v2869_v28  ;;  %v3088_v63 = vand.u32 4294901760, %v3087_v7  ;;  %v3101_v50 = vsub.f32 %v7266_v11, %v3100_v52  ;;  %v3095_v62 = vand.u32 4294901760, %v3094_v5 }
 0x315   : > { %v2832_v56 = vmin.f32 %v2830_v17, %v2831_v10  ;;  %v4383_v21 = vpop.eup %4382  ;;  %v7268_v17 = vld [vmem:[#allocation30_spill] sm:$0xff]  ;;  %v3108_v12 = vsub.f32 %v7267_v26, %v3107_v23  ;;  %v7269_v10 = vld [vmem:[#allocation32_spill] sm:$0xff] }
 0x316   : > { %v2896_v53 = vmul.f32 0.6931472, %v4383_v21  ;;  %v3114_v48 = vand.u32 4294901760, %v7268_v17  ;;  %v3102_v41 = vand.u32 4294901760, %v3101_v50  ;;  %v3121_v20 = vand.u32 4294901760, %v7269_v10  ;;  %v7270_v21 = vld [vmem:[#allocation34_spill] sm:$0xff] }
 0x317   : > { %v4291_v25 = vtrunc.f32 %v2832_v56  ;;  %v3109_v40 = vand.u32 4294901760, %v3108_v12  ;;  %v3128_v42 = vand.u32 4294901760, %v7270_v21 }
 0x318   : > { %v2934_v4 = vsel %vm2861_vm6, %v2896_v53, %v2933_v1  ;;  %v3115_v56 = vsub.f32 %v7268_v17, %v3114_v48  ;;  %v3122_v53 = vsub.f32 %v7269_v10, %v3121_v20 }
 0x319   : > { %v4292_v57 = vcvt.f32.s32 %v4291_v25  ;;  %v6877_v27 = vand.u32 4294901760, %v2934_v4  ;;  %v7271_v25 = vld [vmem:[#allocation35_spill] sm:$0xff] }
 0x31a   : > { %v3116_v16 = vand.u32 4294901760, %v3115_v56  ;;  %v3135_v1 = vand.u32 4294901760, %v7271_v25 }
 0x31b   : > { %v2871_v34 = vsel %vm2861_vm6, %v4292_v57, %v2870_v39  ;;  %v6883_v9 = vsub.f32 %v2934_v4, %v6877_v27  ;;  %v3129_v4 = vsub.f32 %v7270_v21, %v3128_v42  ;;  %v3123_v57 = vand.u32 4294901760, %v3122_v53 }
 0x31c   : > { %2872 = vst [vmem:[%s7188_s26] sm:$0xff] %v2871_v34  ;;  %v3136_v28 = vsub.f32 %v7271_v25, %v3135_v1  ;;  %v7272_v34 = vld [vmem:[#allocation10_spill] sm:$0xff] }
 0x31d   : > { %4170 = vmatmul.mubr.f32.vlgmr.msra.gmra.mxu0 %v6883_v9  ;;  %v3019_v37 = vand.u32 4294901760, %v6883_v9  ;;  %v3130_v39 = vand.u32 4294901760, %v3129_v4 }
 0x31e   : > { %4208 = vmatpush3.msra.mxu0 %v3030_v24  ;;  %4239 = vmatprep.mubr.msk.f32.mxu0 %vm4513_vm8, %v7237_v29  ;;  %v3137_v24 = vand.u32 4294901760, %v3136_v28 }
 0x31f   : > { %4209 = vmatprep.subr.mxu0 %v7237_v29  ;;  %v3020_v58 = vsub.f32 %v6883_v9, %v3019_v37 }
 0x320   : > { %4210 = vmatpush3.msra.mxu0 %v3037_v33  ;;  %v7273_v33 = vld [vmem:[#allocation11_spill] sm:$0xff] }
 0x321   : > { %4211 = vmatprep.subr.mxu0 %v7237_v29  ;;  %v3021_v46 = vand.u32 4294901760, %v3020_v58  ;;  %v7277_v58 = vld [vmem:[#allocation15_spill] sm:$0xff] }
 0x322   : > { %4212 = vmatpush3.msra.mxu0 %v3044_v38  ;;  %v7275_v38 = vld [vmem:[#allocation13_spill] sm:$0xff] }
 0x323   : > { %4213 = vmatprep.subr.mxu0 %v7237_v29  ;;  %4100 = vmatmul.mubr.f32.vlgmr.msra.gmra.mxu1 %v3021_v46  ;;  %v7281_v46 = vld [vmem:[#allocation21_spill] sm:$0xff] }
 0x324   : > { %4103 = vmatpush3.msra.mxu1 %v3032_v51  ;;  %4214 = vmatpush3.msra.mxu0 %v3051_v35  ;;  %v7278_v51 = vld [vmem:[#allocation16_spill] sm:$0xff]  ;;  %v7279_v35 = vld [vmem:[#allocation17_spill] sm:$0xff] }
 0x325   : > { %4104 = vmatprep.subr.mxu1 %v7237_v29  ;;  %4215 = vmatprep.subr.mxu0 %v7237_v29 }
 0x326   : > { %4105 = vmatpush3.msra.mxu1 %v3039_v44  ;;  %4216 = vmatpush3.msra.mxu0 %v3058_v13  ;;  %v7282_v44 = vld [vmem:[#allocation22_spill] sm:$0xff]  ;;  %v7283_v13 = vld [vmem:[#allocation25_spill] sm:$0xff] }
 0x327   : > { %4106 = vmatprep.subr.mxu1 %v7237_v29  ;;  %4217 = vmatprep.subr.mxu0 %v7237_v29 }
 0x328   : > { %4107 = vmatpush3.msra.mxu1 %v3046_v19  ;;  %4218 = vmatpush3.msra.mxu0 %v3065_v14  ;;  %v7285_v19 = vld [vmem:[#allocation29_spill] sm:$0xff]  ;;  %v7286_v14 = vld [vmem:[#allocation31_spill] sm:$0xff] }
 0x329   : > { %4108 = vmatprep.subr.mxu1 %v7237_v29  ;;  %4219 = vmatprep.subr.mxu0 %v7237_v29 }
 0x32a   : > { %4109 = vmatpush3.msra.mxu1 %v3053_v15  ;;  %4220 = vmatpush3.msra.mxu0 %v3072_v36 }
 0x32b   : > { %4110 = vmatprep.subr.mxu1 %v7237_v29  ;;  %4221 = vmatprep.subr.mxu0 %v7237_v29 }
 0x32c   : > { %4111 = vmatpush3.msra.mxu1 %v3060_v55  ;;  %4222 = vmatpush3.msra.mxu0 %v3079_v54 }
 0x32d   : > { %4112 = vmatprep.subr.mxu1 %v7237_v29  ;;  %4223 = vmatprep.subr.mxu0 %v7237_v29 }
 0x32e   : > { %4113 = vmatpush3.msra.mxu1 %v3067_v18  ;;  %4224 = vmatpush3.msra.mxu0 %v3086_v43 }
 0x32f   : > { %4114 = vmatprep.subr.mxu1 %v7237_v29  ;;  %4225 = vmatprep.subr.mxu0 %v7237_v29 }
 0x330   : > { %4115 = vmatpush3.msra.mxu1 %v3074_v60  ;;  %4226 = vmatpush3.msra.mxu0 %v3093_v0 }
 0x331   : > { %4116 = vmatprep.subr.mxu1 %v7237_v29  ;;  %4227 = vmatprep.subr.mxu0 %v7237_v29 }
 0x332   : > { %4117 = vmatpush3.msra.mxu1 %v3081_v8  ;;  %4228 = vmatpush3.msra.mxu0 %v3100_v52 }
 0x333   : > { %4118 = vmatprep.subr.mxu1 %v7237_v29  ;;  %4229 = vmatprep.subr.mxu0 %v7237_v29 }
 0x334   : > { %4119 = vmatpush3.msra.mxu1 %v3088_v63  ;;  %4230 = vmatpush3.msra.mxu0 %v3107_v23 }
 0x335   : > { %4120 = vmatprep.subr.mxu1 %v7237_v29  ;;  %4231 = vmatprep.subr.mxu0 %v7237_v29 }
 0x336   : > { %4121 = vmatpush3.msra.mxu1 %v3095_v62  ;;  %4232 = vmatpush3.msra.mxu0 %v3114_v48 }
 0x337   : > { %4122 = vmatprep.subr.mxu1 %v7237_v29  ;;  %4233 = vmatprep.subr.mxu0 %v7237_v29 }
 0x338   : > { %4123 = vmatpush3.msra.mxu1 %v3102_v41  ;;  %4234 = vmatpush3.msra.mxu0 %v3121_v20 }
 0x339   : > { %4124 = vmatprep.subr.mxu1 %v7237_v29  ;;  %4235 = vmatprep.subr.mxu0 %v7237_v29 }
 0x33a   : > { %4125 = vmatpush3.msra.mxu1 %v3109_v40  ;;  %4236 = vmatpush3.msra.mxu0 %v3128_v42 }
 0x33b   : > { %4126 = vmatprep.subr.mxu1 %v7237_v29  ;;  %4237 = vmatprep.subr.mxu0 %v7237_v29 }
 0x33c   : > { %4127 = vmatpush3.msra.mxu1 %v3116_v16  ;;  %4238 = vmatpush3.msra.mxu0 %v3135_v1 }
 0x33d   : > { %4128 = vmatprep.subr.mxu1 %v7237_v29  ;;  %4240 = vmatmul.mubr.f32.vlgmr.msra.gmra.mxu0 %v6877_v27 }
 0x33e   : > { %4129 = vmatpush3.msra.mxu1 %v3123_v57  ;;  %4134 = vmatprep.mubr.msk.f32.mxu1 %vm4513_vm8, %v7237_v29 }
 0x33f   : > { %4130 = vmatprep.subr.mxu1 %v7237_v29 }
 0x340   : > { %4131 = vmatpush3.msra.mxu1 %v3130_v39 }
 0x341   : > { %4132 = vmatprep.subr.mxu1 %v7237_v29 }
 0x342   : > { %4133 = vmatpush3.msra.mxu1 %v3137_v24 }
 0x343   : > { %4135 = vmatmul.mubr.f32.vlgmr.msra.gmra.mxu1 %v6877_v27  ;;  %4172 = vmatprep.subr.mxu1 %v7237_v29 }
 0x344   : > { %4173 = vmatpush3.msra.mxu1 %v7272_v34  ;;  %4204 = vmatprep.mubr.msk.f32.mxu1 %vm4513_vm8, %v7237_v29 }
 0x345   : > { %4174 = vmatprep.subr.mxu1 %v7237_v29 }
 0x346   : > { %4175 = vmatpush3.msra.mxu1 %v7273_v33 }
 0x347   : > { %4176 = vmatprep.subr.mxu1 %v7237_v29 }
 0x348   : > { %4177 = vmatpush3.msra.mxu1 %v7274_v6 }
 0x349   : > { %4178 = vmatprep.subr.mxu1 %v7237_v29 }
 0x34a   : > { %4179 = vmatpush3.msra.mxu1 %v7275_v38 }
 0x34b   : > { %4180 = vmatprep.subr.mxu1 %v7237_v29 }
 0x34c   : > { %4181 = vmatpush3.msra.mxu1 %v7276_v47 }
 0x34d   : > { %4182 = vmatprep.subr.mxu1 %v7237_v29 }
 0x34e   : > { %4183 = vmatpush3.msra.mxu1 %v7277_v58 }
 0x34f   : > { %4184 = vmatprep.subr.mxu1 %v7237_v29 }
 0x350   : > { %4185 = vmatpush3.msra.mxu1 %v7278_v51 }
 0x351   : > { %4186 = vmatprep.subr.mxu1 %v7237_v29 }
 0x352   : > { %4187 = vmatpush3.msra.mxu1 %v7279_v35 }
 0x353   : > { %4188 = vmatprep.subr.mxu1 %v7237_v29 }
 0x354   : > { %4189 = vmatpush3.msra.mxu1 %v7280_v45 }
 0x355   : > { %4190 = vmatprep.subr.mxu1 %v7237_v29 }
 0x356   : > { %4191 = vmatpush3.msra.mxu1 %v7281_v46 }
 0x357   : > { %4192 = vmatprep.subr.mxu1 %v7237_v29 }
 0x358   : > { %4193 = vmatpush3.msra.mxu1 %v7282_v44 }
 0x359   : > { %4194 = vmatprep.subr.mxu1 %v7237_v29 }
 0x35a   : > { %4195 = vmatpush3.msra.mxu1 %v7283_v13 }
 0x35b   : > { %4196 = vmatprep.subr.mxu1 %v7237_v29 }
 0x35c   : > { %4197 = vmatpush3.msra.mxu1 %v7284_v22 }
 0x35d   : > { %4198 = vmatprep.subr.mxu1 %v7237_v29 }
 0x35e   : > { %4199 = vmatpush3.msra.mxu1 %v7285_v19 }
 0x35f   : > { %4200 = vmatprep.subr.mxu1 %v7237_v29 }
 0x360   : > { %4201 = vmatpush3.msra.mxu1 %v7286_v14 }
 0x361   : > { %4202 = vmatprep.subr.mxu1 %v7237_v29 }
 0x362   : > { %4203 = vmatpush3.msra.mxu1 %v7287_v32 }
 0x363   : > { %4205 = vmatmul.mubr.f32.vlgmr.msra.gmra.mxu1 %v3019_v37  ;;  %4242 = vmatprep.subr.mxu1 %v7237_v29 }
 0x364   : > { %4243 = vmatpush3.msra.mxu1 %v7272_v34  ;;  %4274 = vmatprep.mubr.msk.f32.mxu1 %vm4513_vm8, %v7237_v29 }
 0x365   : > { %4244 = vmatprep.subr.mxu1 %v7237_v29 }
 0x366   : > { %4245 = vmatpush3.msra.mxu1 %v7273_v33 }
 0x367   : > { %4246 = vmatprep.subr.mxu1 %v7237_v29 }
 0x368   : > { %4247 = vmatpush3.msra.mxu1 %v7274_v6 }
 0x369   : > { %4248 = vmatprep.subr.mxu1 %v7237_v29 }
 0x36a   : > { %4249 = vmatpush3.msra.mxu1 %v7275_v38 }
 0x36b   : > { %4250 = vmatprep.subr.mxu1 %v7237_v29 }
 0x36c   : > { %4251 = vmatpush3.msra.mxu1 %v7276_v47 }
 0x36d   : > { %4252 = vmatprep.subr.mxu1 %v7237_v29 }
 0x36e   : > { %4253 = vmatpush3.msra.mxu1 %v7277_v58 }
 0x36f   : > { %4254 = vmatprep.subr.mxu1 %v7237_v29 }
 0x370   : > { %4255 = vmatpush3.msra.mxu1 %v7278_v51 }
 0x371   : > { %4256 = vmatprep.subr.mxu1 %v7237_v29 }
 0x372   : > { %4257 = vmatpush3.msra.mxu1 %v7279_v35 }
 0x373   : > { %4258 = vmatprep.subr.mxu1 %v7237_v29 }
 0x374   : > { %4259 = vmatpush3.msra.mxu1 %v7280_v45 }
 0x375   : > { %4260 = vmatprep.subr.mxu1 %v7237_v29 }
 0x376   : > { %4261 = vmatpush3.msra.mxu1 %v7281_v46 }
 0x377   : > { %4262 = vmatprep.subr.mxu1 %v7237_v29 }
 0x378   : > { %4263 = vmatpush3.msra.mxu1 %v7282_v44 }
 0x379   : > { %4264 = vmatprep.subr.mxu1 %v7237_v29 }
 0x37a   : > { %4265 = vmatpush3.msra.mxu1 %v7283_v13 }
 0x37b   : > { %4266 = vmatprep.subr.mxu1 %v7237_v29 }
 0x37c   : > { %4267 = vmatpush3.msra.mxu1 %v7284_v22 }
 0x37d   : > { %4268 = vmatprep.subr.mxu1 %v7237_v29 }
 0x37e   : > { %4269 = vmatpush3.msra.mxu1 %v7285_v19 }
 0x37f   : > { %4270 = vmatprep.subr.mxu1 %v7237_v29 }
 0x380   : > { %4271 = vmatpush3.msra.mxu1 %v7286_v14 }
 0x381   : > { %4272 = vmatprep.subr.mxu1 %v7237_v29 }
 0x382   : > { %4273 = vmatpush3.msra.mxu1 %v7287_v32 }
 0x383   : > { %4275 = vmatmul.mubr.f32.vlgmr.msra.gmra.mxu1 %v6877_v27 }
 0x384   : > { %4401 = shalt.err (!%p4398_p3)
}
 0x385   : > { %s4402_s17 = scalar_lea.hbm %s3613_s18, 128  ;;  %s4406_s13 = scalar_lea.hbm %s7129_s7, 256 }
 0x386   : > { %p4403_p4 = scmp.ne.s32.totalorder %s3613_s18, %s4402_s17  ;;  %p4407_p9 = scmp.lt.s32.totalorder %s3613_s18, %s7129_s7 }
 0x387   : > { %p4408_p10 = scmp.lt.s32.totalorder %s4406_s13, %s4402_s17 }
 0x388   : > { %p4404_p7 = pnand %p4403_p4, %p4602_p5 }
 0x389   : > { %p4409_p11 = por %p4408_p10, %p4407_p9 }
 0x38a   : > { %p4405_p8 = pneg %p4404_p7 }
 0x38c   : > { %p4410_p12 = pnand %p4409_p11, %p4405_p8 }
 0x38e   : > { %4413 = shalt.err (!%p4410_p12)
}
 0x38f   : > { %4294 = dma.vmem_to_hbm [thread:$0]  (%p4602_p5), %s3616_s23, 128, %s3613_s18, %s7041_s19  }
 0x390   : > { %s3626_s12 = scalar_lea.hbm %s7130_s8, %s7033_s25  ;;  %s7288_s9 = scalar_lea.vmem [#allocation7], %s6857_s21 }
 0x391   : > { %s3628_s22 = sshll.u32 %s7288_s9, 4  ;;  %s4515_s26 = smov [#allocation7]   ;;  %s3629_s22 = int_to_ptr.vmem [resolvable:$true] %s3628_s22 }
 0x392   : > { %s4414_s0 = scalar_lea.vmem %s3629_s22, 128  ;;  %s4418_s17 = sshll.u32 %s4515_s26, 4  ;;  %s4419_s17 = int_to_ptr.vmem [resolvable:$false] %s4418_s17 }
 0x393   : > { %p4415_p13 = scmp.ne.s32.totalorder %s3629_s22, %s4414_s0  ;;  %s4420_s24 = scalar_lea.vmem %s4419_s17, 256 }
 0x394   : > { %p4421_p2 = scmp.lt.s32.totalorder %s3629_s22, %s4419_s17  ;;  %p4422_p3 = scmp.lt.s32.totalorder %s4420_s24, %s4414_s0 }
 0x395   : > { %p4416_p0 = pnand %p4415_p13, %p4602_p5 }
 0x396   : > { %p4423_p4 = por %p4422_p3, %p4421_p2 }
 0x397   : > { %p4417_p1 = pneg %p4416_p0 }
 0x399   : > { %p4424_p7 = pnand %p4423_p4, %p4417_p1 }
 0x39b   : > { %4427 = shalt.err (!%p4424_p7)
}
 0x39c   : > { %s4428_s18 = scalar_lea.hbm %s3626_s12, 128  ;;  %s4432_s10 = scalar_lea.hbm %s7130_s8, 256 }
 0x39d   : > { %p4429_p8 = scmp.ne.s32.totalorder %s3626_s12, %s4428_s18  ;;  %p4433_p11 = scmp.lt.s32.totalorder %s3626_s12, %s7130_s8 }
 0x39e   : > { %p4434_p12 = scmp.lt.s32.totalorder %s4432_s10, %s4428_s18 }
 0x39f   : > { %p4430_p9 = pnand %p4429_p8, %p4602_p5 }
 0x3a0   : > { %p4435_p13 = por %p4434_p12, %p4433_p11 }
 0x3a1   : > { %p4431_p10 = pneg %p4430_p9 }
 0x3a3   : > { %p4436_p0 = pnand %p4435_p13, %p4431_p10 }
 0x3a5   : > { %4439 = shalt.err (!%p4436_p0)
}
 0x3a6   : > { %4295 = dma.vmem_to_hbm [thread:$0]  (%p4602_p5), %s3629_s22, 128, %s3626_s12, %s7041_s19   ;;  %v3775_v61 = vld [vmem:[%s7127_s5] ss:$0 sm:$0xff] }
 0x3a7   : > { %s305_s19 = scalar_lea.vmem [#allocation3], %s6857_s21  ;;  %s7083_s24 = scalar_lea.hbm %s7128_s6, %s7033_s25 }
 0x3a8   : > { %s3602_s12 = sshll.u32 %s305_s19, 4  ;;  %s7289_s18 = sand.u32 1, %s4496_s28   ;;  %s3603_s12 = int_to_ptr.vmem [resolvable:$true] %s3602_s12 }
 0x3a9   : > { %s3579_s23 = scalar_lea.sflag [#allocation4], %s7289_s18  ;;  %s4440_s13 = scalar_lea.vmem %s3603_s12, 128 }
 0x3aa   : > { %p4441_p1 = scmp.ne.s32.totalorder %s3603_s12, %s4440_s13  ;;  %s4516_s10 = smov [#allocation3]  }
 0x3ab   : > { %s4444_s21 = sshll.u32 %s4516_s10, 4  ;;  %s4445_s21 = int_to_ptr.vmem [resolvable:$false] %s4444_s21 }
 0x3ac   : > { %p4442_p2 = pnand %p4441_p1, %p4602_p5  ;;  %s4446_s20 = scalar_lea.vmem %s4445_s21, 256 }
 0x3ad   : > { %p4447_p4 = scmp.lt.s32.totalorder %s3603_s12, %s4445_s21  ;;  %p4448_p7 = scmp.lt.s32.totalorder %s4446_s20, %s4440_s13 }
 0x3ae   : > { %p4443_p3 = pneg %p4442_p2 }
 0x3af   : > { %p4449_p8 = por %p4448_p7, %p4447_p4 }
 0x3b1   : > { %p4450_p9 = pnand %p4449_p8, %p4443_p3 }
 0x3dd   : > { %v3278_v29 = vpop.f32.mrf.mxu0 }
 0x3df   : > { %v4171_v27 = vpop.f32.mrf.mxu0 }
 0x3e3   : > { %v3023_v9 = vpop.f32.mrf.mxu1 }
 0x3e4   : > { %v3024_v49 = vadd.f32 %v3775_v61, %v3023_v9 }
 0x3e5   : > { %v4101_v37 = vpop.f32.mrf.mxu1 }
 0x3fd   : > { %v3486_v15 = vpop.f32.mrf.mxu0 }
 0x3ff   : > { %v4241_v36 = vpop.f32.mrf.mxu0 }
 0x403   : > { %v3174_v55 = vpop.f32.mrf.mxu1 }
 0x404   : > { %v3175_v3 = vadd.f32 %v3174_v55, %v3024_v49 }
 0x405   : > { %v4136_v54 = vpop.f32.mrf.mxu1 }
 0x406   : > { %v3279_v30 = vadd.f32 %v3278_v29, %v3175_v3 }
 0x423   : > { %v3367_v18 = vpop.f32.mrf.mxu1 }
 0x424   : > { %v3368_v2 = vadd.f32 %v3367_v18, %v3279_v30 }
 0x425   : > { %v4206_v43 = vpop.f32.mrf.mxu1 }
 0x426   : > { %v3487_v31 = vadd.f32 %v3486_v15, %v3368_v2 }
 0x443   : > { %v3573_v60 = vpop.f32.mrf.mxu1 }
 0x444   : > { %v3574_v59 = vadd.f32 %v3573_v60, %v3487_v31 }
 0x445   : > { %v4276_v0 = vpop.f32.mrf.mxu1 }
 0x446   : > { %3577 = vst [vmem:[%s305_s19] sm:$0xff] %v3574_v59 }
 0x447   : > { %4453 = shalt.err (!%p4450_p9)
}
 0x448   : > { %s4454_s25 = scalar_lea.hbm %s7083_s24, 128  ;;  %s4458_s26 = scalar_lea.hbm %s7128_s6, 256 }
 0x449   : > { %p4455_p10 = scmp.ne.s32.totalorder %s7083_s24, %s4454_s25  ;;  %p4459_p13 = scmp.lt.s32.totalorder %s7083_s24, %s7128_s6 }
 0x44a   : > { %p4460_p0 = scmp.lt.s32.totalorder %s4458_s26, %s4454_s25 }
 0x44b   : > { %p4456_p11 = pnand %p4455_p10, %p4602_p5 }
 0x44c   : > { %p4461_p1 = por %p4460_p0, %p4459_p13 }
 0x44d   : > { %p4457_p12 = pneg %p4456_p11 }
 0x44f   : > { %p4462_p2 = pnand %p4461_p1, %p4457_p12 }
 0x451   : > { %4465 = shalt.err (!%p4462_p2)
}
 0x452   : > { %4293 = dma.vmem_to_hbm [thread:$0]  (%p4602_p5), %s3603_s12, 128, %s7083_s24, %s3579_s23  }
 0x453 PF: > { %p4309_p3 = scmp.ge.s32.totalorder %s4504_s30, 2  ;;  %s3640_s17 = sand.u32 1, %s4492_s27  }
 0x454   : > { %s3641_s18 = scalar_lea.sflag [#allocation4], %s3640_s17 }
 0x455   : > { %p4300_p4 = pnand %p4309_p3, %p4606_p6 }
 0x457   : > { %p4301_p7 = pneg %p4300_p4 }
 0x459   : > { %4483 = dma.done.wait (%p4301_p7), %s3641_s18, 128  }
 0x45a   : > { %4485 = vsyncadd (%p4301_p7), %s3641_s18, 4294967168  ;;  %s7290_s13 = sadd.s32 4294967294, %s4504_s30  }
 0x45b   : > { %s3649_s10 = sand.u32 1, %s7290_s13  }
 0x45c   : > { %s3650_s21 = scalar_lea.sflag [#allocation6], %s3649_s10 }
 0x45d   : > { %4487 = dma.done.wait (%p4301_p7), %s3650_s21, 256  }
 0x45e   : > { %4489 = vsyncadd (%p4301_p7), %s3650_s21, 4294967040  ;;  %p22_p5 = scmp.ge.s32.totalorder %s4587_s11, 4   ;;  %s7291_s27 = smov %s4496_s28 }
 0x45f   : > { %s7292_s28 = smov %s4500_s29  ;;  %s7293_s29 = smov %s4600_s14 }
 0x460   : > { %s7294_s30 = smov %s4587_s11  ;;  %24 = sbr.rel (!%p22_p5) target bundleno = 7 (0x7), region = 111 }
 0x465   :  { %3664 = vsyncpa [#allocation4], 1 }
 0x466   :  { %3666 = vsyncpa [#allocation4 + $0x1], 1 }
 0x467   :  { %3667 = vsyncpa [#allocation6], 1 }
 0x468   :  { %3669 = vsyncpa [#allocation6 + $0x1], 1 }

</bundles_post_ra>
